<compile_context>
chip_gen: v7x
topology: tpu7x:2x2x1
jax: 0.10.0
libtpu: 0.0.40
codegen_flags: <defaults>
</compile_context>

<pallas_src>
import functools

import jax
import jax.numpy as jnp
import numpy as np
from jax import lax
from jax.experimental import pallas as pl
from jax.experimental.pallas import tpu as pltpu

KSIZE = 7
PAD = KSIZE // 2


def _sam_kernel(w_ref, x_ref, o_ref, sum_ref, max_ref, sum_slab, max_slab, *,
                C, cb, H, W, ragged):
    """One (image, channel-chunk) grid step.

    w_ref    : (2*K*K,) f32 SMEM   conv weights, channel 0 pre-scaled by 1/C
    x_ref    : (cb, S)      VMEM   channel chunk of one image, S = H*W (lane-dense)
    o_ref    : (H, W)       VMEM   spatial attention map of that image
    sum_ref  : (G, S) f32   VMEM   per-sublane-group partial channel sums
    max_ref  : (G, S) f32   VMEM   per-sublane-group partial channel maxes
    sum_slab : (H+2P, W+2P) f32    zero-padded sum map (conv input, ch 0)
    max_slab : (H+2P, W+2P) f32    zero-padded max map (conv input, ch 1)
    """
    c_idx = pl.program_id(1)
    last = pl.num_programs(1) - 1
    G = sum_ref.shape[0]                 # 8, or C when C < 8
    ngroups = cb // G                    # cb is a multiple of G by construction
    Hp, Wp = H + 2 * PAD, W + 2 * PAD

    @pl.when(c_idx == 0)
    def _init():
        sum_ref[...] = jnp.zeros_like(sum_ref)
        max_ref[...] = jnp.full_like(max_ref, -jnp.inf)
        # Zero only the PAD-wide frame of the conv slabs; the interior is
        # fully rewritten in every image's epilogue.  (Per-image, not
        # per-call, so it stays correct when N is split across TensorCores.)
        zrow = jnp.zeros((PAD, Wp), jnp.float32)
        zcol = jnp.zeros((H, PAD), jnp.float32)
        for slab in (sum_slab, max_slab):
            slab[0:PAD, :] = zrow
            slab[PAD + H:Hp, :] = zrow
            slab[PAD:PAD + H, 0:PAD] = zcol
            slab[PAD:PAD + H, PAD + W:Wp] = zcol

    # ---- streaming channel reduction: one fused pass over the chunk --------
    def _accumulate(g, carry):
        off = g * G
        if not isinstance(off, int):
            off = pl.multiple_of(off, G)
        xg = x_ref[pl.ds(off, G), :].astype(jnp.float32)        # (G, S)
        if ragged:
            # Last chunk may overhang C; mask invalid channels.
            ch = c_idx * cb + off + lax.broadcasted_iota(jnp.int32, (G, 1), 0)
            valid = ch < C
            xs = jnp.where(valid, xg, 0.0)
            xm = jnp.where(valid, xg, -jnp.inf)
        else:
            xs = xm = xg
        sum_ref[...] = sum_ref[...] + xs
        max_ref[...] = jnp.maximum(max_ref[...], xm)
        return carry

    if ngroups == 1:
        _accumulate(0, 0)
    else:
        lax.fori_loop(0, ngroups, _accumulate, 0, unroll=ngroups <= 8)

    # ---- per-image epilogue: 7x7 conv over [mean, max] + sigmoid -----------
    @pl.when(c_idx == last)
    def _finish():
        if G > 1:   # collapse per-sublane partials into row 0 (dense, once)
            sum_ref[0:1, :] = jnp.sum(sum_ref[...], axis=0, keepdims=True)
            max_ref[0:1, :] = jnp.max(max_ref[...], axis=0, keepdims=True)

        # Scatter the flat maps into the zero-padded (Hp, Wp) conv slabs.
        # Once-per-image relayout; the hot loop above stays lane-dense.
        for h in range(H):
            off = h * W
            sum_slab[PAD + h, PAD:PAD + W] = sum_ref[0, off:off + W]
            max_slab[PAD + h, PAD:PAD + W] = max_ref[0, off:off + W]

        # 7x7 "same" cross-correlation, 2 in-channels -> 1 out-channel.
        # One lane-offset read per (channel, kj); 7 cheap sublane taps each.
        # Two accumulators (one per channel) break the 98-term serial chain.
        # 1/C for the mean channel is already folded into w_ref[:49].
        acc_s = jnp.zeros((H, W), jnp.float32)
        acc_m = jnp.zeros((H, W), jnp.float32)
        for kj in range(KSIZE):
            s_sh = sum_slab[:, kj:kj + W]                        # (Hp, W)
            m_sh = max_slab[:, kj:kj + W]
            for ki in range(KSIZE):
                acc_s = acc_s + w_ref[ki * KSIZE + kj] * s_sh[ki:ki + H, :]
                acc_m = acc_m + (w_ref[KSIZE * KSIZE + ki * KSIZE + kj]
                                 * m_sh[ki:ki + H, :])
        o_ref[...] = jax.nn.sigmoid(acc_s + acc_m).astype(o_ref.dtype)


def _round_up(a, m):
    return ((a + m - 1) // m) * m


def _tile_bytes(rows, cols, nbytes):
    """VMEM bytes of a (rows, cols) buffer after (sublane, 128) tiling."""
    sub = 8 * max(1, 4 // nbytes)
    return _round_up(rows, sub) * _round_up(cols, 128) * nbytes


def _pick_c_chunk(C, S, itemsize, target_bytes):
    """Channels per chunk.  Must be C itself or a multiple of 8 (layout rule
    for the (cb, S) block's second-minor dim).  Prefers one whole-image chunk;
    else the largest multiple-of-8 divisor of C under the byte budget; else a
    multiple of 8 with a masked ragged last chunk."""
    if C <= 8:
        return C
    cap = max(8, int(target_bytes) // max(1, S * itemsize))
    if C <= cap and C % 8 == 0:
        return C
    cap8 = (min(cap, C) // 8) * 8
    best = 0
    for d in range(8, cap8 + 1, 8):
        if C % d == 0:
            best = d
    return best if best else cap8


def sam_forward(x, w, *, chunk_target_bytes=8 << 20):
    """x: (N, C, H, W), w: (1, 2, K, K) OIHW conv weight. Returns (N, 1, H, W)."""
    N, C, H, W = x.shape
    assert w.shape == (1, 2, KSIZE, KSIZE)
    S = H * W
    itemsize = jnp.dtype(x.dtype).itemsize

    cb = _pick_c_chunk(C, S, itemsize, chunk_target_bytes)
    n_cc = pl.cdiv(C, cb)
    ragged = (C % cb) != 0
    G = 8 if cb >= 8 else cb
    Hp, Wp = H + 2 * PAD, W + 2 * PAD

    # Fold the 1/C of the channel mean into the channel-0 conv weights so the
    # kernel only accumulates a raw channel sum.
    w_flat = (w.astype(jnp.float32).reshape(2, KSIZE * KSIZE)
              * jnp.array([[1.0 / C], [1.0]], jnp.float32)).reshape(-1)

    x_flat = x.reshape(N, C, S)          # free reshape: lane-dense minor axis

    kernel = functools.partial(_sam_kernel, C=C, cb=cb, H=H, W=W, ragged=ragged)

    grid_spec = pltpu.PrefetchScalarGridSpec(
        num_scalar_prefetch=1,                                  # conv weights -> SMEM
        grid=(N, n_cc),                                         # C chunks innermost
        in_specs=[
            pl.BlockSpec((None, cb, S), lambda n, c, w_s: (n, c, 0)),
        ],
        out_specs=pl.BlockSpec((None, H, W), lambda n, c, w_s: (n, 0, 0)),
        scratch_shapes=[
            pltpu.VMEM((G, S), jnp.float32),                    # partial channel sums
            pltpu.VMEM((G, S), jnp.float32),                    # partial channel maxes
            pltpu.VMEM((Hp, Wp), jnp.float32),                  # padded sum slab
            pltpu.VMEM((Hp, Wp), jnp.float32),                  # padded max slab
        ],
    )

    # (8,128)-padded per-step VMEM footprint: double-buffered in/out + scratch.
    footprint = (2 * _tile_bytes(cb, S, itemsize)
                 + 2 * _tile_bytes(H, W, itemsize)
                 + 2 * _tile_bytes(G, S, 4)
                 + 2 * _tile_bytes(Hp, Wp, 4))
    vmem_limit = int(max(32 << 20, footprint + (4 << 20)))

    cost = pl.CostEstimate(
        flops=int(N * S * (2 * C + 4 * KSIZE * KSIZE)),
        transcendentals=int(N * S),                             # sigmoid
        bytes_accessed=int(x.size * itemsize + N * S * itemsize + w_flat.size * 4),
    )

    # TODO(synk): for batch-1 inference on v7x, add a second parallel grid
    # axis (spatial halo split, or per-core C split + cross-core combine) so
    # both TensorCores are used; with N>=2 megacore sharding already applies.
    out = pl.pallas_call(
        kernel,
        out_shape=jax.ShapeDtypeStruct((N, H, W), x.dtype),
        grid_spec=grid_spec,
        compiler_params=pltpu.CompilerParams(
            dimension_semantics=("parallel", "arbitrary"),
            vmem_limit_bytes=vmem_limit,
        ),
        cost_estimate=cost,
    )(w_flat, x_flat)
    return out.reshape(N, 1, H, W)


def sam_reference(x, w):
    avg = jnp.mean(x, axis=1, keepdims=True)
    mx = jnp.max(x, axis=1, keepdims=True)
    cat = jnp.concatenate([avg, mx], axis=1)
    conv = jax.lax.conv_general_dilated(
        cat, w, window_strides=(1, 1),
        padding=[(PAD, PAD), (PAD, PAD)],
        dimension_numbers=("NCHW", "OIHW", "NCHW"))
    return jax.nn.sigmoid(conv)


if __name__ == "__main__":
    key = jax.random.PRNGKey(0)
    kx, kw, kx2 = jax.random.split(key, 3)

    # Deterministic conv weight init (kaiming-uniform-like), OIHW (1, 2, 7, 7).
    fan_in = 2 * KSIZE * KSIZE
    bound = 1.0 / np.sqrt(fan_in)
    w = jax.random.uniform(kw, (1, 2, KSIZE, KSIZE), dtype=jnp.float32,
                           minval=-bound, maxval=bound)

    # Primary check: whole-C single-chunk path.
    N, C, H, W = 2, 4, 16, 16
    x = jax.random.normal(kx, (N, C, H, W), dtype=jnp.float32)
    out = jax.block_until_ready(sam_forward(x, w))
    ref = jax.block_until_ready(sam_reference(x, w))
    assert out.shape == (N, 1, H, W)
    np.testing.assert_allclose(np.asarray(out), np.asarray(ref),
                               rtol=1e-5, atol=1e-5)

    # Secondary check: force the multi-chunk streaming path
    # (cb=16 -> 2 chunks per image, 2 sublane-groups per chunk).
    N2, C2, H2, W2 = 1, 32, 8, 8
    x2 = jax.random.normal(kx2, (N2, C2, H2, W2), dtype=jnp.float32)
    out2 = jax.block_until_ready(sam_forward(x2, w, chunk_target_bytes=4096))
    ref2 = jax.block_until_ready(sam_reference(x2, w))
    np.testing.assert_allclose(np.asarray(out2), np.asarray(ref2),
                               rtol=1e-5, atol=1e-5)

    print("KERNEL_OK")
</pallas_src>

<mosaic_0001>
module attributes {stable_mosaic.version = 11 : i64} {
  func.func @_sam_kernel(%arg0: i32, %arg1: i32, %arg2: memref<98xf32, #tpu.memory_space<smem>>, %arg3: memref<1x4x256xf32, #tpu.memory_space<vmem>>, %arg4: memref<1x16x16xf32, #tpu.memory_space<vmem>>, %arg5: memref<4x256xf32, #tpu.memory_space<vmem>>, %arg6: memref<4x256xf32, #tpu.memory_space<vmem>>, %arg7: memref<22x22xf32, #tpu.memory_space<vmem>>, %arg8: memref<22x22xf32, #tpu.memory_space<vmem>>) attributes {dimension_semantics = [#tpu.dimension_semantics<parallel>, #tpu.dimension_semantics<arbitrary>], iteration_bounds = array<i64: 2, 1>, scalar_prefetch = 1 : i64, scratch_operands = 4 : i64, tpu.core_type = #tpu.core_type<tc>, window_params = [{transform_indices = @transform_0, window_bounds = array<i64: 1, 4, 256>}, {transform_indices = @transform_1, window_bounds = array<i64: 1, 16, 16>}]} {
    %c0_i32 = arith.constant 0 : i32
    %0 = arith.cmpi eq, %arg1, %c0_i32 : i32
    %1 = arith.extui %0 : i1 to i32
    %c0_i32_0 = arith.constant 0 : i32
    %2 = arith.cmpi ne, %1, %c0_i32_0 : i32
    scf.if %2 {
      %cst = arith.constant 0.000000e+00 : f32
      %14 = vector.broadcast %cst : f32 to vector<4x256xf32>
      %c0_13 = arith.constant 0 : index
      %c0_14 = arith.constant 0 : index
      %15 = vector.load %arg5[%c0_13, %c0_14] : memref<4x256xf32, #tpu.memory_space<vmem>>, vector<4x256xf32>
      tpu.vector_store %arg5[%c0_13, %c0_14], %14 {strides = array<i32>} : memref<4x256xf32, #tpu.memory_space<vmem>>, vector<4x256xf32>,
      %cst_15 = arith.constant 0xFF800000 : f32
      %16 = vector.broadcast %cst_15 : f32 to vector<4x256xf32>
      %c0_16 = arith.constant 0 : index
      %c0_17 = arith.constant 0 : index
      %17 = vector.load %arg6[%c0_16, %c0_17] : memref<4x256xf32, #tpu.memory_space<vmem>>, vector<4x256xf32>
      tpu.vector_store %arg6[%c0_16, %c0_17], %16 {strides = array<i32>} : memref<4x256xf32, #tpu.memory_space<vmem>>, vector<4x256xf32>,
      %cst_18 = arith.constant 0.000000e+00 : f32
      %18 = vector.broadcast %cst_18 : f32 to vector<3x22xf32>
      %cst_19 = arith.constant 0.000000e+00 : f32
      %19 = vector.broadcast %cst_19 : f32 to vector<16x3xf32>
      %c0_20 = arith.constant 0 : index
      %c0_21 = arith.constant 0 : index
      %20 = vector.load %arg7[%c0_20, %c0_21] : memref<22x22xf32, #tpu.memory_space<vmem>>, vector<3x22xf32>
      tpu.vector_store %arg7[%c0_20, %c0_21], %18 {strides = array<i32>} : memref<22x22xf32, #tpu.memory_space<vmem>>, vector<3x22xf32>,
      %c19 = arith.constant 19 : index
      %c0_22 = arith.constant 0 : index
      %21 = vector.load %arg7[%c19, %c0_22] : memref<22x22xf32, #tpu.memory_space<vmem>>, vector<3x22xf32>
      tpu.vector_store %arg7[%c19, %c0_22], %18 {strides = array<i32>} : memref<22x22xf32, #tpu.memory_space<vmem>>, vector<3x22xf32>,
      %c3 = arith.constant 3 : index
      %c0_23 = arith.constant 0 : index
      %22 = vector.load %arg7[%c3, %c0_23] : memref<22x22xf32, #tpu.memory_space<vmem>>, vector<16x3xf32>
      tpu.vector_store %arg7[%c3, %c0_23], %19 {strides = array<i32>} : memref<22x22xf32, #tpu.memory_space<vmem>>, vector<16x3xf32>,
      %c3_24 = arith.constant 3 : index
      %c19_25 = arith.constant 19 : index
      %23 = vector.load %arg7[%c3_24, %c19_25] : memref<22x22xf32, #tpu.memory_space<vmem>>, vector<16x3xf32>
      tpu.vector_store %arg7[%c3_24, %c19_25], %19 {strides = array<i32>} : memref<22x22xf32, #tpu.memory_space<vmem>>, vector<16x3xf32>,
      %c0_26 = arith.constant 0 : index
      %c0_27 = arith.constant 0 : index
      %24 = vector.load %arg8[%c0_26, %c0_27] : memref<22x22xf32, #tpu.memory_space<vmem>>, vector<3x22xf32>
      tpu.vector_store %arg8[%c0_26, %c0_27], %18 {strides = array<i32>} : memref<22x22xf32, #tpu.memory_space<vmem>>, vector<3x22xf32>,
      %c19_28 = arith.constant 19 : index
      %c0_29 = arith.constant 0 : index
      %25 = vector.load %arg8[%c19_28, %c0_29] : memref<22x22xf32, #tpu.memory_space<vmem>>, vector<3x22xf32>
      tpu.vector_store %arg8[%c19_28, %c0_29], %18 {strides = array<i32>} : memref<22x22xf32, #tpu.memory_space<vmem>>, vector<3x22xf32>,
      %c3_30 = arith.constant 3 : index
      %c0_31 = arith.constant 0 : index
      %26 = vector.load %arg8[%c3_30, %c0_31] : memref<22x22xf32, #tpu.memory_space<vmem>>, vector<16x3xf32>
      tpu.vector_store %arg8[%c3_30, %c0_31], %19 {strides = array<i32>} : memref<22x22xf32, #tpu.memory_space<vmem>>, vector<16x3xf32>,
      %c3_32 = arith.constant 3 : index
      %c19_33 = arith.constant 19 : index
      %27 = vector.load %arg8[%c3_32, %c19_33] : memref<22x22xf32, #tpu.memory_space<vmem>>, vector<16x3xf32>
      tpu.vector_store %arg8[%c3_32, %c19_33], %19 {strides = array<i32>} : memref<22x22xf32, #tpu.memory_space<vmem>>, vector<16x3xf32>,
    } else {
    }
    %c0 = arith.constant 0 : index
    %c0_1 = arith.constant 0 : index
    %c0_2 = arith.constant 0 : index
    %3 = vector.load %arg3[%c0, %c0_1, %c0_2] : memref<1x4x256xf32, #tpu.memory_space<vmem>>, vector<1x4x256xf32>
    %4 = vector.shape_cast %3 : vector<1x4x256xf32> to vector<4x256xf32>
    %c0_3 = arith.constant 0 : index
    %c0_4 = arith.constant 0 : index
    %5 = vector.load %arg5[%c0_3, %c0_4] : memref<4x256xf32, #tpu.memory_space<vmem>>, vector<4x256xf32>
    %6 = arith.addf %5, %4 : vector<4x256xf32>
    %c0_5 = arith.constant 0 : index
    %c0_6 = arith.constant 0 : index
    %7 = vector.load %arg5[%c0_5, %c0_6] : memref<4x256xf32, #tpu.memory_space<vmem>>, vector<4x256xf32>
    tpu.vector_store %arg5[%c0_5, %c0_6], %6 {strides = array<i32>} : memref<4x256xf32, #tpu.memory_space<vmem>>, vector<4x256xf32>,
    %c0_7 = arith.constant 0 : index
    %c0_8 = arith.constant 0 : index
    %8 = vector.load %arg6[%c0_7, %c0_8] : memref<4x256xf32, #tpu.memory_space<vmem>>, vector<4x256xf32>
    %9 = arith.maximumf %8, %4 : vector<4x256xf32>
    %c0_9 = arith.constant 0 : index
    %c0_10 = arith.constant 0 : index
    %10 = vector.load %arg6[%c0_9, %c0_10] : memref<4x256xf32, #tpu.memory_space<vmem>>, vector<4x256xf32>
    tpu.vector_store %arg6[%c0_9, %c0_10], %9 {strides = array<i32>} : memref<4x256xf32, #tpu.memory_space<vmem>>, vector<4x256xf32>,
    %c0_i32_11 = arith.constant 0 : i32
    %11 = arith.cmpi eq, %arg1, %c0_i32_11 : i32
    %12 = arith.extui %11 : i1 to i32
    %c0_i32_12 = arith.constant 0 : i32
    %13 = arith.cmpi ne, %12, %c0_i32_12 : i32
    scf.if %13 {
      %c0_13 = arith.constant 0 : index
      %c0_14 = arith.constant 0 : index
      %14 = vector.load %arg5[%c0_13, %c0_14] : memref<4x256xf32, #tpu.memory_space<vmem>>, vector<4x256xf32>
      %cst = arith.constant dense<0.000000e+00> : vector<256xf32>
      %15 = vector.multi_reduction <add>, %14, %cst [0] : vector<4x256xf32> to vector<256xf32>
      %16 = vector.shape_cast %15 : vector<256xf32> to vector<1x256xf32>
      %c0_15 = arith.constant 0 : index
      %c0_16 = arith.constant 0 : index
      %17 = vector.load %arg5[%c0_15, %c0_16] : memref<4x256xf32, #tpu.memory_space<vmem>>, vector<1x256xf32>
      tpu.vector_store %arg5[%c0_15, %c0_16], %16 {strides = array<i32>} : memref<4x256xf32, #tpu.memory_space<vmem>>, vector<1x256xf32>,
      %c0_17 = arith.constant 0 : index
      %c0_18 = arith.constant 0 : index
      %18 = vector.load %arg6[%c0_17, %c0_18] : memref<4x256xf32, #tpu.memory_space<vmem>>, vector<4x256xf32>
      %cst_19 = arith.constant dense<0xFF800000> : vector<256xf32>
      %19 = vector.multi_reduction <maximumf>, %18, %cst_19 [0] : vector<4x256xf32> to vector<256xf32>
      %20 = vector.shape_cast %19 : vector<256xf32> to vector<1x256xf32>
      %c0_20 = arith.constant 0 : index
      %c0_21 = arith.constant 0 : index
      %21 = vector.load %arg6[%c0_20, %c0_21] : memref<4x256xf32, #tpu.memory_space<vmem>>, vector<1x256xf32>
      tpu.vector_store %arg6[%c0_20, %c0_21], %20 {strides = array<i32>} : memref<4x256xf32, #tpu.memory_space<vmem>>, vector<1x256xf32>,
      %c0_22 = arith.constant 0 : index
      %c0_23 = arith.constant 0 : index
      %22 = vector.load %arg5[%c0_22, %c0_23] : memref<4x256xf32, #tpu.memory_space<vmem>>, vector<1x16xf32>
      %23 = vector.shape_cast %22 : vector<1x16xf32> to vector<16xf32>
      %c3 = arith.constant 3 : index
      %c3_24 = arith.constant 3 : index
      %24 = vector.load %arg7[%c3, %c3_24] : memref<22x22xf32, #tpu.memory_space<vmem>>, vector<1x16xf32>
      %25 = vector.shape_cast %24 : vector<1x16xf32> to vector<16xf32>
      %26 = vector.shape_cast %23 : vector<16xf32> to vector<1x16xf32>
      tpu.vector_store %arg7[%c3, %c3_24], %26 {strides = array<i32>} : memref<22x22xf32, #tpu.memory_space<vmem>>, vector<1x16xf32>,
      %c0_25 = arith.constant 0 : index
      %c0_26 = arith.constant 0 : index
      %27 = vector.load %arg6[%c0_25, %c0_26] : memref<4x256xf32, #tpu.memory_space<vmem>>, vector<1x16xf32>
      %28 = vector.shape_cast %27 : vector<1x16xf32> to vector<16xf32>
      %c3_27 = arith.constant 3 : index
      %c3_28 = arith.constant 3 : index
      %29 = vector.load %arg8[%c3_27, %c3_28] : memref<22x22xf32, #tpu.memory_space<vmem>>, vector<1x16xf32>
      %30 = vector.shape_cast %29 : vector<1x16xf32> to vector<16xf32>
      %31 = vector.shape_cast %28 : vector<16xf32> to vector<1x16xf32>
      tpu.vector_store %arg8[%c3_27, %c3_28], %31 {strides = array<i32>} : memref<22x22xf32, #tpu.memory_space<vmem>>, vector<1x16xf32>,
      %c0_29 = arith.constant 0 : index
      %c16 = arith.constant 16 : index
      %32 = vector.load %arg5[%c0_29, %c16] : memref<4x256xf32, #tpu.memory_space<vmem>>, vector<1x16xf32>
      %33 = vector.shape_cast %32 : vector<1x16xf32> to vector<16xf32>
      %c4 = arith.constant 4 : index
      %c3_30 = arith.constant 3 : index
      %34 = vector.load %arg7[%c4, %c3_30] : memref<22x22xf32, #tpu.memory_space<vmem>>, vector<1x16xf32>
      %35 = vector.shape_cast %34 : vector<1x16xf32> to vector<16xf32>
      %36 = vector.shape_cast %33 : vector<16xf32> to vector<1x16xf32>
      tpu.vector_store %arg7[%c4, %c3_30], %36 {strides = array<i32>} : memref<22x22xf32, #tpu.memory_space<vmem>>, vector<1x16xf32>,
      %c0_31 = arith.constant 0 : index
      %c16_32 = arith.constant 16 : index
      %37 = vector.load %arg6[%c0_31, %c16_32] : memref<4x256xf32, #tpu.memory_space<vmem>>, vector<1x16xf32>
      %38 = vector.shape_cast %37 : vector<1x16xf32> to vector<16xf32>
      %c4_33 = arith.constant 4 : index
      %c3_34 = arith.constant 3 : index
      %39 = vector.load %arg8[%c4_33, %c3_34] : memref<22x22xf32, #tpu.memory_space<vmem>>, vector<1x16xf32>
      %40 = vector.shape_cast %39 : vector<1x16xf32> to vector<16xf32>
      %41 = vector.shape_cast %38 : vector<16xf32> to vector<1x16xf32>
      tpu.vector_store %arg8[%c4_33, %c3_34], %41 {strides = array<i32>} : memref<22x22xf32, #tpu.memory_space<vmem>>, vector<1x16xf32>,
      %c0_35 = arith.constant 0 : index
      %c32 = arith.constant 32 : index
      %42 = vector.load %arg5[%c0_35, %c32] : memref<4x256xf32, #tpu.memory_space<vmem>>, vector<1x16xf32>
      %43 = vector.shape_cast %42 : vector<1x16xf32> to vector<16xf32>
      %c5 = arith.constant 5 : index
      %c3_36 = arith.constant 3 : index
      %44 = vector.load %arg7[%c5, %c3_36] : memref<22x22xf32, #tpu.memory_space<vmem>>, vector<1x16xf32>
      %45 = vector.shape_cast %44 : vector<1x16xf32> to vector<16xf32>
      %46 = vector.shape_cast %43 : vector<16xf32> to vector<1x16xf32>
      tpu.vector_store %arg7[%c5, %c3_36], %46 {strides = array<i32>} : memref<22x22xf32, #tpu.memory_space<vmem>>, vector<1x16xf32>,
      %c0_37 = arith.constant 0 : index
      %c32_38 = arith.constant 32 : index
      %47 = vector.load %arg6[%c0_37, %c32_38] : memref<4x256xf32, #tpu.memory_space<vmem>>, vector<1x16xf32>
      %48 = vector.shape_cast %47 : vector<1x16xf32> to vector<16xf32>
      %c5_39 = arith.constant 5 : index
      %c3_40 = arith.constant 3 : index
      %49 = vector.load %arg8[%c5_39, %c3_40] : memref<22x22xf32, #tpu.memory_space<vmem>>, vector<1x16xf32>
      %50 = vector.shape_cast %49 : vector<1x16xf32> to vector<16xf32>
      %51 = vector.shape_cast %48 : vector<16xf32> to vector<1x16xf32>
      tpu.vector_store %arg8[%c5_39, %c3_40], %51 {strides = array<i32>} : memref<22x22xf32, #tpu.memory_space<vmem>>, vector<1x16xf32>,
      %c0_41 = arith.constant 0 : index
      %c48 = arith.constant 48 : index
      %52 = vector.load %arg5[%c0_41, %c48] : memref<4x256xf32, #tpu.memory_space<vmem>>, vector<1x16xf32>
      %53 = vector.shape_cast %52 : vector<1x16xf32> to vector<16xf32>
      %c6 = arith.constant 6 : index
      %c3_42 = arith.constant 3 : index
      %54 = vector.load %arg7[%c6, %c3_42] : memref<22x22xf32, #tpu.memory_space<vmem>>, vector<1x16xf32>
      %55 = vector.shape_cast %54 : vector<1x16xf32> to vector<16xf32>
      %56 = vector.shape_cast %53 : vector<16xf32> to vector<1x16xf32>
      tpu.vector_store %arg7[%c6, %c3_42], %56 {strides = array<i32>} : memref<22x22xf32, #tpu.memory_space<vmem>>, vector<1x16xf32>,
      %c0_43 = arith.constant 0 : index
      %c48_44 = arith.constant 48 : index
      %57 = vector.load %arg6[%c0_43, %c48_44] : memref<4x256xf32, #tpu.memory_space<vmem>>, vector<1x16xf32>
      %58 = vector.shape_cast %57 : vector<1x16xf32> to vector<16xf32>
      %c6_45 = arith.constant 6 : index
      %c3_46 = arith.constant 3 : index
      %59 = vector.load %arg8[%c6_45, %c3_46] : memref<22x22xf32, #tpu.memory_space<vmem>>, vector<1x16xf32>
      %60 = vector.shape_cast %59 : vector<1x16xf32> to vector<16xf32>
      %61 = vector.shape_cast %58 : vector<16xf32> to vector<1x16xf32>
      tpu.vector_store %arg8[%c6_45, %c3_46], %61 {strides = array<i32>} : memref<22x22xf32, #tpu.memory_space<vmem>>, vector<1x16xf32>,
      %c0_47 = arith.constant 0 : index
      %c64 = arith.constant 64 : index
      %62 = vector.load %arg5[%c0_47, %c64] : memref<4x256xf32, #tpu.memory_space<vmem>>, vector<1x16xf32>
      %63 = vector.shape_cast %62 : vector<1x16xf32> to vector<16xf32>
      %c7 = arith.constant 7 : index
      %c3_48 = arith.constant 3 : index
      %64 = vector.load %arg7[%c7, %c3_48] : memref<22x22xf32, #tpu.memory_space<vmem>>, vector<1x16xf32>
      %65 = vector.shape_cast %64 : vector<1x16xf32> to vector<16xf32>
      %66 = vector.shape_cast %63 : vector<16xf32> to vector<1x16xf32>
      tpu.vector_store %arg7[%c7, %c3_48], %66 {strides = array<i32>} : memref<22x22xf32, #tpu.memory_space<vmem>>, vector<1x16xf32>,
      %c0_49 = arith.constant 0 : index
      %c64_50 = arith.constant 64 : index
      %67 = vector.load %arg6[%c0_49, %c64_50] : memref<4x256xf32, #tpu.memory_space<vmem>>, vector<1x16xf32>
      %68 = vector.shape_cast %67 : vector<1x16xf32> to vector<16xf32>
      %c7_51 = arith.constant 7 : index
      %c3_52 = arith.constant 3 : index
      %69 = vector.load %arg8[%c7_51, %c3_52] : memref<22x22xf32, #tpu.memory_space<vmem>>, vector<1x16xf32>
      %70 = vector.shape_cast %69 : vector<1x16xf32> to vector<16xf32>
      %71 = vector.shape_cast %68 : vector<16xf32> to vector<1x16xf32>
      tpu.vector_store %arg8[%c7_51, %c3_52], %71 {strides = array<i32>} : memref<22x22xf32, #tpu.memory_space<vmem>>, vector<1x16xf32>,
      %c0_53 = arith.constant 0 : index
      %c80 = arith.constant 80 : index
      %72 = vector.load %arg5[%c0_53, %c80] : memref<4x256xf32, #tpu.memory_space<vmem>>, vector<1x16xf32>
      %73 = vector.shape_cast %72 : vector<1x16xf32> to vector<16xf32>
      %c8 = arith.constant 8 : index
      %c3_54 = arith.constant 3 : index
      %74 = vector.load %arg7[%c8, %c3_54] : memref<22x22xf32, #tpu.memory_space<vmem>>, vector<1x16xf32>
      %75 = vector.shape_cast %74 : vector<1x16xf32> to vector<16xf32>
      %76 = vector.shape_cast %73 : vector<16xf32> to vector<1x16xf32>
      tpu.vector_store %arg7[%c8, %c3_54], %76 {strides = array<i32>} : memref<22x22xf32, #tpu.memory_space<vmem>>, vector<1x16xf32>,
      %c0_55 = arith.constant 0 : index
      %c80_56 = arith.constant 80 : index
      %77 = vector.load %arg6[%c0_55, %c80_56] : memref<4x256xf32, #tpu.memory_space<vmem>>, vector<1x16xf32>
      %78 = vector.shape_cast %77 : vector<1x16xf32> to vector<16xf32>
      %c8_57 = arith.constant 8 : index
      %c3_58 = arith.constant 3 : index
      %79 = vector.load %arg8[%c8_57, %c3_58] : memref<22x22xf32, #tpu.memory_space<vmem>>, vector<1x16xf32>
      %80 = vector.shape_cast %79 : vector<1x16xf32> to vector<16xf32>
      %81 = vector.shape_cast %78 : vector<16xf32> to vector<1x16xf32>
      tpu.vector_store %arg8[%c8_57, %c3_58], %81 {strides = array<i32>} : memref<22x22xf32, #tpu.memory_space<vmem>>, vector<1x16xf32>,
      %c0_59 = arith.constant 0 : index
      %c96 = arith.constant 96 : index
      %82 = vector.load %arg5[%c0_59, %c96] : memref<4x256xf32, #tpu.memory_space<vmem>>, vector<1x16xf32>
      %83 = vector.shape_cast %82 : vector<1x16xf32> to vector<16xf32>
      %c9 = arith.constant 9 : index
      %c3_60 = arith.constant 3 : index
      %84 = vector.load %arg7[%c9, %c3_60] : memref<22x22xf32, #tpu.memory_space<vmem>>, vector<1x16xf32>
      %85 = vector.shape_cast %84 : vector<1x16xf32> to vector<16xf32>
      %86 = vector.shape_cast %83 : vector<16xf32> to vector<1x16xf32>
      tpu.vector_store %arg7[%c9, %c3_60], %86 {strides = array<i32>} : memref<22x22xf32, #tpu.memory_space<vmem>>, vector<1x16xf32>,
      %c0_61 = arith.constant 0 : index
      %c96_62 = arith.constant 96 : index
      %87 = vector.load %arg6[%c0_61, %c96_62] : memref<4x256xf32, #tpu.memory_space<vmem>>, vector<1x16xf32>
      %88 = vector.shape_cast %87 : vector<1x16xf32> to vector<16xf32>
      %c9_63 = arith.constant 9 : index
      %c3_64 = arith.constant 3 : index
      %89 = vector.load %arg8[%c9_63, %c3_64] : memref<22x22xf32, #tpu.memory_space<vmem>>, vector<1x16xf32>
      %90 = vector.shape_cast %89 : vector<1x16xf32> to vector<16xf32>
      %91 = vector.shape_cast %88 : vector<16xf32> to vector<1x16xf32>
      tpu.vector_store %arg8[%c9_63, %c3_64], %91 {strides = array<i32>} : memref<22x22xf32, #tpu.memory_space<vmem>>, vector<1x16xf32>,
      %c0_65 = arith.constant 0 : index
      %c112 = arith.constant 112 : index
      %92 = vector.load %arg5[%c0_65, %c112] : memref<4x256xf32, #tpu.memory_space<vmem>>, vector<1x16xf32>
      %93 = vector.shape_cast %92 : vector<1x16xf32> to vector<16xf32>
      %c10 = arith.constant 10 : index
      %c3_66 = arith.constant 3 : index
      %94 = vector.load %arg7[%c10, %c3_66] : memref<22x22xf32, #tpu.memory_space<vmem>>, vector<1x16xf32>
      %95 = vector.shape_cast %94 : vector<1x16xf32> to vector<16xf32>
      %96 = vector.shape_cast %93 : vector<16xf32> to vector<1x16xf32>
      tpu.vector_store %arg7[%c10, %c3_66], %96 {strides = array<i32>} : memref<22x22xf32, #tpu.memory_space<vmem>>, vector<1x16xf32>,
      %c0_67 = arith.constant 0 : index
      %c112_68 = arith.constant 112 : index
      %97 = vector.load %arg6[%c0_67, %c112_68] : memref<4x256xf32, #tpu.memory_space<vmem>>, vector<1x16xf32>
      %98 = vector.shape_cast %97 : vector<1x16xf32> to vector<16xf32>
      %c10_69 = arith.constant 10 : index
      %c3_70 = arith.constant 3 : index
      %99 = vector.load %arg8[%c10_69, %c3_70] : memref<22x22xf32, #tpu.memory_space<vmem>>, vector<1x16xf32>
      %100 = vector.shape_cast %99 : vector<1x16xf32> to vector<16xf32>
      %101 = vector.shape_cast %98 : vector<16xf32> to vector<1x16xf32>
      tpu.vector_store %arg8[%c10_69, %c3_70], %101 {strides = array<i32>} : memref<22x22xf32, #tpu.memory_space<vmem>>, vector<1x16xf32>,
      %c0_71 = arith.constant 0 : index
      %c128 = arith.constant 128 : index
      %102 = vector.load %arg5[%c0_71, %c128] : memref<4x256xf32, #tpu.memory_space<vmem>>, vector<1x16xf32>
      %103 = vector.shape_cast %102 : vector<1x16xf32> to vector<16xf32>
      %c11 = arith.constant 11 : index
      %c3_72 = arith.constant 3 : index
      %104 = vector.load %arg7[%c11, %c3_72] : memref<22x22xf32, #tpu.memory_space<vmem>>, vector<1x16xf32>
      %105 = vector.shape_cast %104 : vector<1x16xf32> to vector<16xf32>
      %106 = vector.shape_cast %103 : vector<16xf32> to vector<1x16xf32>
      tpu.vector_store %arg7[%c11, %c3_72], %106 {strides = array<i32>} : memref<22x22xf32, #tpu.memory_space<vmem>>, vector<1x16xf32>,
      %c0_73 = arith.constant 0 : index
      %c128_74 = arith.constant 128 : index
      %107 = vector.load %arg6[%c0_73, %c128_74] : memref<4x256xf32, #tpu.memory_space<vmem>>, vector<1x16xf32>
      %108 = vector.shape_cast %107 : vector<1x16xf32> to vector<16xf32>
      %c11_75 = arith.constant 11 : index
      %c3_76 = arith.constant 3 : index
      %109 = vector.load %arg8[%c11_75, %c3_76] : memref<22x22xf32, #tpu.memory_space<vmem>>, vector<1x16xf32>
      %110 = vector.shape_cast %109 : vector<1x16xf32> to vector<16xf32>
      %111 = vector.shape_cast %108 : vector<16xf32> to vector<1x16xf32>
      tpu.vector_store %arg8[%c11_75, %c3_76], %111 {strides = array<i32>} : memref<22x22xf32, #tpu.memory_space<vmem>>, vector<1x16xf32>,
      %c0_77 = arith.constant 0 : index
      %c144 = arith.constant 144 : index
      %112 = vector.load %arg5[%c0_77, %c144] : memref<4x256xf32, #tpu.memory_space<vmem>>, vector<1x16xf32>
      %113 = vector.shape_cast %112 : vector<1x16xf32> to vector<16xf32>
      %c12 = arith.constant 12 : index
      %c3_78 = arith.constant 3 : index
      %114 = vector.load %arg7[%c12, %c3_78] : memref<22x22xf32, #tpu.memory_space<vmem>>, vector<1x16xf32>
      %115 = vector.shape_cast %114 : vector<1x16xf32> to vector<16xf32>
      %116 = vector.shape_cast %113 : vector<16xf32> to vector<1x16xf32>
      tpu.vector_store %arg7[%c12, %c3_78], %116 {strides = array<i32>} : memref<22x22xf32, #tpu.memory_space<vmem>>, vector<1x16xf32>,
      %c0_79 = arith.constant 0 : index
      %c144_80 = arith.constant 144 : index
      %117 = vector.load %arg6[%c0_79, %c144_80] : memref<4x256xf32, #tpu.memory_space<vmem>>, vector<1x16xf32>
      %118 = vector.shape_cast %117 : vector<1x16xf32> to vector<16xf32>
      %c12_81 = arith.constant 12 : index
      %c3_82 = arith.constant 3 : index
      %119 = vector.load %arg8[%c12_81, %c3_82] : memref<22x22xf32, #tpu.memory_space<vmem>>, vector<1x16xf32>
      %120 = vector.shape_cast %119 : vector<1x16xf32> to vector<16xf32>
      %121 = vector.shape_cast %118 : vector<16xf32> to vector<1x16xf32>
      tpu.vector_store %arg8[%c12_81, %c3_82], %121 {strides = array<i32>} : memref<22x22xf32, #tpu.memory_space<vmem>>, vector<1x16xf32>,
      %c0_83 = arith.constant 0 : index
      %c160 = arith.constant 160 : index
      %122 = vector.load %arg5[%c0_83, %c160] : memref<4x256xf32, #tpu.memory_space<vmem>>, vector<1x16xf32>
      %123 = vector.shape_cast %122 : vector<1x16xf32> to vector<16xf32>
      %c13 = arith.constant 13 : index
      %c3_84 = arith.constant 3 : index
      %124 = vector.load %arg7[%c13, %c3_84] : memref<22x22xf32, #tpu.memory_space<vmem>>, vector<1x16xf32>
      %125 = vector.shape_cast %124 : vector<1x16xf32> to vector<16xf32>
      %126 = vector.shape_cast %123 : vector<16xf32> to vector<1x16xf32>
      tpu.vector_store %arg7[%c13, %c3_84], %126 {strides = array<i32>} : memref<22x22xf32, #tpu.memory_space<vmem>>, vector<1x16xf32>,
      %c0_85 = arith.constant 0 : index
      %c160_86 = arith.constant 160 : index
      %127 = vector.load %arg6[%c0_85, %c160_86] : memref<4x256xf32, #tpu.memory_space<vmem>>, vector<1x16xf32>
      %128 = vector.shape_cast %127 : vector<1x16xf32> to vector<16xf32>
      %c13_87 = arith.constant 13 : index
      %c3_88 = arith.constant 3 : index
      %129 = vector.load %arg8[%c13_87, %c3_88] : memref<22x22xf32, #tpu.memory_space<vmem>>, vector<1x16xf32>
      %130 = vector.shape_cast %129 : vector<1x16xf32> to vector<16xf32>
      %131 = vector.shape_cast %128 : vector<16xf32> to vector<1x16xf32>
      tpu.vector_store %arg8[%c13_87, %c3_88], %131 {strides = array<i32>} : memref<22x22xf32, #tpu.memory_space<vmem>>, vector<1x16xf32>,
      %c0_89 = arith.constant 0 : index
      %c176 = arith.constant 176 : index
      %132 = vector.load %arg5[%c0_89, %c176] : memref<4x256xf32, #tpu.memory_space<vmem>>, vector<1x16xf32>
      %133 = vector.shape_cast %132 : vector<1x16xf32> to vector<16xf32>
      %c14 = arith.constant 14 : index
      %c3_90 = arith.constant 3 : index
      %134 = vector.load %arg7[%c14, %c3_90] : memref<22x22xf32, #tpu.memory_space<vmem>>, vector<1x16xf32>
      %135 = vector.shape_cast %134 : vector<1x16xf32> to vector<16xf32>
      %136 = vector.shape_cast %133 : vector<16xf32> to vector<1x16xf32>
      tpu.vector_store %arg7[%c14, %c3_90], %136 {strides = array<i32>} : memref<22x22xf32, #tpu.memory_space<vmem>>, vector<1x16xf32>,
      %c0_91 = arith.constant 0 : index
      %c176_92 = arith.constant 176 : index
      %137 = vector.load %arg6[%c0_91, %c176_92] : memref<4x256xf32, #tpu.memory_space<vmem>>, vector<1x16xf32>
      %138 = vector.shape_cast %137 : vector<1x16xf32> to vector<16xf32>
      %c14_93 = arith.constant 14 : index
      %c3_94 = arith.constant 3 : index
      %139 = vector.load %arg8[%c14_93, %c3_94] : memref<22x22xf32, #tpu.memory_space<vmem>>, vector<1x16xf32>
      %140 = vector.shape_cast %139 : vector<1x16xf32> to vector<16xf32>
      %141 = vector.shape_cast %138 : vector<16xf32> to vector<1x16xf32>
      tpu.vector_store %arg8[%c14_93, %c3_94], %141 {strides = array<i32>} : memref<22x22xf32, #tpu.memory_space<vmem>>, vector<1x16xf32>,
      %c0_95 = arith.constant 0 : index
      %c192 = arith.constant 192 : index
      %142 = vector.load %arg5[%c0_95, %c192] : memref<4x256xf32, #tpu.memory_space<vmem>>, vector<1x16xf32>
      %143 = vector.shape_cast %142 : vector<1x16xf32> to vector<16xf32>
      %c15 = arith.constant 15 : index
      %c3_96 = arith.constant 3 : index
      %144 = vector.load %arg7[%c15, %c3_96] : memref<22x22xf32, #tpu.memory_space<vmem>>, vector<1x16xf32>
      %145 = vector.shape_cast %144 : vector<1x16xf32> to vector<16xf32>
      %146 = vector.shape_cast %143 : vector<16xf32> to vector<1x16xf32>
      tpu.vector_store %arg7[%c15, %c3_96], %146 {strides = array<i32>} : memref<22x22xf32, #tpu.memory_space<vmem>>, vector<1x16xf32>,
      %c0_97 = arith.constant 0 : index
      %c192_98 = arith.constant 192 : index
      %147 = vector.load %arg6[%c0_97, %c192_98] : memref<4x256xf32, #tpu.memory_space<vmem>>, vector<1x16xf32>
      %148 = vector.shape_cast %147 : vector<1x16xf32> to vector<16xf32>
      %c15_99 = arith.constant 15 : index
      %c3_100 = arith.constant 3 : index
      %149 = vector.load %arg8[%c15_99, %c3_100] : memref<22x22xf32, #tpu.memory_space<vmem>>, vector<1x16xf32>
      %150 = vector.shape_cast %149 : vector<1x16xf32> to vector<16xf32>
      %151 = vector.shape_cast %148 : vector<16xf32> to vector<1x16xf32>
      tpu.vector_store %arg8[%c15_99, %c3_100], %151 {strides = array<i32>} : memref<22x22xf32, #tpu.memory_space<vmem>>, vector<1x16xf32>,
      %c0_101 = arith.constant 0 : index
      %c208 = arith.constant 208 : index
      %152 = vector.load %arg5[%c0_101, %c208] : memref<4x256xf32, #tpu.memory_space<vmem>>, vector<1x16xf32>
      %153 = vector.shape_cast %152 : vector<1x16xf32> to vector<16xf32>
      %c16_102 = arith.constant 16 : index
      %c3_103 = arith.constant 3 : index
      %154 = vector.load %arg7[%c16_102, %c3_103] : memref<22x22xf32, #tpu.memory_space<vmem>>, vector<1x16xf32>
      %155 = vector.shape_cast %154 : vector<1x16xf32> to vector<16xf32>
      %156 = vector.shape_cast %153 : vector<16xf32> to vector<1x16xf32>
      tpu.vector_store %arg7[%c16_102, %c3_103], %156 {strides = array<i32>} : memref<22x22xf32, #tpu.memory_space<vmem>>, vector<1x16xf32>,
      %c0_104 = arith.constant 0 : index
      %c208_105 = arith.constant 208 : index
      %157 = vector.load %arg6[%c0_104, %c208_105] : memref<4x256xf32, #tpu.memory_space<vmem>>, vector<1x16xf32>
      %158 = vector.shape_cast %157 : vector<1x16xf32> to vector<16xf32>
      %c16_106 = arith.constant 16 : index
      %c3_107 = arith.constant 3 : index
      %159 = vector.load %arg8[%c16_106, %c3_107] : memref<22x22xf32, #tpu.memory_space<vmem>>, vector<1x16xf32>
      %160 = vector.shape_cast %159 : vector<1x16xf32> to vector<16xf32>
      %161 = vector.shape_cast %158 : vector<16xf32> to vector<1x16xf32>
      tpu.vector_store %arg8[%c16_106, %c3_107], %161 {strides = array<i32>} : memref<22x22xf32, #tpu.memory_space<vmem>>, vector<1x16xf32>,
      %c0_108 = arith.constant 0 : index
      %c224 = arith.constant 224 : index
      %162 = vector.load %arg5[%c0_108, %c224] : memref<4x256xf32, #tpu.memory_space<vmem>>, vector<1x16xf32>
      %163 = vector.shape_cast %162 : vector<1x16xf32> to vector<16xf32>
      %c17 = arith.constant 17 : index
      %c3_109 = arith.constant 3 : index
      %164 = vector.load %arg7[%c17, %c3_109] : memref<22x22xf32, #tpu.memory_space<vmem>>, vector<1x16xf32>
      %165 = vector.shape_cast %164 : vector<1x16xf32> to vector<16xf32>
      %166 = vector.shape_cast %163 : vector<16xf32> to vector<1x16xf32>
      tpu.vector_store %arg7[%c17, %c3_109], %166 {strides = array<i32>} : memref<22x22xf32, #tpu.memory_space<vmem>>, vector<1x16xf32>,
      %c0_110 = arith.constant 0 : index
      %c224_111 = arith.constant 224 : index
      %167 = vector.load %arg6[%c0_110, %c224_111] : memref<4x256xf32, #tpu.memory_space<vmem>>, vector<1x16xf32>
      %168 = vector.shape_cast %167 : vector<1x16xf32> to vector<16xf32>
      %c17_112 = arith.constant 17 : index
      %c3_113 = arith.constant 3 : index
      %169 = vector.load %arg8[%c17_112, %c3_113] : memref<22x22xf32, #tpu.memory_space<vmem>>, vector<1x16xf32>
      %170 = vector.shape_cast %169 : vector<1x16xf32> to vector<16xf32>
      %171 = vector.shape_cast %168 : vector<16xf32> to vector<1x16xf32>
      tpu.vector_store %arg8[%c17_112, %c3_113], %171 {strides = array<i32>} : memref<22x22xf32, #tpu.memory_space<vmem>>, vector<1x16xf32>,
      %c0_114 = arith.constant 0 : index
      %c240 = arith.constant 240 : index
      %172 = vector.load %arg5[%c0_114, %c240] : memref<4x256xf32, #tpu.memory_space<vmem>>, vector<1x16xf32>
      %173 = vector.shape_cast %172 : vector<1x16xf32> to vector<16xf32>
      %c18 = arith.constant 18 : index
      %c3_115 = arith.constant 3 : index
      %174 = vector.load %arg7[%c18, %c3_115] : memref<22x22xf32, #tpu.memory_space<vmem>>, vector<1x16xf32>
      %175 = vector.shape_cast %174 : vector<1x16xf32> to vector<16xf32>
      %176 = vector.shape_cast %173 : vector<16xf32> to vector<1x16xf32>
      tpu.vector_store %arg7[%c18, %c3_115], %176 {strides = array<i32>} : memref<22x22xf32, #tpu.memory_space<vmem>>, vector<1x16xf32>,
      %c0_116 = arith.constant 0 : index
      %c240_117 = arith.constant 240 : index
      %177 = vector.load %arg6[%c0_116, %c240_117] : memref<4x256xf32, #tpu.memory_space<vmem>>, vector<1x16xf32>
      %178 = vector.shape_cast %177 : vector<1x16xf32> to vector<16xf32>
      %c18_118 = arith.constant 18 : index
      %c3_119 = arith.constant 3 : index
      %179 = vector.load %arg8[%c18_118, %c3_119] : memref<22x22xf32, #tpu.memory_space<vmem>>, vector<1x16xf32>
      %180 = vector.shape_cast %179 : vector<1x16xf32> to vector<16xf32>
      %181 = vector.shape_cast %178 : vector<16xf32> to vector<1x16xf32>
      tpu.vector_store %arg8[%c18_118, %c3_119], %181 {strides = array<i32>} : memref<22x22xf32, #tpu.memory_space<vmem>>, vector<1x16xf32>,
      %cst_120 = arith.constant 0.000000e+00 : f32
      %182 = vector.broadcast %cst_120 : f32 to vector<16x16xf32>
      %cst_121 = arith.constant 0.000000e+00 : f32
      %183 = vector.broadcast %cst_121 : f32 to vector<16x16xf32>
      %c0_122 = arith.constant 0 : index
      %c0_123 = arith.constant 0 : index
      %184 = vector.load %arg7[%c0_122, %c0_123] : memref<22x22xf32, #tpu.memory_space<vmem>>, vector<22x16xf32>
      %c0_124 = arith.constant 0 : index
      %c0_125 = arith.constant 0 : index
      %185 = vector.load %arg8[%c0_124, %c0_125] : memref<22x22xf32, #tpu.memory_space<vmem>>, vector<22x16xf32>
      %c0_126 = arith.constant 0 : index
      %186 = memref.load %arg2[%c0_126] : memref<98xf32, #tpu.memory_space<smem>>
      %187 = vector.extract_strided_slice %184 {offsets = [0, 0], sizes = [16, 16], strides = [1, 1]} : vector<22x16xf32> to vector<16x16xf32>
      %188 = vector.broadcast %186 : f32 to vector<16x16xf32>
      %189 = arith.mulf %188, %187 : vector<16x16xf32>
      %190 = arith.addf %182, %189 : vector<16x16xf32>
      %c49 = arith.constant 49 : index
      %191 = memref.load %arg2[%c49] : memref<98xf32, #tpu.memory_space<smem>>
      %192 = vector.extract_strided_slice %185 {offsets = [0, 0], sizes = [16, 16], strides = [1, 1]} : vector<22x16xf32> to vector<16x16xf32>
      %193 = vector.broadcast %191 : f32 to vector<16x16xf32>
      %194 = arith.mulf %193, %192 : vector<16x16xf32>
      %195 = arith.addf %183, %194 : vector<16x16xf32>
      %c7_127 = arith.constant 7 : index
      %196 = memref.load %arg2[%c7_127] : memref<98xf32, #tpu.memory_space<smem>>
      %197 = vector.extract_strided_slice %184 {offsets = [1, 0], sizes = [16, 16], strides = [1, 1]} : vector<22x16xf32> to vector<16x16xf32>
      %198 = vector.broadcast %196 : f32 to vector<16x16xf32>
      %199 = arith.mulf %198, %197 : vector<16x16xf32>
      %200 = arith.addf %190, %199 : vector<16x16xf32>
      %c56 = arith.constant 56 : index
      %201 = memref.load %arg2[%c56] : memref<98xf32, #tpu.memory_space<smem>>
      %202 = vector.extract_strided_slice %185 {offsets = [1, 0], sizes = [16, 16], strides = [1, 1]} : vector<22x16xf32> to vector<16x16xf32>
      %203 = vector.broadcast %201 : f32 to vector<16x16xf32>
      %204 = arith.mulf %203, %202 : vector<16x16xf32>
      %205 = arith.addf %195, %204 : vector<16x16xf32>
      %c14_128 = arith.constant 14 : index
      %206 = memref.load %arg2[%c14_128] : memref<98xf32, #tpu.memory_space<smem>>
      %207 = vector.extract_strided_slice %184 {offsets = [2, 0], sizes = [16, 16], strides = [1, 1]} : vector<22x16xf32> to vector<16x16xf32>
      %208 = vector.broadcast %206 : f32 to vector<16x16xf32>
      %209 = arith.mulf %208, %207 : vector<16x16xf32>
      %210 = arith.addf %200, %209 : vector<16x16xf32>
      %c63 = arith.constant 63 : index
      %211 = memref.load %arg2[%c63] : memref<98xf32, #tpu.memory_space<smem>>
      %212 = vector.extract_strided_slice %185 {offsets = [2, 0], sizes = [16, 16], strides = [1, 1]} : vector<22x16xf32> to vector<16x16xf32>
      %213 = vector.broadcast %211 : f32 to vector<16x16xf32>
      %214 = arith.mulf %213, %212 : vector<16x16xf32>
      %215 = arith.addf %205, %214 : vector<16x16xf32>
      %c21 = arith.constant 21 : index
      %216 = memref.load %arg2[%c21] : memref<98xf32, #tpu.memory_space<smem>>
      %217 = vector.extract_strided_slice %184 {offsets = [3, 0], sizes = [16, 16], strides = [1, 1]} : vector<22x16xf32> to vector<16x16xf32>
      %218 = vector.broadcast %216 : f32 to vector<16x16xf32>
      %219 = arith.mulf %218, %217 : vector<16x16xf32>
      %220 = arith.addf %210, %219 : vector<16x16xf32>
      %c70 = arith.constant 70 : index
      %221 = memref.load %arg2[%c70] : memref<98xf32, #tpu.memory_space<smem>>
      %222 = vector.extract_strided_slice %185 {offsets = [3, 0], sizes = [16, 16], strides = [1, 1]} : vector<22x16xf32> to vector<16x16xf32>
      %223 = vector.broadcast %221 : f32 to vector<16x16xf32>
      %224 = arith.mulf %223, %222 : vector<16x16xf32>
      %225 = arith.addf %215, %224 : vector<16x16xf32>
      %c28 = arith.constant 28 : index
      %226 = memref.load %arg2[%c28] : memref<98xf32, #tpu.memory_space<smem>>
      %227 = vector.extract_strided_slice %184 {offsets = [4, 0], sizes = [16, 16], strides = [1, 1]} : vector<22x16xf32> to vector<16x16xf32>
      %228 = vector.broadcast %226 : f32 to vector<16x16xf32>
      %229 = arith.mulf %228, %227 : vector<16x16xf32>
      %230 = arith.addf %220, %229 : vector<16x16xf32>
      %c77 = arith.constant 77 : index
      %231 = memref.load %arg2[%c77] : memref<98xf32, #tpu.memory_space<smem>>
      %232 = vector.extract_strided_slice %185 {offsets = [4, 0], sizes = [16, 16], strides = [1, 1]} : vector<22x16xf32> to vector<16x16xf32>
      %233 = vector.broadcast %231 : f32 to vector<16x16xf32>
      %234 = arith.mulf %233, %232 : vector<16x16xf32>
      %235 = arith.addf %225, %234 : vector<16x16xf32>
      %c35 = arith.constant 35 : index
      %236 = memref.load %arg2[%c35] : memref<98xf32, #tpu.memory_space<smem>>
      %237 = vector.extract_strided_slice %184 {offsets = [5, 0], sizes = [16, 16], strides = [1, 1]} : vector<22x16xf32> to vector<16x16xf32>
      %238 = vector.broadcast %236 : f32 to vector<16x16xf32>
      %239 = arith.mulf %238, %237 : vector<16x16xf32>
      %240 = arith.addf %230, %239 : vector<16x16xf32>
      %c84 = arith.constant 84 : index
      %241 = memref.load %arg2[%c84] : memref<98xf32, #tpu.memory_space<smem>>
      %242 = vector.extract_strided_slice %185 {offsets = [5, 0], sizes = [16, 16], strides = [1, 1]} : vector<22x16xf32> to vector<16x16xf32>
      %243 = vector.broadcast %241 : f32 to vector<16x16xf32>
      %244 = arith.mulf %243, %242 : vector<16x16xf32>
      %245 = arith.addf %235, %244 : vector<16x16xf32>
      %c42 = arith.constant 42 : index
      %246 = memref.load %arg2[%c42] : memref<98xf32, #tpu.memory_space<smem>>
      %247 = vector.extract_strided_slice %184 {offsets = [6, 0], sizes = [16, 16], strides = [1, 1]} : vector<22x16xf32> to vector<16x16xf32>
      %248 = vector.broadcast %246 : f32 to vector<16x16xf32>
      %249 = arith.mulf %248, %247 : vector<16x16xf32>
      %250 = arith.addf %240, %249 : vector<16x16xf32>
      %c91 = arith.constant 91 : index
      %251 = memref.load %arg2[%c91] : memref<98xf32, #tpu.memory_space<smem>>
      %252 = vector.extract_strided_slice %185 {offsets = [6, 0], sizes = [16, 16], strides = [1, 1]} : vector<22x16xf32> to vector<16x16xf32>
      %253 = vector.broadcast %251 : f32 to vector<16x16xf32>
      %254 = arith.mulf %253, %252 : vector<16x16xf32>
      %255 = arith.addf %245, %254 : vector<16x16xf32>
      %c0_129 = arith.constant 0 : index
      %c1 = arith.constant 1 : index
      %256 = vector.load %arg7[%c0_129, %c1] : memref<22x22xf32, #tpu.memory_space<vmem>>, vector<22x16xf32>
      %c0_130 = arith.constant 0 : index
      %c1_131 = arith.constant 1 : index
      %257 = vector.load %arg8[%c0_130, %c1_131] : memref<22x22xf32, #tpu.memory_space<vmem>>, vector<22x16xf32>
      %c1_132 = arith.constant 1 : index
      %258 = memref.load %arg2[%c1_132] : memref<98xf32, #tpu.memory_space<smem>>
      %259 = vector.extract_strided_slice %256 {offsets = [0, 0], sizes = [16, 16], strides = [1, 1]} : vector<22x16xf32> to vector<16x16xf32>
      %260 = vector.broadcast %258 : f32 to vector<16x16xf32>
      %261 = arith.mulf %260, %259 : vector<16x16xf32>
      %262 = arith.addf %250, %261 : vector<16x16xf32>
      %c50 = arith.constant 50 : index
      %263 = memref.load %arg2[%c50] : memref<98xf32, #tpu.memory_space<smem>>
      %264 = vector.extract_strided_slice %257 {offsets = [0, 0], sizes = [16, 16], strides = [1, 1]} : vector<22x16xf32> to vector<16x16xf32>
      %265 = vector.broadcast %263 : f32 to vector<16x16xf32>
      %266 = arith.mulf %265, %264 : vector<16x16xf32>
      %267 = arith.addf %255, %266 : vector<16x16xf32>
      %c8_133 = arith.constant 8 : index
      %268 = memref.load %arg2[%c8_133] : memref<98xf32, #tpu.memory_space<smem>>
      %269 = vector.extract_strided_slice %256 {offsets = [1, 0], sizes = [16, 16], strides = [1, 1]} : vector<22x16xf32> to vector<16x16xf32>
      %270 = vector.broadcast %268 : f32 to vector<16x16xf32>
      %271 = arith.mulf %270, %269 : vector<16x16xf32>
      %272 = arith.addf %262, %271 : vector<16x16xf32>
      %c57 = arith.constant 57 : index
      %273 = memref.load %arg2[%c57] : memref<98xf32, #tpu.memory_space<smem>>
      %274 = vector.extract_strided_slice %257 {offsets = [1, 0], sizes = [16, 16], strides = [1, 1]} : vector<22x16xf32> to vector<16x16xf32>
      %275 = vector.broadcast %273 : f32 to vector<16x16xf32>
      %276 = arith.mulf %275, %274 : vector<16x16xf32>
      %277 = arith.addf %267, %276 : vector<16x16xf32>
      %c15_134 = arith.constant 15 : index
      %278 = memref.load %arg2[%c15_134] : memref<98xf32, #tpu.memory_space<smem>>
      %279 = vector.extract_strided_slice %256 {offsets = [2, 0], sizes = [16, 16], strides = [1, 1]} : vector<22x16xf32> to vector<16x16xf32>
      %280 = vector.broadcast %278 : f32 to vector<16x16xf32>
      %281 = arith.mulf %280, %279 : vector<16x16xf32>
      %282 = arith.addf %272, %281 : vector<16x16xf32>
      %c64_135 = arith.constant 64 : index
      %283 = memref.load %arg2[%c64_135] : memref<98xf32, #tpu.memory_space<smem>>
      %284 = vector.extract_strided_slice %257 {offsets = [2, 0], sizes = [16, 16], strides = [1, 1]} : vector<22x16xf32> to vector<16x16xf32>
      %285 = vector.broadcast %283 : f32 to vector<16x16xf32>
      %286 = arith.mulf %285, %284 : vector<16x16xf32>
      %287 = arith.addf %277, %286 : vector<16x16xf32>
      %c22 = arith.constant 22 : index
      %288 = memref.load %arg2[%c22] : memref<98xf32, #tpu.memory_space<smem>>
      %289 = vector.extract_strided_slice %256 {offsets = [3, 0], sizes = [16, 16], strides = [1, 1]} : vector<22x16xf32> to vector<16x16xf32>
      %290 = vector.broadcast %288 : f32 to vector<16x16xf32>
      %291 = arith.mulf %290, %289 : vector<16x16xf32>
      %292 = arith.addf %282, %291 : vector<16x16xf32>
      %c71 = arith.constant 71 : index
      %293 = memref.load %arg2[%c71] : memref<98xf32, #tpu.memory_space<smem>>
      %294 = vector.extract_strided_slice %257 {offsets = [3, 0], sizes = [16, 16], strides = [1, 1]} : vector<22x16xf32> to vector<16x16xf32>
      %295 = vector.broadcast %293 : f32 to vector<16x16xf32>
      %296 = arith.mulf %295, %294 : vector<16x16xf32>
      %297 = arith.addf %287, %296 : vector<16x16xf32>
      %c29 = arith.constant 29 : index
      %298 = memref.load %arg2[%c29] : memref<98xf32, #tpu.memory_space<smem>>
      %299 = vector.extract_strided_slice %256 {offsets = [4, 0], sizes = [16, 16], strides = [1, 1]} : vector<22x16xf32> to vector<16x16xf32>
      %300 = vector.broadcast %298 : f32 to vector<16x16xf32>
      %301 = arith.mulf %300, %299 : vector<16x16xf32>
      %302 = arith.addf %292, %301 : vector<16x16xf32>
      %c78 = arith.constant 78 : index
      %303 = memref.load %arg2[%c78] : memref<98xf32, #tpu.memory_space<smem>>
      %304 = vector.extract_strided_slice %257 {offsets = [4, 0], sizes = [16, 16], strides = [1, 1]} : vector<22x16xf32> to vector<16x16xf32>
      %305 = vector.broadcast %303 : f32 to vector<16x16xf32>
      %306 = arith.mulf %305, %304 : vector<16x16xf32>
      %307 = arith.addf %297, %306 : vector<16x16xf32>
      %c36 = arith.constant 36 : index
      %308 = memref.load %arg2[%c36] : memref<98xf32, #tpu.memory_space<smem>>
      %309 = vector.extract_strided_slice %256 {offsets = [5, 0], sizes = [16, 16], strides = [1, 1]} : vector<22x16xf32> to vector<16x16xf32>
      %310 = vector.broadcast %308 : f32 to vector<16x16xf32>
      %311 = arith.mulf %310, %309 : vector<16x16xf32>
      %312 = arith.addf %302, %311 : vector<16x16xf32>
      %c85 = arith.constant 85 : index
      %313 = memref.load %arg2[%c85] : memref<98xf32, #tpu.memory_space<smem>>
      %314 = vector.extract_strided_slice %257 {offsets = [5, 0], sizes = [16, 16], strides = [1, 1]} : vector<22x16xf32> to vector<16x16xf32>
      %315 = vector.broadcast %313 : f32 to vector<16x16xf32>
      %316 = arith.mulf %315, %314 : vector<16x16xf32>
      %317 = arith.addf %307, %316 : vector<16x16xf32>
      %c43 = arith.constant 43 : index
      %318 = memref.load %arg2[%c43] : memref<98xf32, #tpu.memory_space<smem>>
      %319 = vector.extract_strided_slice %256 {offsets = [6, 0], sizes = [16, 16], strides = [1, 1]} : vector<22x16xf32> to vector<16x16xf32>
      %320 = vector.broadcast %318 : f32 to vector<16x16xf32>
      %321 = arith.mulf %320, %319 : vector<16x16xf32>
      %322 = arith.addf %312, %321 : vector<16x16xf32>
      %c92 = arith.constant 92 : index
      %323 = memref.load %arg2[%c92] : memref<98xf32, #tpu.memory_space<smem>>
      %324 = vector.extract_strided_slice %257 {offsets = [6, 0], sizes = [16, 16], strides = [1, 1]} : vector<22x16xf32> to vector<16x16xf32>
      %325 = vector.broadcast %323 : f32 to vector<16x16xf32>
      %326 = arith.mulf %325, %324 : vector<16x16xf32>
      %327 = arith.addf %317, %326 : vector<16x16xf32>
      %c0_136 = arith.constant 0 : index
      %c2 = arith.constant 2 : index
      %328 = vector.load %arg7[%c0_136, %c2] : memref<22x22xf32, #tpu.memory_space<vmem>>, vector<22x16xf32>
      %c0_137 = arith.constant 0 : index
      %c2_138 = arith.constant 2 : index
      %329 = vector.load %arg8[%c0_137, %c2_138] : memref<22x22xf32, #tpu.memory_space<vmem>>, vector<22x16xf32>
      %c2_139 = arith.constant 2 : index
      %330 = memref.load %arg2[%c2_139] : memref<98xf32, #tpu.memory_space<smem>>
      %331 = vector.extract_strided_slice %328 {offsets = [0, 0], sizes = [16, 16], strides = [1, 1]} : vector<22x16xf32> to vector<16x16xf32>
      %332 = vector.broadcast %330 : f32 to vector<16x16xf32>
      %333 = arith.mulf %332, %331 : vector<16x16xf32>
      %334 = arith.addf %322, %333 : vector<16x16xf32>
      %c51 = arith.constant 51 : index
      %335 = memref.load %arg2[%c51] : memref<98xf32, #tpu.memory_space<smem>>
      %336 = vector.extract_strided_slice %329 {offsets = [0, 0], sizes = [16, 16], strides = [1, 1]} : vector<22x16xf32> to vector<16x16xf32>
      %337 = vector.broadcast %335 : f32 to vector<16x16xf32>
      %338 = arith.mulf %337, %336 : vector<16x16xf32>
      %339 = arith.addf %327, %338 : vector<16x16xf32>
      %c9_140 = arith.constant 9 : index
      %340 = memref.load %arg2[%c9_140] : memref<98xf32, #tpu.memory_space<smem>>
      %341 = vector.extract_strided_slice %328 {offsets = [1, 0], sizes = [16, 16], strides = [1, 1]} : vector<22x16xf32> to vector<16x16xf32>
      %342 = vector.broadcast %340 : f32 to vector<16x16xf32>
      %343 = arith.mulf %342, %341 : vector<16x16xf32>
      %344 = arith.addf %334, %343 : vector<16x16xf32>
      %c58 = arith.constant 58 : index
      %345 = memref.load %arg2[%c58] : memref<98xf32, #tpu.memory_space<smem>>
      %346 = vector.extract_strided_slice %329 {offsets = [1, 0], sizes = [16, 16], strides = [1, 1]} : vector<22x16xf32> to vector<16x16xf32>
      %347 = vector.broadcast %345 : f32 to vector<16x16xf32>
      %348 = arith.mulf %347, %346 : vector<16x16xf32>
      %349 = arith.addf %339, %348 : vector<16x16xf32>
      %c16_141 = arith.constant 16 : index
      %350 = memref.load %arg2[%c16_141] : memref<98xf32, #tpu.memory_space<smem>>
      %351 = vector.extract_strided_slice %328 {offsets = [2, 0], sizes = [16, 16], strides = [1, 1]} : vector<22x16xf32> to vector<16x16xf32>
      %352 = vector.broadcast %350 : f32 to vector<16x16xf32>
      %353 = arith.mulf %352, %351 : vector<16x16xf32>
      %354 = arith.addf %344, %353 : vector<16x16xf32>
      %c65 = arith.constant 65 : index
      %355 = memref.load %arg2[%c65] : memref<98xf32, #tpu.memory_space<smem>>
      %356 = vector.extract_strided_slice %329 {offsets = [2, 0], sizes = [16, 16], strides = [1, 1]} : vector<22x16xf32> to vector<16x16xf32>
      %357 = vector.broadcast %355 : f32 to vector<16x16xf32>
      %358 = arith.mulf %357, %356 : vector<16x16xf32>
      %359 = arith.addf %349, %358 : vector<16x16xf32>
      %c23 = arith.constant 23 : index
      %360 = memref.load %arg2[%c23] : memref<98xf32, #tpu.memory_space<smem>>
      %361 = vector.extract_strided_slice %328 {offsets = [3, 0], sizes = [16, 16], strides = [1, 1]} : vector<22x16xf32> to vector<16x16xf32>
      %362 = vector.broadcast %360 : f32 to vector<16x16xf32>
      %363 = arith.mulf %362, %361 : vector<16x16xf32>
      %364 = arith.addf %354, %363 : vector<16x16xf32>
      %c72 = arith.constant 72 : index
      %365 = memref.load %arg2[%c72] : memref<98xf32, #tpu.memory_space<smem>>
      %366 = vector.extract_strided_slice %329 {offsets = [3, 0], sizes = [16, 16], strides = [1, 1]} : vector<22x16xf32> to vector<16x16xf32>
      %367 = vector.broadcast %365 : f32 to vector<16x16xf32>
      %368 = arith.mulf %367, %366 : vector<16x16xf32>
      %369 = arith.addf %359, %368 : vector<16x16xf32>
      %c30 = arith.constant 30 : index
      %370 = memref.load %arg2[%c30] : memref<98xf32, #tpu.memory_space<smem>>
      %371 = vector.extract_strided_slice %328 {offsets = [4, 0], sizes = [16, 16], strides = [1, 1]} : vector<22x16xf32> to vector<16x16xf32>
      %372 = vector.broadcast %370 : f32 to vector<16x16xf32>
      %373 = arith.mulf %372, %371 : vector<16x16xf32>
      %374 = arith.addf %364, %373 : vector<16x16xf32>
      %c79 = arith.constant 79 : index
      %375 = memref.load %arg2[%c79] : memref<98xf32, #tpu.memory_space<smem>>
      %376 = vector.extract_strided_slice %329 {offsets = [4, 0], sizes = [16, 16], strides = [1, 1]} : vector<22x16xf32> to vector<16x16xf32>
      %377 = vector.broadcast %375 : f32 to vector<16x16xf32>
      %378 = arith.mulf %377, %376 : vector<16x16xf32>
      %379 = arith.addf %369, %378 : vector<16x16xf32>
      %c37 = arith.constant 37 : index
      %380 = memref.load %arg2[%c37] : memref<98xf32, #tpu.memory_space<smem>>
      %381 = vector.extract_strided_slice %328 {offsets = [5, 0], sizes = [16, 16], strides = [1, 1]} : vector<22x16xf32> to vector<16x16xf32>
      %382 = vector.broadcast %380 : f32 to vector<16x16xf32>
      %383 = arith.mulf %382, %381 : vector<16x16xf32>
      %384 = arith.addf %374, %383 : vector<16x16xf32>
      %c86 = arith.constant 86 : index
      %385 = memref.load %arg2[%c86] : memref<98xf32, #tpu.memory_space<smem>>
      %386 = vector.extract_strided_slice %329 {offsets = [5, 0], sizes = [16, 16], strides = [1, 1]} : vector<22x16xf32> to vector<16x16xf32>
      %387 = vector.broadcast %385 : f32 to vector<16x16xf32>
      %388 = arith.mulf %387, %386 : vector<16x16xf32>
      %389 = arith.addf %379, %388 : vector<16x16xf32>
      %c44 = arith.constant 44 : index
      %390 = memref.load %arg2[%c44] : memref<98xf32, #tpu.memory_space<smem>>
      %391 = vector.extract_strided_slice %328 {offsets = [6, 0], sizes = [16, 16], strides = [1, 1]} : vector<22x16xf32> to vector<16x16xf32>
      %392 = vector.broadcast %390 : f32 to vector<16x16xf32>
      %393 = arith.mulf %392, %391 : vector<16x16xf32>
      %394 = arith.addf %384, %393 : vector<16x16xf32>
      %c93 = arith.constant 93 : index
      %395 = memref.load %arg2[%c93] : memref<98xf32, #tpu.memory_space<smem>>
      %396 = vector.extract_strided_slice %329 {offsets = [6, 0], sizes = [16, 16], strides = [1, 1]} : vector<22x16xf32> to vector<16x16xf32>
      %397 = vector.broadcast %395 : f32 to vector<16x16xf32>
      %398 = arith.mulf %397, %396 : vector<16x16xf32>
      %399 = arith.addf %389, %398 : vector<16x16xf32>
      %c0_142 = arith.constant 0 : index
      %c3_143 = arith.constant 3 : index
      %400 = vector.load %arg7[%c0_142, %c3_143] : memref<22x22xf32, #tpu.memory_space<vmem>>, vector<22x16xf32>
      %c0_144 = arith.constant 0 : index
      %c3_145 = arith.constant 3 : index
      %401 = vector.load %arg8[%c0_144, %c3_145] : memref<22x22xf32, #tpu.memory_space<vmem>>, vector<22x16xf32>
      %c3_146 = arith.constant 3 : index
      %402 = memref.load %arg2[%c3_146] : memref<98xf32, #tpu.memory_space<smem>>
      %403 = vector.extract_strided_slice %400 {offsets = [0, 0], sizes = [16, 16], strides = [1, 1]} : vector<22x16xf32> to vector<16x16xf32>
      %404 = vector.broadcast %402 : f32 to vector<16x16xf32>
      %405 = arith.mulf %404, %403 : vector<16x16xf32>
      %406 = arith.addf %394, %405 : vector<16x16xf32>
      %c52 = arith.constant 52 : index
      %407 = memref.load %arg2[%c52] : memref<98xf32, #tpu.memory_space<smem>>
      %408 = vector.extract_strided_slice %401 {offsets = [0, 0], sizes = [16, 16], strides = [1, 1]} : vector<22x16xf32> to vector<16x16xf32>
      %409 = vector.broadcast %407 : f32 to vector<16x16xf32>
      %410 = arith.mulf %409, %408 : vector<16x16xf32>
      %411 = arith.addf %399, %410 : vector<16x16xf32>
      %c10_147 = arith.constant 10 : index
      %412 = memref.load %arg2[%c10_147] : memref<98xf32, #tpu.memory_space<smem>>
      %413 = vector.extract_strided_slice %400 {offsets = [1, 0], sizes = [16, 16], strides = [1, 1]} : vector<22x16xf32> to vector<16x16xf32>
      %414 = vector.broadcast %412 : f32 to vector<16x16xf32>
      %415 = arith.mulf %414, %413 : vector<16x16xf32>
      %416 = arith.addf %406, %415 : vector<16x16xf32>
      %c59 = arith.constant 59 : index
      %417 = memref.load %arg2[%c59] : memref<98xf32, #tpu.memory_space<smem>>
      %418 = vector.extract_strided_slice %401 {offsets = [1, 0], sizes = [16, 16], strides = [1, 1]} : vector<22x16xf32> to vector<16x16xf32>
      %419 = vector.broadcast %417 : f32 to vector<16x16xf32>
      %420 = arith.mulf %419, %418 : vector<16x16xf32>
      %421 = arith.addf %411, %420 : vector<16x16xf32>
      %c17_148 = arith.constant 17 : index
      %422 = memref.load %arg2[%c17_148] : memref<98xf32, #tpu.memory_space<smem>>
      %423 = vector.extract_strided_slice %400 {offsets = [2, 0], sizes = [16, 16], strides = [1, 1]} : vector<22x16xf32> to vector<16x16xf32>
      %424 = vector.broadcast %422 : f32 to vector<16x16xf32>
      %425 = arith.mulf %424, %423 : vector<16x16xf32>
      %426 = arith.addf %416, %425 : vector<16x16xf32>
      %c66 = arith.constant 66 : index
      %427 = memref.load %arg2[%c66] : memref<98xf32, #tpu.memory_space<smem>>
      %428 = vector.extract_strided_slice %401 {offsets = [2, 0], sizes = [16, 16], strides = [1, 1]} : vector<22x16xf32> to vector<16x16xf32>
      %429 = vector.broadcast %427 : f32 to vector<16x16xf32>
      %430 = arith.mulf %429, %428 : vector<16x16xf32>
      %431 = arith.addf %421, %430 : vector<16x16xf32>
      %c24 = arith.constant 24 : index
      %432 = memref.load %arg2[%c24] : memref<98xf32, #tpu.memory_space<smem>>
      %433 = vector.extract_strided_slice %400 {offsets = [3, 0], sizes = [16, 16], strides = [1, 1]} : vector<22x16xf32> to vector<16x16xf32>
      %434 = vector.broadcast %432 : f32 to vector<16x16xf32>
      %435 = arith.mulf %434, %433 : vector<16x16xf32>
      %436 = arith.addf %426, %435 : vector<16x16xf32>
      %c73 = arith.constant 73 : index
      %437 = memref.load %arg2[%c73] : memref<98xf32, #tpu.memory_space<smem>>
      %438 = vector.extract_strided_slice %401 {offsets = [3, 0], sizes = [16, 16], strides = [1, 1]} : vector<22x16xf32> to vector<16x16xf32>
      %439 = vector.broadcast %437 : f32 to vector<16x16xf32>
      %440 = arith.mulf %439, %438 : vector<16x16xf32>
      %441 = arith.addf %431, %440 : vector<16x16xf32>
      %c31 = arith.constant 31 : index
      %442 = memref.load %arg2[%c31] : memref<98xf32, #tpu.memory_space<smem>>
      %443 = vector.extract_strided_slice %400 {offsets = [4, 0], sizes = [16, 16], strides = [1, 1]} : vector<22x16xf32> to vector<16x16xf32>
      %444 = vector.broadcast %442 : f32 to vector<16x16xf32>
      %445 = arith.mulf %444, %443 : vector<16x16xf32>
      %446 = arith.addf %436, %445 : vector<16x16xf32>
      %c80_149 = arith.constant 80 : index
      %447 = memref.load %arg2[%c80_149] : memref<98xf32, #tpu.memory_space<smem>>
      %448 = vector.extract_strided_slice %401 {offsets = [4, 0], sizes = [16, 16], strides = [1, 1]} : vector<22x16xf32> to vector<16x16xf32>
      %449 = vector.broadcast %447 : f32 to vector<16x16xf32>
      %450 = arith.mulf %449, %448 : vector<16x16xf32>
      %451 = arith.addf %441, %450 : vector<16x16xf32>
      %c38 = arith.constant 38 : index
      %452 = memref.load %arg2[%c38] : memref<98xf32, #tpu.memory_space<smem>>
      %453 = vector.extract_strided_slice %400 {offsets = [5, 0], sizes = [16, 16], strides = [1, 1]} : vector<22x16xf32> to vector<16x16xf32>
      %454 = vector.broadcast %452 : f32 to vector<16x16xf32>
      %455 = arith.mulf %454, %453 : vector<16x16xf32>
      %456 = arith.addf %446, %455 : vector<16x16xf32>
      %c87 = arith.constant 87 : index
      %457 = memref.load %arg2[%c87] : memref<98xf32, #tpu.memory_space<smem>>
      %458 = vector.extract_strided_slice %401 {offsets = [5, 0], sizes = [16, 16], strides = [1, 1]} : vector<22x16xf32> to vector<16x16xf32>
      %459 = vector.broadcast %457 : f32 to vector<16x16xf32>
      %460 = arith.mulf %459, %458 : vector<16x16xf32>
      %461 = arith.addf %451, %460 : vector<16x16xf32>
      %c45 = arith.constant 45 : index
      %462 = memref.load %arg2[%c45] : memref<98xf32, #tpu.memory_space<smem>>
      %463 = vector.extract_strided_slice %400 {offsets = [6, 0], sizes = [16, 16], strides = [1, 1]} : vector<22x16xf32> to vector<16x16xf32>
      %464 = vector.broadcast %462 : f32 to vector<16x16xf32>
      %465 = arith.mulf %464, %463 : vector<16x16xf32>
      %466 = arith.addf %456, %465 : vector<16x16xf32>
      %c94 = arith.constant 94 : index
      %467 = memref.load %arg2[%c94] : memref<98xf32, #tpu.memory_space<smem>>
      %468 = vector.extract_strided_slice %401 {offsets = [6, 0], sizes = [16, 16], strides = [1, 1]} : vector<22x16xf32> to vector<16x16xf32>
      %469 = vector.broadcast %467 : f32 to vector<16x16xf32>
      %470 = arith.mulf %469, %468 : vector<16x16xf32>
      %471 = arith.addf %461, %470 : vector<16x16xf32>
      %c0_150 = arith.constant 0 : index
      %c4_151 = arith.constant 4 : index
      %472 = vector.load %arg7[%c0_150, %c4_151] : memref<22x22xf32, #tpu.memory_space<vmem>>, vector<22x16xf32>
      %c0_152 = arith.constant 0 : index
      %c4_153 = arith.constant 4 : index
      %473 = vector.load %arg8[%c0_152, %c4_153] : memref<22x22xf32, #tpu.memory_space<vmem>>, vector<22x16xf32>
      %c4_154 = arith.constant 4 : index
      %474 = memref.load %arg2[%c4_154] : memref<98xf32, #tpu.memory_space<smem>>
      %475 = vector.extract_strided_slice %472 {offsets = [0, 0], sizes = [16, 16], strides = [1, 1]} : vector<22x16xf32> to vector<16x16xf32>
      %476 = vector.broadcast %474 : f32 to vector<16x16xf32>
      %477 = arith.mulf %476, %475 : vector<16x16xf32>
      %478 = arith.addf %466, %477 : vector<16x16xf32>
      %c53 = arith.constant 53 : index
      %479 = memref.load %arg2[%c53] : memref<98xf32, #tpu.memory_space<smem>>
      %480 = vector.extract_strided_slice %473 {offsets = [0, 0], sizes = [16, 16], strides = [1, 1]} : vector<22x16xf32> to vector<16x16xf32>
      %481 = vector.broadcast %479 : f32 to vector<16x16xf32>
      %482 = arith.mulf %481, %480 : vector<16x16xf32>
      %483 = arith.addf %471, %482 : vector<16x16xf32>
      %c11_155 = arith.constant 11 : index
      %484 = memref.load %arg2[%c11_155] : memref<98xf32, #tpu.memory_space<smem>>
      %485 = vector.extract_strided_slice %472 {offsets = [1, 0], sizes = [16, 16], strides = [1, 1]} : vector<22x16xf32> to vector<16x16xf32>
      %486 = vector.broadcast %484 : f32 to vector<16x16xf32>
      %487 = arith.mulf %486, %485 : vector<16x16xf32>
      %488 = arith.addf %478, %487 : vector<16x16xf32>
      %c60 = arith.constant 60 : index
      %489 = memref.load %arg2[%c60] : memref<98xf32, #tpu.memory_space<smem>>
      %490 = vector.extract_strided_slice %473 {offsets = [1, 0], sizes = [16, 16], strides = [1, 1]} : vector<22x16xf32> to vector<16x16xf32>
      %491 = vector.broadcast %489 : f32 to vector<16x16xf32>
      %492 = arith.mulf %491, %490 : vector<16x16xf32>
      %493 = arith.addf %483, %492 : vector<16x16xf32>
      %c18_156 = arith.constant 18 : index
      %494 = memref.load %arg2[%c18_156] : memref<98xf32, #tpu.memory_space<smem>>
      %495 = vector.extract_strided_slice %472 {offsets = [2, 0], sizes = [16, 16], strides = [1, 1]} : vector<22x16xf32> to vector<16x16xf32>
      %496 = vector.broadcast %494 : f32 to vector<16x16xf32>
      %497 = arith.mulf %496, %495 : vector<16x16xf32>
      %498 = arith.addf %488, %497 : vector<16x16xf32>
      %c67 = arith.constant 67 : index
      %499 = memref.load %arg2[%c67] : memref<98xf32, #tpu.memory_space<smem>>
      %500 = vector.extract_strided_slice %473 {offsets = [2, 0], sizes = [16, 16], strides = [1, 1]} : vector<22x16xf32> to vector<16x16xf32>
      %501 = vector.broadcast %499 : f32 to vector<16x16xf32>
      %502 = arith.mulf %501, %500 : vector<16x16xf32>
      %503 = arith.addf %493, %502 : vector<16x16xf32>
      %c25 = arith.constant 25 : index
      %504 = memref.load %arg2[%c25] : memref<98xf32, #tpu.memory_space<smem>>
      %505 = vector.extract_strided_slice %472 {offsets = [3, 0], sizes = [16, 16], strides = [1, 1]} : vector<22x16xf32> to vector<16x16xf32>
      %506 = vector.broadcast %504 : f32 to vector<16x16xf32>
      %507 = arith.mulf %506, %505 : vector<16x16xf32>
      %508 = arith.addf %498, %507 : vector<16x16xf32>
      %c74 = arith.constant 74 : index
      %509 = memref.load %arg2[%c74] : memref<98xf32, #tpu.memory_space<smem>>
      %510 = vector.extract_strided_slice %473 {offsets = [3, 0], sizes = [16, 16], strides = [1, 1]} : vector<22x16xf32> to vector<16x16xf32>
      %511 = vector.broadcast %509 : f32 to vector<16x16xf32>
      %512 = arith.mulf %511, %510 : vector<16x16xf32>
      %513 = arith.addf %503, %512 : vector<16x16xf32>
      %c32_157 = arith.constant 32 : index
      %514 = memref.load %arg2[%c32_157] : memref<98xf32, #tpu.memory_space<smem>>
      %515 = vector.extract_strided_slice %472 {offsets = [4, 0], sizes = [16, 16], strides = [1, 1]} : vector<22x16xf32> to vector<16x16xf32>
      %516 = vector.broadcast %514 : f32 to vector<16x16xf32>
      %517 = arith.mulf %516, %515 : vector<16x16xf32>
      %518 = arith.addf %508, %517 : vector<16x16xf32>
      %c81 = arith.constant 81 : index
      %519 = memref.load %arg2[%c81] : memref<98xf32, #tpu.memory_space<smem>>
      %520 = vector.extract_strided_slice %473 {offsets = [4, 0], sizes = [16, 16], strides = [1, 1]} : vector<22x16xf32> to vector<16x16xf32>
      %521 = vector.broadcast %519 : f32 to vector<16x16xf32>
      %522 = arith.mulf %521, %520 : vector<16x16xf32>
      %523 = arith.addf %513, %522 : vector<16x16xf32>
      %c39 = arith.constant 39 : index
      %524 = memref.load %arg2[%c39] : memref<98xf32, #tpu.memory_space<smem>>
      %525 = vector.extract_strided_slice %472 {offsets = [5, 0], sizes = [16, 16], strides = [1, 1]} : vector<22x16xf32> to vector<16x16xf32>
      %526 = vector.broadcast %524 : f32 to vector<16x16xf32>
      %527 = arith.mulf %526, %525 : vector<16x16xf32>
      %528 = arith.addf %518, %527 : vector<16x16xf32>
      %c88 = arith.constant 88 : index
      %529 = memref.load %arg2[%c88] : memref<98xf32, #tpu.memory_space<smem>>
      %530 = vector.extract_strided_slice %473 {offsets = [5, 0], sizes = [16, 16], strides = [1, 1]} : vector<22x16xf32> to vector<16x16xf32>
      %531 = vector.broadcast %529 : f32 to vector<16x16xf32>
      %532 = arith.mulf %531, %530 : vector<16x16xf32>
      %533 = arith.addf %523, %532 : vector<16x16xf32>
      %c46 = arith.constant 46 : index
      %534 = memref.load %arg2[%c46] : memref<98xf32, #tpu.memory_space<smem>>
      %535 = vector.extract_strided_slice %472 {offsets = [6, 0], sizes = [16, 16], strides = [1, 1]} : vector<22x16xf32> to vector<16x16xf32>
      %536 = vector.broadcast %534 : f32 to vector<16x16xf32>
      %537 = arith.mulf %536, %535 : vector<16x16xf32>
      %538 = arith.addf %528, %537 : vector<16x16xf32>
      %c95 = arith.constant 95 : index
      %539 = memref.load %arg2[%c95] : memref<98xf32, #tpu.memory_space<smem>>
      %540 = vector.extract_strided_slice %473 {offsets = [6, 0], sizes = [16, 16], strides = [1, 1]} : vector<22x16xf32> to vector<16x16xf32>
      %541 = vector.broadcast %539 : f32 to vector<16x16xf32>
      %542 = arith.mulf %541, %540 : vector<16x16xf32>
      %543 = arith.addf %533, %542 : vector<16x16xf32>
      %c0_158 = arith.constant 0 : index
      %c5_159 = arith.constant 5 : index
      %544 = vector.load %arg7[%c0_158, %c5_159] : memref<22x22xf32, #tpu.memory_space<vmem>>, vector<22x16xf32>
      %c0_160 = arith.constant 0 : index
      %c5_161 = arith.constant 5 : index
      %545 = vector.load %arg8[%c0_160, %c5_161] : memref<22x22xf32, #tpu.memory_space<vmem>>, vector<22x16xf32>
      %c5_162 = arith.constant 5 : index
      %546 = memref.load %arg2[%c5_162] : memref<98xf32, #tpu.memory_space<smem>>
      %547 = vector.extract_strided_slice %544 {offsets = [0, 0], sizes = [16, 16], strides = [1, 1]} : vector<22x16xf32> to vector<16x16xf32>
      %548 = vector.broadcast %546 : f32 to vector<16x16xf32>
      %549 = arith.mulf %548, %547 : vector<16x16xf32>
      %550 = arith.addf %538, %549 : vector<16x16xf32>
      %c54 = arith.constant 54 : index
      %551 = memref.load %arg2[%c54] : memref<98xf32, #tpu.memory_space<smem>>
      %552 = vector.extract_strided_slice %545 {offsets = [0, 0], sizes = [16, 16], strides = [1, 1]} : vector<22x16xf32> to vector<16x16xf32>
      %553 = vector.broadcast %551 : f32 to vector<16x16xf32>
      %554 = arith.mulf %553, %552 : vector<16x16xf32>
      %555 = arith.addf %543, %554 : vector<16x16xf32>
      %c12_163 = arith.constant 12 : index
      %556 = memref.load %arg2[%c12_163] : memref<98xf32, #tpu.memory_space<smem>>
      %557 = vector.extract_strided_slice %544 {offsets = [1, 0], sizes = [16, 16], strides = [1, 1]} : vector<22x16xf32> to vector<16x16xf32>
      %558 = vector.broadcast %556 : f32 to vector<16x16xf32>
      %559 = arith.mulf %558, %557 : vector<16x16xf32>
      %560 = arith.addf %550, %559 : vector<16x16xf32>
      %c61 = arith.constant 61 : index
      %561 = memref.load %arg2[%c61] : memref<98xf32, #tpu.memory_space<smem>>
      %562 = vector.extract_strided_slice %545 {offsets = [1, 0], sizes = [16, 16], strides = [1, 1]} : vector<22x16xf32> to vector<16x16xf32>
      %563 = vector.broadcast %561 : f32 to vector<16x16xf32>
      %564 = arith.mulf %563, %562 : vector<16x16xf32>
      %565 = arith.addf %555, %564 : vector<16x16xf32>
      %c19 = arith.constant 19 : index
      %566 = memref.load %arg2[%c19] : memref<98xf32, #tpu.memory_space<smem>>
      %567 = vector.extract_strided_slice %544 {offsets = [2, 0], sizes = [16, 16], strides = [1, 1]} : vector<22x16xf32> to vector<16x16xf32>
      %568 = vector.broadcast %566 : f32 to vector<16x16xf32>
      %569 = arith.mulf %568, %567 : vector<16x16xf32>
      %570 = arith.addf %560, %569 : vector<16x16xf32>
      %c68 = arith.constant 68 : index
      %571 = memref.load %arg2[%c68] : memref<98xf32, #tpu.memory_space<smem>>
      %572 = vector.extract_strided_slice %545 {offsets = [2, 0], sizes = [16, 16], strides = [1, 1]} : vector<22x16xf32> to vector<16x16xf32>
      %573 = vector.broadcast %571 : f32 to vector<16x16xf32>
      %574 = arith.mulf %573, %572 : vector<16x16xf32>
      %575 = arith.addf %565, %574 : vector<16x16xf32>
      %c26 = arith.constant 26 : index
      %576 = memref.load %arg2[%c26] : memref<98xf32, #tpu.memory_space<smem>>
      %577 = vector.extract_strided_slice %544 {offsets = [3, 0], sizes = [16, 16], strides = [1, 1]} : vector<22x16xf32> to vector<16x16xf32>
      %578 = vector.broadcast %576 : f32 to vector<16x16xf32>
      %579 = arith.mulf %578, %577 : vector<16x16xf32>
      %580 = arith.addf %570, %579 : vector<16x16xf32>
      %c75 = arith.constant 75 : index
      %581 = memref.load %arg2[%c75] : memref<98xf32, #tpu.memory_space<smem>>
      %582 = vector.extract_strided_slice %545 {offsets = [3, 0], sizes = [16, 16], strides = [1, 1]} : vector<22x16xf32> to vector<16x16xf32>
      %583 = vector.broadcast %581 : f32 to vector<16x16xf32>
      %584 = arith.mulf %583, %582 : vector<16x16xf32>
      %585 = arith.addf %575, %584 : vector<16x16xf32>
      %c33 = arith.constant 33 : index
      %586 = memref.load %arg2[%c33] : memref<98xf32, #tpu.memory_space<smem>>
      %587 = vector.extract_strided_slice %544 {offsets = [4, 0], sizes = [16, 16], strides = [1, 1]} : vector<22x16xf32> to vector<16x16xf32>
      %588 = vector.broadcast %586 : f32 to vector<16x16xf32>
      %589 = arith.mulf %588, %587 : vector<16x16xf32>
      %590 = arith.addf %580, %589 : vector<16x16xf32>
      %c82 = arith.constant 82 : index
      %591 = memref.load %arg2[%c82] : memref<98xf32, #tpu.memory_space<smem>>
      %592 = vector.extract_strided_slice %545 {offsets = [4, 0], sizes = [16, 16], strides = [1, 1]} : vector<22x16xf32> to vector<16x16xf32>
      %593 = vector.broadcast %591 : f32 to vector<16x16xf32>
      %594 = arith.mulf %593, %592 : vector<16x16xf32>
      %595 = arith.addf %585, %594 : vector<16x16xf32>
      %c40 = arith.constant 40 : index
      %596 = memref.load %arg2[%c40] : memref<98xf32, #tpu.memory_space<smem>>
      %597 = vector.extract_strided_slice %544 {offsets = [5, 0], sizes = [16, 16], strides = [1, 1]} : vector<22x16xf32> to vector<16x16xf32>
      %598 = vector.broadcast %596 : f32 to vector<16x16xf32>
      %599 = arith.mulf %598, %597 : vector<16x16xf32>
      %600 = arith.addf %590, %599 : vector<16x16xf32>
      %c89 = arith.constant 89 : index
      %601 = memref.load %arg2[%c89] : memref<98xf32, #tpu.memory_space<smem>>
      %602 = vector.extract_strided_slice %545 {offsets = [5, 0], sizes = [16, 16], strides = [1, 1]} : vector<22x16xf32> to vector<16x16xf32>
      %603 = vector.broadcast %601 : f32 to vector<16x16xf32>
      %604 = arith.mulf %603, %602 : vector<16x16xf32>
      %605 = arith.addf %595, %604 : vector<16x16xf32>
      %c47 = arith.constant 47 : index
      %606 = memref.load %arg2[%c47] : memref<98xf32, #tpu.memory_space<smem>>
      %607 = vector.extract_strided_slice %544 {offsets = [6, 0], sizes = [16, 16], strides = [1, 1]} : vector<22x16xf32> to vector<16x16xf32>
      %608 = vector.broadcast %606 : f32 to vector<16x16xf32>
      %609 = arith.mulf %608, %607 : vector<16x16xf32>
      %610 = arith.addf %600, %609 : vector<16x16xf32>
      %c96_164 = arith.constant 96 : index
      %611 = memref.load %arg2[%c96_164] : memref<98xf32, #tpu.memory_space<smem>>
      %612 = vector.extract_strided_slice %545 {offsets = [6, 0], sizes = [16, 16], strides = [1, 1]} : vector<22x16xf32> to vector<16x16xf32>
      %613 = vector.broadcast %611 : f32 to vector<16x16xf32>
      %614 = arith.mulf %613, %612 : vector<16x16xf32>
      %615 = arith.addf %605, %614 : vector<16x16xf32>
      %c0_165 = arith.constant 0 : index
      %c6_166 = arith.constant 6 : index
      %616 = vector.load %arg7[%c0_165, %c6_166] : memref<22x22xf32, #tpu.memory_space<vmem>>, vector<22x16xf32>
      %c0_167 = arith.constant 0 : index
      %c6_168 = arith.constant 6 : index
      %617 = vector.load %arg8[%c0_167, %c6_168] : memref<22x22xf32, #tpu.memory_space<vmem>>, vector<22x16xf32>
      %c6_169 = arith.constant 6 : index
      %618 = memref.load %arg2[%c6_169] : memref<98xf32, #tpu.memory_space<smem>>
      %619 = vector.extract_strided_slice %616 {offsets = [0, 0], sizes = [16, 16], strides = [1, 1]} : vector<22x16xf32> to vector<16x16xf32>
      %620 = vector.broadcast %618 : f32 to vector<16x16xf32>
      %621 = arith.mulf %620, %619 : vector<16x16xf32>
      %622 = arith.addf %610, %621 : vector<16x16xf32>
      %c55 = arith.constant 55 : index
      %623 = memref.load %arg2[%c55] : memref<98xf32, #tpu.memory_space<smem>>
      %624 = vector.extract_strided_slice %617 {offsets = [0, 0], sizes = [16, 16], strides = [1, 1]} : vector<22x16xf32> to vector<16x16xf32>
      %625 = vector.broadcast %623 : f32 to vector<16x16xf32>
      %626 = arith.mulf %625, %624 : vector<16x16xf32>
      %627 = arith.addf %615, %626 : vector<16x16xf32>
      %c13_170 = arith.constant 13 : index
      %628 = memref.load %arg2[%c13_170] : memref<98xf32, #tpu.memory_space<smem>>
      %629 = vector.extract_strided_slice %616 {offsets = [1, 0], sizes = [16, 16], strides = [1, 1]} : vector<22x16xf32> to vector<16x16xf32>
      %630 = vector.broadcast %628 : f32 to vector<16x16xf32>
      %631 = arith.mulf %630, %629 : vector<16x16xf32>
      %632 = arith.addf %622, %631 : vector<16x16xf32>
      %c62 = arith.constant 62 : index
      %633 = memref.load %arg2[%c62] : memref<98xf32, #tpu.memory_space<smem>>
      %634 = vector.extract_strided_slice %617 {offsets = [1, 0], sizes = [16, 16], strides = [1, 1]} : vector<22x16xf32> to vector<16x16xf32>
      %635 = vector.broadcast %633 : f32 to vector<16x16xf32>
      %636 = arith.mulf %635, %634 : vector<16x16xf32>
      %637 = arith.addf %627, %636 : vector<16x16xf32>
      %c20 = arith.constant 20 : index
      %638 = memref.load %arg2[%c20] : memref<98xf32, #tpu.memory_space<smem>>
      %639 = vector.extract_strided_slice %616 {offsets = [2, 0], sizes = [16, 16], strides = [1, 1]} : vector<22x16xf32> to vector<16x16xf32>
      %640 = vector.broadcast %638 : f32 to vector<16x16xf32>
      %641 = arith.mulf %640, %639 : vector<16x16xf32>
      %642 = arith.addf %632, %641 : vector<16x16xf32>
      %c69 = arith.constant 69 : index
      %643 = memref.load %arg2[%c69] : memref<98xf32, #tpu.memory_space<smem>>
      %644 = vector.extract_strided_slice %617 {offsets = [2, 0], sizes = [16, 16], strides = [1, 1]} : vector<22x16xf32> to vector<16x16xf32>
      %645 = vector.broadcast %643 : f32 to vector<16x16xf32>
      %646 = arith.mulf %645, %644 : vector<16x16xf32>
      %647 = arith.addf %637, %646 : vector<16x16xf32>
      %c27 = arith.constant 27 : index
      %648 = memref.load %arg2[%c27] : memref<98xf32, #tpu.memory_space<smem>>
      %649 = vector.extract_strided_slice %616 {offsets = [3, 0], sizes = [16, 16], strides = [1, 1]} : vector<22x16xf32> to vector<16x16xf32>
      %650 = vector.broadcast %648 : f32 to vector<16x16xf32>
      %651 = arith.mulf %650, %649 : vector<16x16xf32>
      %652 = arith.addf %642, %651 : vector<16x16xf32>
      %c76 = arith.constant 76 : index
      %653 = memref.load %arg2[%c76] : memref<98xf32, #tpu.memory_space<smem>>
      %654 = vector.extract_strided_slice %617 {offsets = [3, 0], sizes = [16, 16], strides = [1, 1]} : vector<22x16xf32> to vector<16x16xf32>
      %655 = vector.broadcast %653 : f32 to vector<16x16xf32>
      %656 = arith.mulf %655, %654 : vector<16x16xf32>
      %657 = arith.addf %647, %656 : vector<16x16xf32>
      %c34 = arith.constant 34 : index
      %658 = memref.load %arg2[%c34] : memref<98xf32, #tpu.memory_space<smem>>
      %659 = vector.extract_strided_slice %616 {offsets = [4, 0], sizes = [16, 16], strides = [1, 1]} : vector<22x16xf32> to vector<16x16xf32>
      %660 = vector.broadcast %658 : f32 to vector<16x16xf32>
      %661 = arith.mulf %660, %659 : vector<16x16xf32>
      %662 = arith.addf %652, %661 : vector<16x16xf32>
      %c83 = arith.constant 83 : index
      %663 = memref.load %arg2[%c83] : memref<98xf32, #tpu.memory_space<smem>>
      %664 = vector.extract_strided_slice %617 {offsets = [4, 0], sizes = [16, 16], strides = [1, 1]} : vector<22x16xf32> to vector<16x16xf32>
      %665 = vector.broadcast %663 : f32 to vector<16x16xf32>
      %666 = arith.mulf %665, %664 : vector<16x16xf32>
      %667 = arith.addf %657, %666 : vector<16x16xf32>
      %c41 = arith.constant 41 : index
      %668 = memref.load %arg2[%c41] : memref<98xf32, #tpu.memory_space<smem>>
      %669 = vector.extract_strided_slice %616 {offsets = [5, 0], sizes = [16, 16], strides = [1, 1]} : vector<22x16xf32> to vector<16x16xf32>
      %670 = vector.broadcast %668 : f32 to vector<16x16xf32>
      %671 = arith.mulf %670, %669 : vector<16x16xf32>
      %672 = arith.addf %662, %671 : vector<16x16xf32>
      %c90 = arith.constant 90 : index
      %673 = memref.load %arg2[%c90] : memref<98xf32, #tpu.memory_space<smem>>
      %674 = vector.extract_strided_slice %617 {offsets = [5, 0], sizes = [16, 16], strides = [1, 1]} : vector<22x16xf32> to vector<16x16xf32>
      %675 = vector.broadcast %673 : f32 to vector<16x16xf32>
      %676 = arith.mulf %675, %674 : vector<16x16xf32>
      %677 = arith.addf %667, %676 : vector<16x16xf32>
      %c48_171 = arith.constant 48 : index
      %678 = memref.load %arg2[%c48_171] : memref<98xf32, #tpu.memory_space<smem>>
      %679 = vector.extract_strided_slice %616 {offsets = [6, 0], sizes = [16, 16], strides = [1, 1]} : vector<22x16xf32> to vector<16x16xf32>
      %680 = vector.broadcast %678 : f32 to vector<16x16xf32>
      %681 = arith.mulf %680, %679 : vector<16x16xf32>
      %682 = arith.addf %672, %681 : vector<16x16xf32>
      %c97 = arith.constant 97 : index
      %683 = memref.load %arg2[%c97] : memref<98xf32, #tpu.memory_space<smem>>
      %684 = vector.extract_strided_slice %617 {offsets = [6, 0], sizes = [16, 16], strides = [1, 1]} : vector<22x16xf32> to vector<16x16xf32>
      %685 = vector.broadcast %683 : f32 to vector<16x16xf32>
      %686 = arith.mulf %685, %684 : vector<16x16xf32>
      %687 = arith.addf %677, %686 : vector<16x16xf32>
      %688 = arith.addf %682, %687 : vector<16x16xf32>
      %689 = arith.negf %688 : vector<16x16xf32>
      %690 = math.exp %689 : vector<16x16xf32>
      %cst_172 = arith.constant 1.000000e+00 : f32
      %691 = vector.broadcast %cst_172 : f32 to vector<16x16xf32>
      %692 = arith.addf %691, %690 : vector<16x16xf32>
      %693 = arith.divf %691, %692 : vector<16x16xf32>
      %c0_173 = arith.constant 0 : index
      %c0_174 = arith.constant 0 : index
      %c0_175 = arith.constant 0 : index
      %694 = vector.load %arg4[%c0_173, %c0_174, %c0_175] : memref<1x16x16xf32, #tpu.memory_space<vmem>>, vector<1x16x16xf32>
      %695 = vector.shape_cast %694 : vector<1x16x16xf32> to vector<16x16xf32>
      %696 = vector.shape_cast %693 : vector<16x16xf32> to vector<1x16x16xf32>
      tpu.vector_store %arg4[%c0_173, %c0_174, %c0_175], %696 {strides = array<i32>} : memref<1x16x16xf32, #tpu.memory_space<vmem>>, vector<1x16x16xf32>,
    } else {
    }
    return
  }
  func.func @transform_0(%arg0: i32, %arg1: i32, %arg2: memref<98xf32, #tpu.memory_space<smem>>) -> (i32, i32, i32) {
    %c0_i32 = arith.constant 0 : i32
    %c0_i32_0 = arith.constant 0 : i32
    return %arg0, %arg1, %c0_i32 : i32, i32, i32
  }
  func.func @transform_1(%arg0: i32, %arg1: i32, %arg2: memref<98xf32, #tpu.memory_space<smem>>) -> (i32, i32, i32) {
    %c0_i32 = arith.constant 0 : i32
    %c0_i32_0 = arith.constant 0 : i32
    %c0_i32_1 = arith.constant 0 : i32
    return %arg0, %c0_i32, %c0_i32_0 : i32, i32, i32
  }
}

</mosaic_0001>

<bundles_post_ra>
// kernel: tpu_custom_call.1
= control target key start
LH: loop header
LB: loop body
LE: loop exit
PB: predicated region body
PF: predicated region fallthrough
CT: control target
= control target key end

     0   :  { %s5275_s0 = inlined_call_operand.hbm [shape: f32[98], index: 0, kind: input, shape index: {}]   ;;  %s5276_s1 = inlined_call_operand.hbm [shape: f32[2,4,256], index: 1, kind: input, shape index: {}]   ;;  %s5277_s2 = inlined_call_operand.hbm [shape: f32[2,16,16], index: 2, kind: output, shape index: {}]  }
   0x1   :  { %5301 = sst [smem:[#allocation68_spill]] %s5276_s1  ;;  %s2857_s11 = scalar_lea.hbm %s5275_s0, 16 }
   0x2   :  { %p2858_p0 = scmp.ne.s32.totalorder %s5275_s0, %s2857_s11  ;;  %p2861_p1 = scmp.lt.u32.totalorder %s2857_s11, %s5275_s0 }
   0x4   :  { %p2863_p2 = pnand %p2861_p1, %p2858_p0 }
   0x6   :  { %2866 = shalt.err (!%p2863_p2)  }
   0x7   :  { %s2983_s16 = smov [#allocation7]  }
   0x8   :  { %8 = dma.hbm_to_smem %s5275_s0, 16, %s2983_s16, [#allocation6] }
   0x9   :  { %2949 = dma.done.wait [#allocation6], 16 }
   0xa   :  { %2950 = vsyncadd [#allocation6], 4294967280 }
   0xb   :  { %10 = sfence }
   0xc   :  { %11 = vsyncpa [#allocation9], 0 }
   0xd   :  { %13 = vsyncpa [#allocation9 + $0x1], 0 }
   0xe   :  { %14 = vsyncpa [#allocation10], 0 }
   0xf   :  { %16 = vsyncpa [#allocation10 + $0x1], 0  ;;  %s3031_s19 = smov 0   ;;  %s3033_s20 = smov 0  }
  0x10   :  { %s3035_s21 = smov 0   ;;  %s3037_s22 = smov 0  }
  0x11   :  { %s3039_s23 = smov 0   ;;  %s3041_s24 = smov 0  }
  0x12 LB: > { %5302 = sst [smem:[#allocation15_spill]] %s2965_s20  ;;  %s2607_s0 = sadd.s32 4294967295, %s2981_s24   ;;  %s2981_s24 = sphi %s3041_s24, %s22_s24   ;;  %s2977_s23 = sphi %s3039_s23, %s5492_s23   ;;  %s2973_s22 = sphi %s3037_s22, %s5491_s22   ;;  %s2969_s21 = sphi %s3035_s21, %s5490_s21   ;;  %s2965_s20 = sphi %s3033_s20, %s5489_s20   ;;  %s2961_s19 = sphi %s3031_s19, %s5488_s19  }
  0x13   : > { %5303 = sst [smem:[#allocation16_spill]] %s2969_s21  ;;  %s2608_s25 = sadd.s32 4294967294, %s2981_s24  }
  0x14   : > { %5304 = sst [smem:[#allocation17_spill]] %s2977_s23  ;;  %s34_s26 = sadd.s32 1, %s2977_s23 }
  0x15   : > { %5305 = sst [smem:[#allocation18_spill]] %s2981_s24  ;;  %s43_s27 = sadd.s32 1, %s2969_s21 }
  0x16   : > { %p36_p3 = scmp.ge.s32.totalorder %s34_s26, 2  ;;  %p50_p4 = scmp.ne.s32.totalorder %s2969_s21, %s2965_s20 }
  0x17   : > { %p51_p5 = scmp.eq.s32.totalorder %s2981_s24, 0  ;;  %p56_p6 = scmp.ne.s32.totalorder %s2965_s20, %s2961_s19 }
  0x18   : > { %s5494_s26 = smov (%p36_p3, %s34_s26), 0  ;;  %p57_p8 = scmp.eq.s32.totalorder %s2607_s0, 0 }
  0x19   : > { %5306 = sst [smem:[#allocation19_spill]] %s5494_s26  ;;  %p3072_p7 = por %p51_p5, %p50_p4 }
  0x1a   : > { %s38_s29 = ssub.s32 %s2977_s23, %s5494_s26  ;;  %p80_p9 = scmp.eq.s32.totalorder %s2607_s0, 1 }
  0x1b   : > { %p41_p10 = scmp.eq.s32.totalorder %s38_s29, 0  ;;  %p3078_p11 = por %p57_p8, %p56_p6 }
  0x1c   : > { %p3082_p12 = por %p80_p9, %p50_p4  ;;  %p86_p13 = scmp.eq.s32.totalorder %s2608_s25, 1 }
  0x1d   : > { %s3087_s4 = scalar_select %p41_p10, %s2969_s21, %s43_s27  }
  0x1e   : > { %s5309_s3 = scalar_select %p3082_p12, 1, 0 }
  0x1f   : > { %5310 = sst [smem:[#allocation20_spill]] %s3087_s4  ;;  %p3089_p0 = por %p86_p13, %p56_p6 }
  0x20   : > { %p2767_p2 = scmp.lt.s32.totalorder %s2981_s24, 2  ;;  %s106_s6 = sand.u32 1, %s2969_s21  }
  0x21   : > { %s5311_s5 = scalar_select %p3089_p0, 1, 0 }
  0x22   : > { %s2611_s7 = sshll.u32 %s106_s6, 3  ;;  %s2753_s8 = sshll.u32 %s2977_s23, 7 }
  0x23   : > { %s5312_s1 = sld [smem:[#allocation68_spill]]  ;;  %s110_s12 = scalar_lea.vmem [#allocation8], %s2611_s7 }
  0x24   : > { %s120_s13 = sshll.u32 %s110_s12, 4  ;;  %p3106_p3 = pnand %p2767_p2, %p3072_p7  ;;  %s3102_s13 = int_to_ptr.vmem [resolvable:$true] %s120_s13 }
  0x25   : > { %s107_s15 = scalar_lea.sflag [#allocation9], %s106_s6 }
  0x26   : > { %p2869_p8 = pneg %p3106_p3 }
  0x29   : > { %s3100_s11 = scalar_lea.hbm %s5312_s1, %s2753_s8  ;;  %s2872_s0 = scalar_lea.hbm %s5312_s1, 256 }
  0x2a   : > { %s2867_s16 = scalar_lea.hbm %s3100_s11, 128  ;;  %p2873_p7 = scmp.lt.u32.totalorder %s3100_s11, %s5312_s1 }
  0x2b   : > { %p2868_p6 = scmp.ne.s32.totalorder %s3100_s11, %s2867_s16  ;;  %p2874_p13 = scmp.lt.u32.totalorder %s2872_s0, %s2867_s16 }
  0x2c   : > { %p2876_p1 = scmp.lt.u32.totalorder %s2867_s16, %s3100_s11 }
  0x2d   : > { %p2870_p9 = pnand %p2869_p8, %p2868_p6  ;;  %p2875_p2 = por %p2874_p13, %p2873_p7 }
  0x2f   : > { %p2871_p10 = pneg %p2870_p9  ;;  %p2877_p4 = por %p2876_p1, %p2875_p2 }
  0x31   : > { %p2878_p5 = pnand %p2877_p4, %p2871_p10 }
  0x33   : > { %2881 = shalt.err (!%p2878_p5)
}
  0x34   : > { %s2882_s28 = scalar_lea.vmem %s3102_s13, 128  ;;  %s2984_s29 = smov [#allocation8]  }
  0x35   : > { %p2883_p6 = scmp.ne.s32.totalorder %s3102_s13, %s2882_s28  ;;  %s2887_s6 = sshll.u32 %s2984_s29, 4  ;;  %s2888_s6 = int_to_ptr.vmem [resolvable:$false] %s2887_s6 }
  0x36   : > { %s2889_s7 = scalar_lea.vmem %s2888_s6, 256  ;;  %p2890_p12 = scmp.lt.s32.totalorder %s3102_s13, %s2888_s6 }
  0x37   : > { %p2885_p9 = pnand %p2883_p6, %p2869_p8  ;;  %p2891_p7 = scmp.lt.s32.totalorder %s2889_s7, %s2882_s28 }
  0x39   : > { %p2886_p0 = pneg %p2885_p9  ;;  %p2892_p13 = por %p2891_p7, %p2890_p12 }
  0x3b   : > { %p2893_p1 = pnand %p2892_p13, %p2886_p0 }
  0x3d   : > { %2896 = shalt.err (!%p2893_p1)
}
  0x3e   : > { %2762 = dma.hbm_to_vmem [thread:$0]  (!%p3106_p3), %s3100_s11, 128, %s3102_s13, %s107_s15  }
  0x3f   : > { %p5314_p4 = scmp.lt.s32.totalorder %s2981_s24, 3  ;;  %p5315_p5 = scmp.ge.s32.totalorder %s2981_s24, 1 }
  0x41   : > { %p126_p8 = pnand %p5315_p5, %p5314_p4 }
  0x43   : > { %129 = sbr.rel (%p126_p8) target bundleno = 785 (0x311), region = 24 }
  0x4a   : > { %s3142_s8 = sand.u32 1, %s2965_s20  }
  0x4b   : > { %s2615_s9 = sshll.u32 %s3142_s8, 3  ;;  %s132_s10 = scalar_lea.sflag [#allocation9], %s3142_s8 }
  0x4c   : > { %s135_s12 = scalar_lea.vmem [#allocation8], %s2615_s9 }
  0x4d   : > { %2952 = dma.done.wait (%p3078_p11), %s132_s10, 128  }
  0x4e   : > { %2954 = vsyncadd (%p3078_p11), %s132_s10, 4294967168  ;;  %vm163_vm0 = vcmask 23552   ;;  %vm166_vm1 = vcmask 179352   ;;  %v2985_v0 = vmov 0.0   ;;  %v175_v1 = vld [vmem:[%s135_s12] sm:$0xff]  ;;  %vm189_vm2 = vcmask 1043456  }
  0x4f   : > { %164 = vst.msk [vmem:[#allocation4 + $0x3] sm:$0xff] %vm163_vm0, %v2985_v0  ;;  %165 = vst.msk [vmem:[#allocation4 + $0xb] sm:$0xff] %vm163_vm0, %v2985_v0  ;;  %v187_v2 = vcombine.high %v175_v1, %v175_v1  ;;  %v190_v3 = vsel %vm189_vm2, %v175_v1, 0.0  ;;  %v231_v4 = vsel %vm189_vm2, %v175_v1, -inf  ;;  %v2986_v13 = vmov 1966171168  }
  0x50   : > { %171 = vst.msk [vmem:[#allocation5 + $0x3] sm:$0xff] %vm163_vm0, %v2985_v0  ;;  %172 = vst.msk [vmem:[#allocation5 + $0xb] sm:$0xff] %vm163_vm0, %v2985_v0  ;;  %v191_v5 = vrot.slane %v190_v3, 4  ;;  %v232_v6 = vrot.slane %v231_v4, 4  ;;  %v208_v14 = vunpack.c.l.s4 %v2986_v13  ;;  %v210_v15 = vlaneseq  ;;  %s2987_s30 = smov 115   ;;  %s2988_s11 = smov 3  }
  0x51   : > { %167 = vst.msk [vmem:[#allocation4 + $0x3] sm:$0xff] %vm166_vm1, %v2985_v0  ;;  %168 = vst.msk [vmem:[#allocation4 + $0xb] sm:$0xff] %vm166_vm1, %v2985_v0  ;;  %v197_v7 = vsel %vm189_vm2, %v187_v2, 0.0  ;;  %v238_v8 = vsel %vm189_vm2, %v187_v2, -inf  ;;  %vm160_vm4 = vcmask 174080   ;;  %s2989_s13 = smov 99  }
  0x52   : > { %173 = vst.msk [vmem:[#allocation5 + $0x3] sm:$0xff] %vm166_vm1, %v2985_v0  ;;  %174 = vst.msk [vmem:[#allocation5 + $0xb] sm:$0xff] %vm166_vm1, %v2985_v0  ;;  %v192_v9 = vadd.f32 %v191_v5, %v190_v3  ;;  %v198_v10 = vrot.slane %v197_v7, 4  ;;  %v233_v11 = vmax.f32 %v231_v4, %v232_v6  ;;  %v239_v12 = vrot.slane %v238_v8, 4  ;;  %s2990_s14 = smov 83   ;;  %s2991_s15 = smov 67  }
  0x53   : > { %178 = vst [vmem:[#allocation2] sm:$0xff] %v175_v1  ;;  %181 = vst [vmem:[#allocation3] sm:$0xff] %v175_v1  ;;  %v209_v24 = vunpack.c.0.s8 %v208_v14  ;;  %v211_v25 = vshrl.u32 %v210_v15, 7  ;;  %vm224_vm3 = vcmp.lt.s32.totalorder %v210_v15, 256  ;;  %s2992_s16 = smov 51   ;;  %s2993_s17 = smov 35  }
  0x54   : > { %v193_v16 = vrot.slane %v192_v9, 2  ;;  %v199_v17 = vadd.f32 %v198_v10, %v197_v7  ;;  %v234_v18 = vrot.slane %v233_v11, 2  ;;  %v240_v19 = vmax.f32 %v238_v8, %v239_v12  ;;  %169 = vst.msk [vmem:[#allocation5] sm:$0x7] %vm160_vm4, %v2985_v0  ;;  %161 = vst.msk [vmem:[#allocation4] sm:$0x7] %vm160_vm4, %v2985_v0 }
  0x55   : > { %v212_v35 = vsub.s32 %v209_v24, %v211_v25  ;;  %162 = vst.msk [vmem:[#allocation4 + $0x13] sm:$0x7] %vm160_vm4, %v2985_v0  ;;  %170 = vst.msk [vmem:[#allocation5 + $0x13] sm:$0x7] %vm160_vm4, %v2985_v0  ;;  %s2994_s18 = smov 19   ;;  %vm273_vm5 = vcmask 147480  }
  0x56   : > { %v194_v20 = vadd.f32 %v193_v16, %v192_v9  ;;  %v200_v21 = vrot.slane %v199_v17, 2  ;;  %v235_v22 = vmax.f32 %v233_v11, %v234_v18  ;;  %v241_v23 = vrot.slane %v240_v19, 2  ;;  %s3182_s0 = sld [smem:[#allocation7 + $0x1]]  ;;  %s3186_s25 = sld [smem:[#allocation7 + $0x32]] }
  0x57   : > { %s3191_s27 = sld [smem:[#allocation7 + $0x2]]  ;;  %s3203_s28 = sld [smem:[#allocation7 + $0x33]]  ;;  %vm611_vm6 = vcmask 1046528   ;;  %vm646_vm7 = vcmask 1045504   ;;  %vm681_vm8 = vcmask 1044480   ;;  %vm750_vm9 = vcmask 1042432  }
  0x58   : > { %v195_v26 = vrot.slane %v194_v20, 1  ;;  %v201_v27 = vadd.f32 %v200_v21, %v199_v17  ;;  %v236_v28 = vrot.slane %v235_v22, 1  ;;  %v242_v29 = vmax.f32 %v240_v19, %v241_v23  ;;  %s2995_s29 = smov 127   ;;  %s3212_s6 = sld [smem:[#allocation7 + $0x3]] }
  0x59   : > { %s2996_s7 = smov 126   ;;  %s5279_s9 = smov 125   ;;  %vm785_vm10 = vcmask 1041408   ;;  %vm2506_vm11 = vcmask 130048  }
  0x5a   : > { %v196_v30 = vadd.f32 %v195_v26, %v194_v20  ;;  %v202_v31 = vrot.slane %v201_v27, 1  ;;  %v237_v32 = vmax.f32 %v235_v22, %v236_v28  ;;  %v243_v33 = vrot.slane %v242_v29, 1  ;;  %s2664_s10 = sld [smem:[#allocation7 + $0x8]]  ;;  %s2665_s12 = sld [smem:[#allocation7 + $0x39]] }
  0x5b   : > { %s5336_s1 = smov 125   ;;  %s3866_s26 = sld [smem:[#allocation7 + $0x12]] }
  0x5c   : > { %v203_v34 = vadd.f32 %v202_v31, %v201_v27  ;;  %v244_v36 = vmax.f32 %v242_v29, %v243_v33  ;;  %v813_v59 = vstv %s3182_s0  ;;  %v827_v1 = vstv %s3186_s25  ;;  %s2674_s0 = sld [smem:[#allocation7 + $0x2b]]  ;;  %s2675_s25 = sld [smem:[#allocation7 + $0x5c]] }
  0x5d   : > { %v1093_v5 = vstv %s3191_s27  ;;  %v1107_v9 = vstv %s3203_s28  ;;  %s2678_s27 = sld [smem:[#allocation7 + $0x9]]  ;;  %s2679_s28 = sld [smem:[#allocation7 + $0x3a]] }
  0x5e   : > { %v206_v37 = vcombine.low %v196_v30, %v203_v34  ;;  %v247_v38 = vcombine.low %v237_v32, %v244_v36  ;;  %v1373_v13 = vstv %s3212_s6  ;;  %s2680_s6 = sld [smem:[#allocation7 + $0x10]]  ;;  %s3868_s23 = sld [smem:[#allocation7 + $0x43]] }
  0x5f   : > { %s3871_s4 = sld [smem:[#allocation7 + $0x19]]  ;;  %s3873_s21 = sld [smem:[#allocation7 + $0x4a]] }
  0x60   : > { %v213_v39 = vrot.slane %v206_v37, %v212_v35  ;;  %v254_v40 = vrot.slane %v247_v38, %v212_v35  ;;  %v841_v23 = vstv %s2664_s10  ;;  %v862_v29 = vstv %s2665_s12  ;;  %s2681_s10 = sld [smem:[#allocation7 + $0x41]]  ;;  %s2682_s12 = sld [smem:[#allocation7 + $0x17]] }
  0x61   : > { %s3887_s20 = sld [smem:[#allocation7 + $0x20]]  ;;  %s3889_s24 = sld [smem:[#allocation7 + $0x51]] }
  0x62   : > { %v220_v41 = vrot.slane %v213_v39, %v212_v35  ;;  %v261_v42 = vrot.slane %v254_v40, %v212_v35  ;;  %p5484_p12 = scmp.ne.s32.totalorder %s5309_s3, 0 }
  0x64   : > { %226 = vst.msk [vmem:[#allocation2] ss:$4 sm:$0x3] %vm224_vm3, %v220_v41  ;;  %263 = vst.msk [vmem:[#allocation3] ss:$4 sm:$0x3] %vm224_vm3, %v261_v42 }
  0x6b   : > { %v2619_v43 = vld [vmem:[#allocation2] ss:$0 sm:$0xff]  ;;  %v2620_v44 = vld [vmem:[#allocation3] ss:$0 sm:$0xff]  ;;  %v2634_v45 = vld [vmem:[#allocation3 + $0x4] ss:$0 sm:$0xff] }
  0x6c   : > { %291 = vrot.lane.b32.xlu1 %v2619_v43, %s2987_s30  ;;  %270 = vrot.lane.b32.xlu0 %v2619_v43, %s2988_s11  ;;  %v2633_v46 = vld [vmem:[#allocation2 + $0x4] ss:$0 sm:$0xff] }
  0x70   : > { %301 = vrot.lane.b32.xlu1 %v2620_v44, %s2987_s30  ;;  %281 = vrot.lane.b32.xlu0 %v2620_v44, %s2988_s11 }
  0x74   : > { %321 = vrot.lane.b32.xlu1 %v2620_v44, %s2989_s13  ;;  %311 = vrot.lane.b32.xlu0 %v2619_v43, %s2989_s13 }
  0x78   : > { %341 = vrot.lane.b32.xlu1 %v2620_v44, %s2990_s14  ;;  %331 = vrot.lane.b32.xlu0 %v2619_v43, %s2990_s14 }
  0x7c   : > { %361 = vrot.lane.b32.xlu1 %v2620_v44, %s2991_s15  ;;  %351 = vrot.lane.b32.xlu0 %v2619_v43, %s2991_s15 }
  0x80   : > { %381 = vrot.lane.b32.xlu1 %v2620_v44, %s2992_s16  ;;  %371 = vrot.lane.b32.xlu0 %v2619_v43, %s2992_s16 }
  0x84   : > { %401 = vrot.lane.b32.xlu1 %v2620_v44, %s2993_s17  ;;  %391 = vrot.lane.b32.xlu0 %v2619_v43, %s2993_s17 }
  0x88   : > { %421 = vrot.lane.b32.xlu1 %v2620_v44, %s2994_s18  ;;  %411 = vrot.lane.b32.xlu0 %v2619_v43, %s2994_s18 }
  0x8c   : > { %441 = vrot.lane.b32.xlu1 %v2634_v45, %s2988_s11  ;;  %431 = vrot.lane.b32.xlu0 %v2633_v46, %s2988_s11  ;;  %s2667_s11 = sld [smem:[#allocation7 + $0x40]] }
  0x90   : > { %461 = vrot.lane.b32.xlu1 %v2634_v45, %s2987_s30  ;;  %451 = vrot.lane.b32.xlu0 %v2633_v46, %s2987_s30  ;;  %s2666_s30 = sld [smem:[#allocation7 + $0xf]] }
  0x94   : > { %481 = vrot.lane.b32.xlu1 %v2634_v45, %s2989_s13  ;;  %471 = vrot.lane.b32.xlu0 %v2633_v46, %s2989_s13  ;;  %s2668_s13 = sld [smem:[#allocation7 + $0x16]] }
  0x96   : > { %v883_v38 = vstv %s2666_s30  ;;  %s2683_s30 = sld [smem:[#allocation7 + $0x48]] }
  0x98   : > { %501 = vrot.lane.b32.xlu1 %v2634_v45, %s2990_s14  ;;  %491 = vrot.lane.b32.xlu0 %v2633_v46, %s2990_s14  ;;  %s2669_s14 = sld [smem:[#allocation7 + $0x47]] }
  0x9c   : > { %521 = vrot.lane.b32.xlu1 %v2634_v45, %s2991_s15  ;;  %511 = vrot.lane.b32.xlu0 %v2633_v46, %s2991_s15  ;;  %s2670_s15 = sld [smem:[#allocation7 + $0x1d]] }
  0xa0   : > { %541 = vrot.lane.b32.xlu1 %v2634_v45, %s2992_s16  ;;  %531 = vrot.lane.b32.xlu0 %v2633_v46, %s2992_s16  ;;  %s2671_s16 = sld [smem:[#allocation7 + $0x4e]] }
  0xa4   : > { %561 = vrot.lane.b32.xlu1 %v2634_v45, %s2993_s17  ;;  %551 = vrot.lane.b32.xlu0 %v2633_v46, %s2993_s17  ;;  %s2672_s17 = sld [smem:[#allocation7 + $0x24]] }
  0xa8   : > { %581 = vrot.lane.b32.xlu1 %v2634_v45, %s2994_s18  ;;  %571 = vrot.lane.b32.xlu0 %v2633_v46, %s2994_s18  ;;  %v904_v45 = vstv %s2667_s11  ;;  %s2673_s18 = sld [smem:[#allocation7 + $0x55]]  ;;  %s2684_s11 = sld [smem:[#allocation7 + $0x1e]] }
  0xde   : > { %v292_v47 = vpop.permute.xlu1 %291  ;;  %v271_v48 = vpop.permute.xlu0 %270 }
  0xdf   : > { %294 = vst.msk [vmem:[#allocation4 + $0x4] sm:$0x1] %vm273_vm5, %v292_v47  ;;  %274 = vst.msk [vmem:[#allocation4 + $0x3] sm:$0x1] %vm273_vm5, %v271_v48 }
  0xe2   : > { %v302_v49 = vpop.permute.xlu1 %301  ;;  %v282_v50 = vpop.permute.xlu0 %281 }
  0xe3   : > { %304 = vst.msk [vmem:[#allocation5 + $0x4] sm:$0x1] %vm273_vm5, %v302_v49  ;;  %284 = vst.msk [vmem:[#allocation5 + $0x3] sm:$0x1] %vm273_vm5, %v282_v50 }
  0xe6   : > { %v322_v51 = vpop.permute.xlu1 %321  ;;  %v312_v52 = vpop.permute.xlu0 %311 }
  0xe7   : > { %324 = vst.msk [vmem:[#allocation5 + $0x5] sm:$0x1] %vm273_vm5, %v322_v51  ;;  %314 = vst.msk [vmem:[#allocation4 + $0x5] sm:$0x1] %vm273_vm5, %v312_v52 }
  0xea   : > { %v342_v53 = vpop.permute.xlu1 %341  ;;  %v332_v54 = vpop.permute.xlu0 %331 }
  0xeb   : > { %344 = vst.msk [vmem:[#allocation5 + $0x6] sm:$0x1] %vm273_vm5, %v342_v53  ;;  %334 = vst.msk [vmem:[#allocation4 + $0x6] sm:$0x1] %vm273_vm5, %v332_v54  ;;  %v925_v53 = vstv %s2668_s13  ;;  %s2685_s13 = sld [smem:[#allocation7 + $0x4f]] }
  0xee   : > { %v362_v55 = vpop.permute.xlu1 %361  ;;  %v352_v56 = vpop.permute.xlu0 %351 }
  0xef   : > { %364 = vst.msk [vmem:[#allocation5 + $0x7] sm:$0x1] %vm273_vm5, %v362_v55  ;;  %354 = vst.msk [vmem:[#allocation4 + $0x7] sm:$0x1] %vm273_vm5, %v352_v56 }
  0xf2   : > { %v382_v57 = vpop.permute.xlu1 %381  ;;  %v372_v58 = vpop.permute.xlu0 %371 }
  0xf3   : > { %384 = vst.msk [vmem:[#allocation5 + $0x8] sm:$0x1] %vm273_vm5, %v382_v57  ;;  %374 = vst.msk [vmem:[#allocation4 + $0x8] sm:$0x1] %vm273_vm5, %v372_v58 }
  0xf6   : > { %v3193_v60 = vld [vmem:[#allocation4] sm:$0xff]  ;;  %v402_v61 = vpop.permute.xlu1 %401  ;;  %v392_v62 = vpop.permute.xlu0 %391  ;;  %v3200_v0 = vld [vmem:[#allocation5] sm:$0xff] }
  0xf7   : > { %404 = vst.msk [vmem:[#allocation5 + $0x9] sm:$0x1] %vm273_vm5, %v402_v61  ;;  %394 = vst.msk [vmem:[#allocation4 + $0x9] sm:$0x1] %vm273_vm5, %v392_v62  ;;  %v814_v63 = vmul.f32 %v813_v59, %v3193_v60  ;;  %v828_v4 = vmul.f32 %v827_v1, %v3200_v0  ;;  %v1094_v8 = vmul.f32 %v1093_v5, %v3193_v60 }
  0xf8   : > { %v1108_v12 = vmul.f32 %v1107_v9, %v3200_v0  ;;  %v1374_v16 = vmul.f32 %v1373_v13, %v3193_v60  ;;  %v842_v24 = vmul.f32 %v841_v23, %v3193_v60  ;;  %v863_v35 = vmul.f32 %v862_v29, %v3200_v0 }
  0xf9   : > { %818 = vrot.lane.b32.xlu0 %v814_v63, %s2995_s29  ;;  %v884_v44 = vmul.f32 %v883_v38, %v3193_v60  ;;  %v905_v51 = vmul.f32 %v904_v45, %v3200_v0  ;;  %v926_v62 = vmul.f32 %v925_v53, %v3193_v60  ;;  %v946_v63 = vstv %s2669_s14  ;;  %s2686_s14 = sld [smem:[#allocation7 + $0x25]] }
  0xfa   : > { %v422_v2 = vpop.permute.xlu1 %421  ;;  %v412_v3 = vpop.permute.xlu0 %411  ;;  %v848_v33 = vrot.slane %v842_v24, 1  ;;  %v869_v43 = vrot.slane %v863_v35, 1 }
  0xfb   : > { %424 = vst.msk [vmem:[#allocation5 + $0xa] sm:$0x1] %vm273_vm5, %v422_v2  ;;  %414 = vst.msk [vmem:[#allocation4 + $0xa] sm:$0x1] %vm273_vm5, %v412_v3  ;;  %v890_v50 = vrot.slane %v884_v44, 2  ;;  %v911_v61 = vrot.slane %v905_v51, 2 }
  0xfd   : > { %832 = vrot.lane.b32.xlu0 %v828_v4, %s2995_s29 }
  0xfe   : > { %v442_v6 = vpop.permute.xlu1 %441  ;;  %v432_v7 = vpop.permute.xlu0 %431 }
  0xff   : > { %444 = vst.msk [vmem:[#allocation5 + $0xb] sm:$0x1] %vm273_vm5, %v442_v6  ;;  %434 = vst.msk [vmem:[#allocation4 + $0xb] sm:$0x1] %vm273_vm5, %v432_v7  ;;  %v932_v7 = vrot.slane %v926_v62, 3 }
 0x101   : > { %1098 = vrot.lane.b32.xlu0 %v1094_v8, %s2996_s7  ;;  %v947_v8 = vmul.f32 %v946_v63, %v3200_v0 }
 0x102   : > { %v462_v10 = vpop.permute.xlu1 %461  ;;  %v452_v11 = vpop.permute.xlu0 %451 }
 0x103   : > { %464 = vst.msk [vmem:[#allocation5 + $0xc] sm:$0x1] %vm273_vm5, %v462_v10  ;;  %454 = vst.msk [vmem:[#allocation4 + $0xc] sm:$0x1] %vm273_vm5, %v452_v11 }
 0x105   : > { %1112 = vrot.lane.b32.xlu0 %v1108_v12, %s2996_s7 }
 0x106   : > { %v482_v14 = vpop.permute.xlu1 %481  ;;  %v472_v15 = vpop.permute.xlu0 %471 }
 0x107   : > { %484 = vst.msk [vmem:[#allocation5 + $0xd] sm:$0x1] %vm273_vm5, %v482_v14  ;;  %474 = vst.msk [vmem:[#allocation4 + $0xd] sm:$0x1] %vm273_vm5, %v472_v15 }
 0x109   : > { %1378 = vrot.lane.b32.xlu0 %v1374_v16, %s5279_s9  ;;  %v953_v16 = vrot.slane %v947_v8, 3 }
 0x10a   : > { %v502_v17 = vpop.permute.xlu1 %501  ;;  %v492_v18 = vpop.permute.xlu0 %491 }
 0x10b   : > { %504 = vst.msk [vmem:[#allocation5 + $0xe] sm:$0x1] %vm273_vm5, %v502_v17  ;;  %494 = vst.msk [vmem:[#allocation4 + $0xe] sm:$0x1] %vm273_vm5, %v492_v18  ;;  %v988_v18 = vstv %s2671_s16  ;;  %s2689_s16 = sld [smem:[#allocation7 + $0x5d]] }
 0x10e   : > { %v522_v19 = vpop.permute.xlu1 %521  ;;  %v512_v20 = vpop.permute.xlu0 %511 }
 0x10f   : > { %524 = vst.msk [vmem:[#allocation5 + $0xf] sm:$0x1] %vm273_vm5, %v522_v19  ;;  %514 = vst.msk [vmem:[#allocation4 + $0xf] sm:$0x1] %vm273_vm5, %v512_v20 }
 0x112   : > { %v542_v21 = vpop.permute.xlu1 %541  ;;  %v532_v22 = vpop.permute.xlu0 %531 }
 0x113   : > { %544 = vst.msk [vmem:[#allocation5 + $0x10] sm:$0x1] %vm273_vm5, %v542_v21  ;;  %534 = vst.msk [vmem:[#allocation4 + $0x10] sm:$0x1] %vm273_vm5, %v532_v22 }
 0x116   : > { %v3242_v25 = vld [vmem:[#allocation5 + $0x8] sm:$0xff]  ;;  %v3244_v26 = vld [vmem:[#allocation4 + $0x8] sm:$0xff]  ;;  %v562_v27 = vpop.permute.xlu1 %561  ;;  %v552_v28 = vpop.permute.xlu0 %551 }
 0x117   : > { %564 = vst.msk [vmem:[#allocation5 + $0x11] sm:$0x1] %vm273_vm5, %v562_v27  ;;  %554 = vst.msk [vmem:[#allocation4 + $0x11] sm:$0x1] %vm273_vm5, %v552_v28  ;;  %v815_v30 = vmul.f32 %v813_v59, %v3244_v26  ;;  %v3252_v31 = vmul.f32 %v841_v23, %v3244_v26  ;;  %v3255_v32 = vmul.f32 %v862_v29, %v3242_v25 }
 0x118   : > { %v829_v40 = vmul.f32 %v827_v1, %v3242_v25  ;;  %v3268_v42 = vmul.f32 %v883_v38, %v3244_v26  ;;  %v1095_v47 = vmul.f32 %v1093_v5, %v3244_v26  ;;  %v3279_v49 = vmul.f32 %v904_v45, %v3242_v25 }
 0x119   : > { %820 = vrot.lane.b32.xlu1 %v815_v30, %s2995_s29  ;;  %v849_v34 = vrot.slane %v3252_v31, 1  ;;  %v870_v41 = vrot.slane %v3255_v32, 1  ;;  %v1109_v55 = vmul.f32 %v1107_v9, %v3242_v25  ;;  %v3294_v57 = vmul.f32 %v925_v53, %v3244_v26 }
 0x11a   : > { %v582_v36 = vpop.permute.xlu1 %581  ;;  %v572_v37 = vpop.permute.xlu0 %571  ;;  %v891_v48 = vrot.slane %v3268_v42, 2  ;;  %v912_v56 = vrot.slane %v3279_v49, 2  ;;  %v1375_v2 = vmul.f32 %v1373_v13, %v3244_v26  ;;  %v3310_v4 = vmul.f32 %v946_v63, %v3242_v25 }
 0x11b   : > { %584 = vst.msk [vmem:[#allocation5 + $0x12] sm:$0x1] %vm273_vm5, %v582_v36  ;;  %574 = vst.msk [vmem:[#allocation4 + $0x12] sm:$0x1] %vm273_vm5, %v572_v37  ;;  %v850_v39 = vsel %vm611_vm6, %v848_v33, %v849_v34  ;;  %v871_v46 = vsel %vm611_vm6, %v869_v43, %v870_v41  ;;  %v933_v3 = vrot.slane %v3294_v57, 3  ;;  %v967_v9 = vstv %s2670_s15  ;;  %s2688_s15 = sld [smem:[#allocation7 + $0x2c]] }
 0x11c   : > { %853 = vrot.lane.b32.xlu0 %v850_v39, %s2995_s29  ;;  %v892_v54 = vsel %vm646_vm7, %v890_v50, %v891_v48  ;;  %v913_v1 = vsel %vm646_vm7, %v911_v61, %v912_v56  ;;  %v954_v11 = vrot.slane %v3310_v4, 3  ;;  %v3321_v12 = vmul.f32 %v967_v9, %v3244_v26 }
 0x11d   : > { %834 = vrot.lane.b32.xlu1 %v829_v40, %s2995_s29  ;;  %v934_v10 = vsel %vm681_vm8, %v932_v7, %v933_v3  ;;  %v968_v17 = vmul.f32 %v967_v9, %v3193_v60  ;;  %v3333_v21 = vmul.f32 %v988_v18, %v3242_v25  ;;  %v989_v28 = vmul.f32 %v988_v18, %v3200_v0 }
 0x11e   : > { %v955_v19 = vsel %vm681_vm8, %v953_v16, %v954_v11  ;;  %v975_v20 = vrot.slane %v3321_v12, 4 }
 0x11f   : > { %v974_v27 = vrot.slane %v968_v17, 4  ;;  %v996_v31 = vrot.slane %v3333_v21, 4  ;;  %v995_v36 = vrot.slane %v989_v28, 4 }
 0x120   : > { %874 = vrot.lane.b32.xlu0 %v871_v46, %s2995_s29 }
 0x121   : > { %1100 = vrot.lane.b32.xlu1 %v1095_v47, %s2996_s7  ;;  %v976_v30 = vsel %vm189_vm2, %v974_v27, %v975_v20  ;;  %v997_v39 = vsel %vm189_vm2, %v995_v36, %v996_v31  ;;  %v1051_v47 = vstv %s2674_s0  ;;  %s2693_s0 = sld [smem:[#allocation7 + $0x3b]] }
 0x122   : > { %v3284_v52 = vld [vmem:[#allocation4 + $0x10] sm:$0x3f]  ;;  %v3298_v59 = vld [vmem:[#allocation5 + $0x10] sm:$0x3f]  ;;  %v3373_v49 = vmul.f32 %v1051_v47, %v3244_v26 }
 0x123   : > { %v844_v58 = vmul.f32 %v841_v23, %v3284_v52  ;;  %v865_v6 = vmul.f32 %v862_v29, %v3298_v59  ;;  %v886_v15 = vmul.f32 %v883_v38, %v3284_v52  ;;  %v907_v24 = vmul.f32 %v904_v45, %v3298_v59 }
 0x124   : > { %895 = vrot.lane.b32.xlu0 %v892_v54, %s2995_s29  ;;  %v1009_v29 = vstv %s2672_s17  ;;  %v928_v35 = vmul.f32 %v925_v53, %v3284_v52  ;;  %v1030_v38 = vstv %s2673_s18  ;;  %v949_v44 = vmul.f32 %v946_v63, %v3298_v59  ;;  %s2692_s17 = sld [smem:[#allocation7 + $0xa]]  ;;  %s3555_s18 = sld [smem:[#allocation7 + $0x34]] }
 0x125   : > { %1114 = vrot.lane.b32.xlu1 %v1109_v55, %s2996_s7  ;;  %v851_v5 = vrot.slane %v844_v58, 1  ;;  %v872_v14 = vrot.slane %v865_v6, 1  ;;  %v893_v23 = vrot.slane %v886_v15, 2  ;;  %v3345_v32 = vmul.f32 %v1009_v29, %v3244_v26 }
 0x126   : > { %v1010_v37 = vmul.f32 %v1009_v29, %v3193_v60  ;;  %v935_v43 = vrot.slane %v928_v35, 3  ;;  %v1031_v46 = vmul.f32 %v1030_v38, %v3200_v0  ;;  %v956_v53 = vrot.slane %v949_v44, 3 }
 0x127   : > { %v852_v13 = vsel %vm611_vm6, %v849_v34, %v851_v5  ;;  %v873_v22 = vsel %vm611_vm6, %v870_v41, %v872_v14  ;;  %v894_v33 = vsel %vm646_vm7, %v891_v48, %v893_v23  ;;  %v914_v34 = vrot.slane %v907_v24, 2 }
 0x128   : > { %916 = vrot.lane.b32.xlu0 %v913_v1, %s2995_s29  ;;  %v1017_v40 = vrot.slane %v3345_v32, 5  ;;  %v3359_v41 = vmul.f32 %v1030_v38, %v3242_v25  ;;  %v1016_v45 = vrot.slane %v1010_v37, 5  ;;  %v936_v51 = vsel %vm681_vm8, %v933_v3, %v935_v43 }
 0x129   : > { %1380 = vrot.lane.b32.xlu1 %v1375_v2, %s5279_s9  ;;  %v915_v42 = vsel %vm646_vm7, %v912_v56, %v914_v34  ;;  %v970_v54 = vmul.f32 %v967_v9, %v3284_v52  ;;  %v1037_v55 = vrot.slane %v1031_v46, 5  ;;  %v1052_v56 = vmul.f32 %v1051_v47, %v3193_v60 }
 0x12a   : > { %v1018_v48 = vsel %vm750_vm9, %v1016_v45, %v1017_v40  ;;  %v1038_v50 = vrot.slane %v3359_v41, 5  ;;  %v1072_v58 = vstv %s2675_s25  ;;  %v1059_v62 = vrot.slane %v3373_v49, 6  ;;  %s2694_s25 = sld [smem:[#allocation7 + $0x11]] }
 0x12b   : > { %v3387_v57 = vmul.f32 %v1072_v58, %v3242_v25  ;;  %v957_v63 = vsel %vm681_vm8, %v954_v11, %v956_v53  ;;  %v977_v1 = vrot.slane %v970_v54, 4  ;;  %v991_v2 = vmul.f32 %v988_v18, %v3298_v59 }
 0x12c   : > { %937 = vrot.lane.b32.xlu0 %v934_v10, %s2995_s29  ;;  %v1039_v61 = vsel %vm750_vm9, %v1037_v55, %v1038_v50  ;;  %v1058_v3 = vrot.slane %v1052_v56, 6  ;;  %v1073_v5 = vmul.f32 %v1072_v58, %v3200_v0  ;;  %v1121_v6 = vstv %s2678_s27  ;;  %s2695_s27 = sld [smem:[#allocation7 + $0x42]] }
 0x12d   : > { %855 = vrot.lane.b32.xlu1 %v852_v13, %s2995_s29  ;;  %v1080_v8 = vrot.slane %v3387_v57, 6  ;;  %v3401_v4 = vmul.f32 %v1121_v6, %v3244_v26  ;;  %v978_v9 = vsel %vm189_vm2, %v975_v20, %v977_v1  ;;  %v998_v10 = vrot.slane %v991_v2, 4 }
 0x12e   : > { %v1060_v7 = vsel %vm785_vm10, %v1058_v3, %v1059_v62  ;;  %v1012_v11 = vmul.f32 %v1009_v29, %v3284_v52  ;;  %v1079_v13 = vrot.slane %v1073_v5, 6  ;;  %v1122_v14 = vmul.f32 %v1121_v6, %v3193_v60 }
 0x12f   : > { %v1142_v15 = vstv %s2679_s28  ;;  %v1129_v17 = vrot.slane %v3401_v4, 1  ;;  %v999_v18 = vsel %vm189_vm2, %v996_v31, %v998_v10  ;;  %v1033_v20 = vmul.f32 %v1030_v38, %v3298_v59  ;;  %s2696_s28 = sld [smem:[#allocation7 + $0x18]] }
 0x130   : > { %958 = vrot.lane.b32.xlu0 %v955_v19, %s2995_s29  ;;  %v1081_v16 = vsel %vm785_vm10, %v1079_v13, %v1080_v8  ;;  %v3415_v12 = vmul.f32 %v1142_v15, %v3242_v25  ;;  %v1019_v19 = vrot.slane %v1012_v11, 5  ;;  %v1143_v23 = vmul.f32 %v1142_v15, %v3200_v0 }
 0x131   : > { %876 = vrot.lane.b32.xlu1 %v873_v22, %s2995_s29  ;;  %v1128_v22 = vrot.slane %v1122_v14, 1  ;;  %v1163_v24 = vstv %s2680_s6  ;;  %v1054_v31 = vmul.f32 %v1051_v47, %v3284_v52  ;;  %v1184_v35 = vstv %s2681_s10  ;;  %s2697_s6 = sld [smem:[#allocation7 + $0x49]]  ;;  %s2698_s10 = sld [smem:[#allocation7 + $0x1f]] }
 0x132   : > { %v1150_v28 = vrot.slane %v3415_v12, 1  ;;  %v3429_v21 = vmul.f32 %v1163_v24, %v3244_v26  ;;  %v1020_v29 = vsel %vm750_vm9, %v1017_v40, %v1019_v19  ;;  %v1164_v34 = vmul.f32 %v1163_v24, %v3193_v60 }
 0x133   : > { %v1130_v27 = vsel %vm611_vm6, %v1128_v22, %v1129_v17  ;;  %v3443_v32 = vmul.f32 %v1184_v35, %v3242_v25  ;;  %v1075_v40 = vmul.f32 %v1072_v58, %v3298_v59  ;;  %v1185_v43 = vmul.f32 %v1184_v35, %v3200_v0 }
 0x134   : > { %979 = vrot.lane.b32.xlu0 %v976_v30, %s2995_s29  ;;  %v1040_v30 = vrot.slane %v1033_v20, 5  ;;  %v1171_v37 = vrot.slane %v3429_v21, 2  ;;  %v1205_v44 = vstv %s2682_s12  ;;  %v1226_v54 = vstv %s2683_s30  ;;  %s2699_s12 = sld [smem:[#allocation7 + $0x50]]  ;;  %s2701_s30 = sld [smem:[#allocation7 + $0x57]] }
 0x135   : > { %897 = vrot.lane.b32.xlu1 %v894_v33, %s2995_s29  ;;  %v1149_v33 = vrot.slane %v1143_v23, 1  ;;  %v1192_v46 = vrot.slane %v3443_v32, 2  ;;  %v3457_v41 = vmul.f32 %v1205_v44, %v3244_v26  ;;  %v1206_v53 = vmul.f32 %v1205_v44, %v3193_v60 }
 0x136   : > { %v1041_v38 = vsel %vm750_vm9, %v1038_v50, %v1040_v30  ;;  %v1124_v50 = vmul.f32 %v1121_v6, %v3284_v52  ;;  %v3471_v49 = vmul.f32 %v1226_v54, %v3242_v25  ;;  %v1227_v1 = vmul.f32 %v1226_v54, %v3200_v0 }
 0x137   : > { %v1151_v36 = vsel %vm611_vm6, %v1149_v33, %v1150_v28  ;;  %v1213_v56 = vrot.slane %v3457_v41, 3  ;;  %v1247_v2 = vstv %s2684_s11  ;;  %v1268_v11 = vstv %s2685_s13  ;;  %s2702_s11 = sld [smem:[#allocation7 + $0x2d]]  ;;  %s3746_s13 = sld [smem:[#allocation7 + $0x5e]] }
 0x138   : > { %1000 = vrot.lane.b32.xlu0 %v997_v39, %s2995_s29  ;;  %v1061_v39 = vrot.slane %v1054_v31, 6  ;;  %v1234_v5 = vrot.slane %v3471_v49, 3  ;;  %v3485_v57 = vmul.f32 %v1247_v2, %v3244_v26  ;;  %v1248_v10 = vmul.f32 %v1247_v2, %v3193_v60 }
 0x139   : > { %918 = vrot.lane.b32.xlu1 %v915_v42, %s2995_s29  ;;  %v1170_v42 = vrot.slane %v1164_v34, 2  ;;  %v3499_v4 = vmul.f32 %v1268_v11, %v3242_v25  ;;  %v1269_v19 = vmul.f32 %v1268_v11, %v3200_v0  ;;  %v1289_v20 = vstv %s2686_s14  ;;  %s3771_s14 = sld [smem:[#allocation7]] }
 0x13a   : > { %v1062_v47 = vsel %vm785_vm10, %v1059_v62, %v1061_v39  ;;  %v1145_v62 = vmul.f32 %v1142_v15, %v3298_v59  ;;  %v1255_v14 = vrot.slane %v3485_v57, 4  ;;  %v3513_v12 = vmul.f32 %v1289_v20, %v3244_v26 }
 0x13b   : > { %v1172_v45 = vsel %vm646_vm7, %v1170_v42, %v1171_v37  ;;  %v1276_v23 = vrot.slane %v3499_v4, 4  ;;  %v1290_v30 = vmul.f32 %v1289_v20, %v3193_v60 }
 0x13c   : > { %1021 = vrot.lane.b32.xlu0 %v1018_v48, %s2995_s29  ;;  %v1082_v48 = vrot.slane %v1075_v40, 6  ;;  %v1297_v34 = vrot.slane %v3513_v12, 5  ;;  %v1331_v40 = vstv %s2688_s15  ;;  %s3785_s15 = sld [smem:[#allocation7 + $0xe]] }
 0x13d   : > { %939 = vrot.lane.b32.xlu1 %v936_v51, %s2995_s29  ;;  %v1191_v51 = vrot.slane %v1185_v43, 2 }
 0x13e   : > { %v1083_v58 = vsel %vm785_vm10, %v1080_v8, %v1082_v48  ;;  %v1166_v8 = vmul.f32 %v1163_v24, %v3284_v52  ;;  %v1332_v48 = vmul.f32 %v1331_v40, %v3193_v60 }
 0x13f   : > { %v1193_v55 = vsel %vm646_vm7, %v1191_v51, %v1192_v46 }
 0x140   : > { %1042 = vrot.lane.b32.xlu0 %v1039_v61, %s2995_s29  ;;  %v1131_v61 = vrot.slane %v1124_v50, 1  ;;  %v1352_v50 = vstv %s2689_s16  ;;  %s3787_s16 = sld [smem:[#allocation7 + $0x15]] }
 0x141   : > { %960 = vrot.lane.b32.xlu1 %v957_v63, %s2995_s29  ;;  %v1212_v63 = vrot.slane %v1206_v53, 3  ;;  %v3553_v41 = vmul.f32 %v1352_v50, %v3242_v25 }
 0x142   : > { %v1132_v6 = vsel %vm611_vm6, %v1129_v17, %v1131_v61  ;;  %v1187_v17 = vmul.f32 %v1184_v35, %v3298_v59  ;;  %v1353_v61 = vmul.f32 %v1352_v50, %v3200_v0 }
 0x143   : > { %v1214_v3 = vsel %vm681_vm8, %v1212_v63, %v1213_v56  ;;  %v1360_v49 = vrot.slane %v3553_v41, 6 }
 0x144   : > { %1063 = vrot.lane.b32.xlu0 %v1060_v7, %s2995_s29  ;;  %v1152_v7 = vrot.slane %v1145_v62, 1 }
 0x145   : > { %981 = vrot.lane.b32.xlu1 %v978_v9, %s2995_s29  ;;  %v1233_v9 = vrot.slane %v1227_v1, 3 }
 0x146   : > { %v1153_v15 = vsel %vm611_vm6, %v1150_v28, %v1152_v7  ;;  %v1208_v28 = vmul.f32 %v1205_v44, %v3284_v52  ;;  %v3539_v44 = vmul.f32 %v1331_v40, %v3244_v26 }
 0x147   : > { %v1235_v13 = vsel %vm681_vm8, %v1233_v9, %v1234_v5 }
 0x148   : > { %1084 = vrot.lane.b32.xlu0 %v1081_v16, %s2995_s29  ;;  %v1173_v16 = vrot.slane %v1166_v8, 2  ;;  %v1339_v53 = vrot.slane %v3539_v44, 6  ;;  %v1387_v8 = vstv %s3555_s18  ;;  %s3797_s18 = sld [smem:[#allocation7 + $0x23]] }
 0x149   : > { %1002 = vrot.lane.b32.xlu1 %v999_v18, %s2995_s29  ;;  %v1254_v18 = vrot.slane %v1248_v10, 4 }
 0x14a   : > { %v1174_v24 = vsel %vm646_vm7, %v1171_v37, %v1173_v16  ;;  %v1229_v37 = vmul.f32 %v1226_v54, %v3298_v59  ;;  %v1422_v16 = vstv %s2693_s0  ;;  %s3802_s0 = sld [smem:[#allocation7 + $0x2a]] }
 0x14b   : > { %v1256_v22 = vsel %vm189_vm2, %v1254_v18, %v1255_v14  ;;  %v3597_v18 = vmul.f32 %v1422_v16, %v3242_v25 }
 0x14c   : > { %1133 = vrot.lane.b32.xlu0 %v1130_v27, %s2996_s7  ;;  %v1194_v27 = vrot.slane %v1187_v17, 2 }
 0x14d   : > { %1023 = vrot.lane.b32.xlu1 %v1020_v29, %s2995_s29  ;;  %v1275_v29 = vrot.slane %v1269_v19, 4 }
 0x14e   : > { %v1195_v35 = vsel %vm646_vm7, %v1192_v46, %v1194_v27  ;;  %v1250_v46 = vmul.f32 %v1247_v2, %v3284_v52 }
 0x14f   : > { %v1277_v33 = vsel %vm189_vm2, %v1275_v29, %v1276_v23 }
 0x150   : > { %1154 = vrot.lane.b32.xlu0 %v1151_v36, %s2996_s7  ;;  %v1215_v36 = vrot.slane %v1208_v28, 3  ;;  %v1430_v28 = vrot.slane %v3597_v18, 1 }
 0x151   : > { %1044 = vrot.lane.b32.xlu1 %v1041_v38, %s2995_s29  ;;  %v1296_v38 = vrot.slane %v1290_v30, 5 }
 0x152   : > { %v1216_v32 = vsel %vm681_vm8, %v1213_v56, %v1215_v36  ;;  %v1271_v56 = vmul.f32 %v1268_v11, %v3298_v59  ;;  %v1464_v36 = vstv %s2695_s27  ;;  %s3811_s27 = sld [smem:[#allocation7 + $0x38]] }
 0x153   : > { %v1298_v42 = vsel %vm750_vm9, %v1296_v38, %v1297_v34 }
 0x154   : > { %1175 = vrot.lane.b32.xlu0 %v1172_v45, %s2996_s7  ;;  %v1236_v45 = vrot.slane %v1229_v37, 3  ;;  %v1278_v2 = vrot.slane %v1271_v56, 4 }
 0x155   : > { %1065 = vrot.lane.b32.xlu1 %v1062_v47, %s2995_s29 }
 0x156   : > { %v1237_v54 = vsel %vm681_vm8, %v1234_v5, %v1236_v45  ;;  %v1359_v5 = vrot.slane %v1353_v61, 6  ;;  %v1279_v10 = vsel %vm189_vm2, %v1276_v23, %v1278_v2  ;;  %v1423_v23 = vmul.f32 %v1422_v16, %v3200_v0 }
 0x157   : > { %v3635_v45 = vstv %s2696_s28  ;;  %s3823_s28 = sld [smem:[#allocation7 + $0x4]] }
 0x158   : > { %1196 = vrot.lane.b32.xlu0 %v1193_v55, %s2996_s7  ;;  %v1257_v55 = vrot.slane %v1250_v46, 4  ;;  %v1361_v7 = vsel %vm785_vm10, %v1359_v5, %v1360_v49  ;;  %v3643_v44 = vmul.f32 %v3635_v45, %v3244_v26 }
 0x159   : > { %1086 = vrot.lane.b32.xlu1 %v1083_v58, %s2995_s29  ;;  %s2687_s29 = sld [smem:[#allocation7 + $0x56]]  ;;  %v1338_v58 = vrot.slane %v1332_v48, 6 }
 0x15a   : > { %v1258_v1 = vsel %vm189_vm2, %v1255_v14, %v1257_v55  ;;  %v3655_v55 = vstv %s2697_s6  ;;  %v1493_v61 = vrot.slane %v3643_v44, 3  ;;  %s3825_s6 = sld [smem:[#allocation7 + $0x3f]] }
 0x15b   : > { %v1340_v63 = vsel %vm785_vm10, %v1338_v58, %v1339_v53  ;;  %v1389_v58 = vmul.f32 %v1387_v8, %v3242_v25 }
 0x15c   : > { %1217 = vrot.lane.b32.xlu0 %v1214_v3, %s2996_s7  ;;  %v1292_v3 = vmul.f32 %v1289_v20, %v3284_v52  ;;  %v1334_v20 = vmul.f32 %v1331_v40, %v3284_v52 }
 0x15d   : > { %1135 = vrot.lane.b32.xlu1 %v1132_v6, %s2996_s7  ;;  %v1401_v6 = vstv %s2692_s17  ;;  %s3795_s17 = sld [smem:[#allocation7 + $0x1c]] }
 0x15e   : > { %v3581_v9 = vmul.f32 %v1401_v6, %v3244_v26  ;;  %v1299_v11 = vrot.slane %v1292_v3, 5  ;;  %v1402_v14 = vmul.f32 %v1401_v6, %v3193_v60  ;;  %v1507_v3 = vmul.f32 %v3655_v55, %v3200_v0 }
 0x15f   : > { %v1310_v31 = vstv %s2687_s29  ;;  %s3773_s29 = sld [smem:[#allocation7 + $0x7]] }
 0x160   : > { %1238 = vrot.lane.b32.xlu0 %v1235_v13, %s2996_s7  ;;  %v3527_v21 = vmul.f32 %v1310_v31, %v3242_v25  ;;  %v1311_v39 = vmul.f32 %v1310_v31, %v3200_v0  ;;  %v1313_v13 = vmul.f32 %v1310_v31, %v3298_v59  ;;  %v1409_v17 = vrot.slane %v3581_v9, 1 }
 0x161   : > { %1156 = vrot.lane.b32.xlu1 %v1153_v15, %s2996_s7  ;;  %v1388_v15 = vmul.f32 %v1387_v8, %v3200_v0  ;;  %v1300_v4 = vsel %vm750_vm9, %v1297_v34, %v1299_v11  ;;  %v1341_v31 = vrot.slane %v1334_v20, 6  ;;  %v1429_v34 = vrot.slane %v1423_v23, 1 }
 0x162   : > { %v1318_v43 = vrot.slane %v3527_v21, 5  ;;  %v1317_v47 = vrot.slane %v1311_v39, 5  ;;  %v1320_v19 = vrot.slane %v1313_v13, 5  ;;  %v3625_v21 = vmul.f32 %v1464_v36, %v3242_v25 }
 0x163   : > { %v1431_v37 = vsel %vm611_vm6, %v1429_v34, %v1430_v28  ;;  %v1342_v40 = vsel %vm785_vm10, %v1339_v53, %v1341_v31  ;;  %v1486_v53 = vmul.f32 %v3635_v45, %v3193_v60  ;;  %v3699_v20 = vstv %s2699_s12  ;;  %s3835_s12 = sld [smem:[#allocation7 + $0x4d]] }
 0x164   : > { %1259 = vrot.lane.b32.xlu0 %v1256_v22, %s2996_s7  ;;  %v1319_v51 = vsel %vm750_vm9, %v1317_v47, %v1318_v43  ;;  %v1408_v22 = vrot.slane %v1402_v14, 1  ;;  %v1321_v30 = vsel %vm750_vm9, %v1318_v43, %v1320_v19  ;;  %v1472_v47 = vrot.slane %v3625_v21, 2 }
 0x165   : > { %1177 = vrot.lane.b32.xlu1 %v1174_v24, %s2996_s7  ;;  %v1443_v24 = vstv %s2694_s25  ;;  %v1492_v2 = vrot.slane %v1486_v53, 3  ;;  %v3709_v23 = vmul.f32 %v3699_v20, %v3242_v25  ;;  %s3804_s25 = sld [smem:[#allocation7 + $0x31]] }
 0x166   : > { %v1410_v27 = vsel %vm611_vm6, %v1408_v22, %v1409_v17  ;;  %v3611_v29 = vmul.f32 %v1443_v24, %v3244_v26 }
 0x167   : > { %v1494_v8 = vsel %vm681_vm8, %v1492_v2, %v1493_v61 }
 0x168   : > { %1280 = vrot.lane.b32.xlu0 %v1277_v33, %s2996_s7  ;;  %v1355_v33 = vmul.f32 %v1352_v50, %v3298_v59  ;;  %v1451_v38 = vrot.slane %v3611_v29, 2  ;;  %v1404_v50 = vmul.f32 %v1401_v6, %v3284_v52  ;;  %v3677_v6 = vstv %s2698_s10  ;;  %s3827_s10 = sld [smem:[#allocation7 + $0x46]] }
 0x169   : > { %1198 = vrot.lane.b32.xlu1 %v1195_v35, %s2996_s7  ;;  %v1444_v35 = vmul.f32 %v1443_v24, %v3193_v60  ;;  %v3687_v11 = vmul.f32 %v3677_v6, %v3244_v26 }
 0x16b   : > { %v3564_v62 = vpop.permute.xlu0 %818  ;;  %v1450_v43 = vrot.slane %v1444_v35, 2 }
 0x16c   : > { %1301 = vrot.lane.b32.xlu0 %v1298_v42, %s2996_s7  ;;  %5316 = vst [vmem:[#allocation21_spill] sm:$0xff] %v3564_v62  ;;  %v1362_v42 = vrot.slane %v1355_v33, 6  ;;  %v1549_v33 = vmul.f32 %v3699_v20, %v3200_v0 }
 0x16d   : > { %1219 = vrot.lane.b32.xlu1 %v1216_v32, %s2996_s7  ;;  %v1465_v32 = vmul.f32 %v1464_v36, %v3200_v0  ;;  %v1452_v46 = vsel %vm646_vm7, %v1450_v43, %v1451_v38  ;;  %v1488_v43 = vmul.f32 %v3635_v45, %v3284_v52 }
 0x16e   : > { %v1363_v48 = vsel %vm785_vm10, %v1360_v49, %v1362_v42  ;;  %v1411_v49 = vrot.slane %v1404_v50, 1  ;;  %v3744_v50 = vstv %s2701_s30  ;;  %s3844_s30 = sld [smem:[#allocation7 + $0x5b]] }
 0x16f   : > { %v3583_v57 = vpop.permute.xlu0 %832  ;;  %v3756_v45 = vmul.f32 %v3744_v50, %v3242_v25 }
 0x170   : > { %1322 = vrot.lane.b32.xlu0 %v1319_v51, %s2996_s7  ;;  %5317 = vst [vmem:[#allocation22_spill] sm:$0xff] %v3583_v57  ;;  %v1471_v51 = vrot.slane %v1465_v32, 2  ;;  %v1412_v13 = vsel %vm611_vm6, %v1409_v17, %v1411_v49  ;;  %v1535_v17 = vrot.slane %v3687_v11, 4  ;;  %v1555_v32 = vrot.slane %v1549_v33, 4 }
 0x171   : > { %1240 = vrot.lane.b32.xlu1 %v1237_v54, %s2996_s7 }
 0x172   : > { %v1473_v41 = vsel %vm646_vm7, %v1471_v51, %v1472_v47 }
 0x173   : > { %v3604_v12 = vpop.permute.xlu0 %1098 }
 0x174   : > { %1343 = vrot.lane.b32.xlu0 %v1340_v63, %s2996_s7  ;;  %5318 = vst [vmem:[#allocation23_spill] sm:$0xff] %v3604_v12  ;;  %v3668_v63 = vmul.f32 %v3655_v55, %v3242_v25 }
 0x175   : > { %1261 = vrot.lane.b32.xlu1 %v1258_v1, %s2996_s7  ;;  %v1425_v1 = vmul.f32 %v1422_v16, %v3298_v59  ;;  %v1513_v16 = vrot.slane %v1507_v3, 3  ;;  %v3769_v3 = vstv %s2702_s11  ;;  %s3848_s11 = sld [smem:[#allocation7 + $0xb]] }
 0x177   : > { %v3627_v39 = vpop.permute.xlu0 %1112  ;;  %v1432_v14 = vrot.slane %v1425_v1, 1  ;;  %v1591_v1 = vmul.f32 %v3744_v50, %v3200_v0  ;;  %v3783_v0 = vmul.f32 %v3769_v3, %v3244_v26 }
 0x178   : > { %1364 = vrot.lane.b32.xlu0 %v1361_v7, %s2996_s7  ;;  %5319 = vst [vmem:[#allocation24_spill] sm:$0xff] %v3627_v39 }
 0x179   : > { %1282 = vrot.lane.b32.xlu1 %v1279_v10, %s2996_s7  ;;  %v1514_v10 = vrot.slane %v3668_v63, 3 }
 0x17b   : > { %v3653_v54 = vpop.permute.xlu0 %1378  ;;  %v1515_v9 = vsel %vm681_vm8, %v1513_v16, %v1514_v10 }
 0x17c   : > { %1392 = vrot.lane.b32.xlu0 %v1388_v15, %s5279_s9  ;;  %5320 = vst [vmem:[#allocation25_spill] sm:$0xff] %v3653_v54  ;;  %v1446_v15 = vmul.f32 %v1443_v24, %v3284_v52  ;;  %v1433_v24 = vsel %vm611_vm6, %v1430_v28, %v1432_v14  ;;  %v1556_v28 = vrot.slane %v3709_v23, 4  ;;  %v1530_v14 = vmul.f32 %v3677_v6, %v3284_v52 }
 0x17d   : > { %1303 = vrot.lane.b32.xlu1 %v1300_v4, %s2996_s7  ;;  %v1528_v4 = vmul.f32 %v3677_v6, %v3193_v60  ;;  %v3931_v23 = vstv %s3827_s10  ;;  %s4838_s10 = sld [smem:[#allocation7 + $0x60]] }
 0x17e   : > { %v1557_v29 = vsel %vm189_vm2, %v1555_v32, %v1556_v28  ;;  %v3880_v32 = vstv %s3785_s15  ;;  %s3905_s15 = sld [smem:[#allocation7 + $0x58]] }
 0x17f   : > { %v1534_v31 = vrot.slane %v1528_v4, 4  ;;  %v5289_v4 = vrot.slane %v3783_v0, 6  ;;  %5337 = vst [vmem:[#allocation41_spill] sm:$0xff] %v3880_v32 }
 0x180   : > { %1413 = vrot.lane.b32.xlu0 %v1410_v27, %s5279_s9  ;;  %v1453_v27 = vrot.slane %v1446_v15, 2  ;;  %v1612_v15 = vmul.f32 %v3769_v3, %v3193_v60 }
 0x181   : > { %1324 = vrot.lane.b32.xlu1 %v1321_v30, %s2996_s7  ;;  %v1467_v30 = vmul.f32 %v1464_v36, %v3298_v59  ;;  %v1536_v18 = vsel %vm189_vm2, %v1534_v31, %v1535_v17 }
 0x183   : > { %v1474_v42 = vrot.slane %v1467_v30, 2  ;;  %v3840_v30 = vld [vmem:[#allocation5] sm:$0xff] }
 0x184   : > { %1434 = vrot.lane.b32.xlu0 %v1431_v37, %s5279_s9 }
 0x185   : > { %1345 = vrot.lane.b32.xlu1 %v1342_v40, %s2996_s7  ;;  %v1454_v40 = vsel %vm646_vm7, %v1451_v38, %v1453_v27  ;;  %v1475_v53 = vsel %vm646_vm7, %v1472_v47, %v1474_v42  ;;  %v1551_v27 = vmul.f32 %v3699_v20, %v3298_v59 }
 0x188   : > { %1455 = vrot.lane.b32.xlu0 %v1452_v46, %s5279_s9 }
 0x189   : > { %1366 = vrot.lane.b32.xlu1 %v1363_v48, %s2996_s7  ;;  %s2700_s7 = sld [smem:[#allocation7 + $0x26]] }
 0x18b   : > { %v3657_v56 = vpop.permute.xlu1 %820 }
 0x18c   : > { %5321 = vst [vmem:[#allocation26_spill] sm:$0xff] %v3657_v56  ;;  %1476 = vrot.lane.b32.xlu0 %v1473_v41, %s5279_s9  ;;  %v1495_v41 = vrot.slane %v1488_v43, 3 }
 0x18d   : > { %1394 = vrot.lane.b32.xlu1 %v1389_v58, %s5279_s9  ;;  %v1509_v58 = vmul.f32 %v3655_v55, %v3298_v59  ;;  %v5291_v55 = vrot.slane %v3756_v45, 5 }
 0x18e   : > { %v3675_v5 = vpop.permute.xlu0 %853 }
 0x18f   : > { %5322 = vst [vmem:[#allocation27_spill] sm:$0xff] %v3675_v5  ;;  %v3679_v7 = vpop.permute.xlu1 %834  ;;  %v3721_v35 = vstv %s2700_s7  ;;  %s3837_s7 = sld [smem:[#allocation7 + $0x54]] }
 0x190   : > { %5323 = vst [vmem:[#allocation28_spill] sm:$0xff] %v3679_v7  ;;  %1497 = vrot.lane.b32.xlu0 %v1494_v8, %s5279_s9  ;;  %v3731_v36 = vmul.f32 %v3721_v35, %v3244_v26  ;;  %v1570_v46 = vmul.f32 %v3721_v35, %v3193_v60  ;;  %v1496_v8 = vsel %vm681_vm8, %v1493_v61, %v1495_v41  ;;  %v1597_v26 = vrot.slane %v1591_v1, 5 }
 0x191   : > { %1415 = vrot.lane.b32.xlu1 %v1412_v13, %s5279_s9  ;;  %v1516_v13 = vrot.slane %v1509_v58, 3  ;;  %v3809_v61 = vstv %s3746_s13  ;;  %s3856_s13 = sld [smem:[#allocation7 + $0x35]]  ;;  %v1572_v42 = vmul.f32 %v3721_v35, %v3284_v52  ;;  %v3908_v1 = vstv %s3802_s0  ;;  %s3946_s0 = sld [smem:[#allocation7 + $0x36]] }
 0x192   : > { %v3697_v19 = vpop.permute.xlu0 %874  ;;  %v1577_v38 = vrot.slane %v3731_v36, 5  ;;  %v1576_v49 = vrot.slane %v1570_v46, 5  ;;  %v1599_v16 = vsel %vm750_vm9, %v1597_v26, %v5291_v55  ;;  %v3821_v60 = vmul.f32 %v3809_v61, %v3242_v25 }
 0x193   : > { %5324 = vst [vmem:[#allocation29_spill] sm:$0xff] %v3697_v19  ;;  %v3701_v22 = vpop.permute.xlu1 %1100  ;;  %v1618_v25 = vrot.slane %v1612_v15, 6  ;;  %v1633_v31 = vmul.f32 %v3840_v30, %v3809_v61  ;;  %v3883_v46 = vstv %s3787_s16  ;;  %s3916_s16 = sld [smem:[#allocation7 + $0x2e]]  ;;  %v3922_v26 = vstv %s3811_s27  ;;  %s3948_s27 = sld [smem:[#allocation7 + $0xc]] }
 0x194   : > { %5325 = vst [vmem:[#allocation30_spill] sm:$0xff] %v3701_v22  ;;  %1518 = vrot.lane.b32.xlu0 %v1515_v9, %s5279_s9  ;;  %v1578_v47 = vsel %vm750_vm9, %v1576_v49, %v1577_v38  ;;  %v1517_v9 = vsel %vm681_vm8, %v1514_v10, %v1516_v13  ;;  %v5288_v33 = vrot.slane %v3821_v60, 6  ;;  %5338 = vst [vmem:[#allocation42_spill] sm:$0xff] %v3883_v46  ;;  %v5287_v49 = vstv %s3823_s28 }
 0x195   : > { %1436 = vrot.lane.b32.xlu1 %v1433_v24, %s5279_s9  ;;  %v1537_v24 = vrot.slane %v1530_v14, 4  ;;  %v1620_v20 = vsel %vm785_vm10, %v1618_v25, %v5289_v4  ;;  %v1639_v43 = vrot.slane %v1633_v31, 6  ;;  %v1593_v13 = vmul.f32 %v3744_v50, %v3298_v59  ;;  %v4003_v4 = vld [vmem:[#allocation5 + $0x8] sm:$0xff] }
 0x196   : > { %v3719_v34 = vpop.permute.xlu0 %895  ;;  %v3925_v15 = vstv %s3825_s6  ;;  %v3954_v25 = vstv %s3844_s30  ;;  %s2998_s6 = smov 124   ;;  %v3984_v36 = vstv %s3871_s4  ;;  %v4013_v55 = vstv %s3905_s15  ;;  %s4659_s4 = sld [smem:[#allocation7 + $0x21]] }
 0x197   : > { %5326 = vst [vmem:[#allocation31_spill] sm:$0xff] %v3719_v34  ;;  %v3723_v37 = vpop.permute.xlu1 %1114  ;;  %v1641_v58 = vsel %vm785_vm10, %v1639_v43, %v5288_v33  ;;  %v1600_v43 = vrot.slane %v1593_v13, 5  ;;  %v3978_v33 = vstv %s3866_s26  ;;  %v3998_v13 = vstv %s3889_s24  ;;  %s4603_s24 = sld [smem:[#allocation7 + $0x1a]]  ;;  %s4614_s26 = sld [smem:[#allocation7 + $0x4b]] }
 0x198   : > { %5327 = vst [vmem:[#allocation32_spill] sm:$0xff] %v3723_v37  ;;  %1539 = vrot.lane.b32.xlu0 %v1536_v18, %s5279_s9  ;;  %v1538_v18 = vsel %vm189_vm2, %v1535_v17, %v1537_v24  ;;  %v3877_v17 = vstv %s3773_s29  ;;  %s3903_s29 = sld [smem:[#allocation7 + $0x27]]  ;;  %v3944_v24 = vstv %s3848_s11  ;;  %v1635_v22 = vmul.f32 %v3809_v61, %v3298_v59  ;;  %s4934_s11 = sld [smem:[#allocation7 + $0x3e]] }
 0x199   : > { %1457 = vrot.lane.b32.xlu1 %v1454_v40, %s5279_s9  ;;  %v1558_v40 = vrot.slane %v1551_v27, 4  ;;  %v3951_v27 = vstv %s3837_s7  ;;  %v4022_v54 = vstv %s3916_s16  ;;  %v5351_v61 = vstv %s3771_s14  ;;  %s4916_s7 = sld [smem:[#allocation7 + $0xd]]  ;;  %s4924_s30 = sld [smem:[#allocation7 + $0x37]] }
 0x19a   : > { %v3742_v48 = vpop.permute.xlu0 %916  ;;  %v4177_v34 = vmul.f32 %v4003_v4, %v3922_v26  ;;  %v5368_v57 = vstv %s3856_s13  ;;  %s2737_s15 = sld [smem:[#allocation7 + $0x45]]  ;;  %s2738_s16 = sld [smem:[#allocation7 + $0x1b]] }
 0x19b   : > { %5328 = vst [vmem:[#allocation33_spill] sm:$0xff] %v3742_v48  ;;  %v3748_v51 = vpop.permute.xlu1 %1380 }
 0x19c   : > { %5329 = vst [vmem:[#allocation34_spill] sm:$0xff] %v3748_v51  ;;  %1560 = vrot.lane.b32.xlu0 %v1557_v29, %s5279_s9  ;;  %v3892_v29 = vstv %s3795_s17  ;;  %s3918_s17 = sld [smem:[#allocation7 + $0x5f]]  ;;  %v5346_v51 = vrot.slane %v3756_v45, 5 }
 0x19d   : > { %1478 = vrot.lane.b32.xlu1 %v1475_v53, %s5279_s9  ;;  %5340 = vst [vmem:[#allocation44_spill] sm:$0xff] %v3892_v29  ;;  %v3895_v53 = vstv %s3797_s18  ;;  %s3928_s18 = sld [smem:[#allocation7 + $0x5]] }
 0x19e   : > { %v3767_v2 = vpop.permute.xlu0 %937  ;;  %v1601_v37 = vsel %vm750_vm9, %v5346_v51, %v1600_v43 }
 0x19f   : > { %5330 = vst [vmem:[#allocation35_spill] sm:$0xff] %v3767_v2  ;;  %v3775_v21 = vpop.permute.xlu1 %855 }
 0x1a0   : > { %5331 = vst [vmem:[#allocation36_spill] sm:$0xff] %v3775_v21  ;;  %1581 = vrot.lane.b32.xlu0 %v1578_v47, %s5279_s9  ;;  %v1559_v47 = vsel %vm189_vm2, %v1556_v28, %v1558_v40  ;;  %v3934_v28 = vstv %s3835_s12  ;;  %s4904_s12 = sld [smem:[#allocation7 + $0x6]] }
 0x1a1   : > { %1499 = vrot.lane.b32.xlu1 %v1496_v8, %s5279_s9  ;;  %v1579_v8 = vrot.slane %v1572_v42, 5 }
 0x1a2   : > { %v3806_v44 = vpop.permute.xlu0 %958  ;;  %v4032_v45 = vstv %s3918_s17  ;;  %s2739_s17 = sld [smem:[#allocation7 + $0x4c]] }
 0x1a3   : > { %5332 = vst [vmem:[#allocation37_spill] sm:$0xff] %v3806_v44  ;;  %v3813_v6 = vpop.permute.xlu1 %876  ;;  %v1580_v42 = vsel %vm750_vm9, %v1577_v38, %v1579_v8  ;;  %v3995_v8 = vstv %s3887_s20  ;;  %s4543_s20 = sld [smem:[#allocation7 + $0x13]] }
 0x1a4   : > { %5333 = vst [vmem:[#allocation38_spill] sm:$0xff] %v3813_v6  ;;  %1602 = vrot.lane.b32.xlu0 %v1599_v16, %s5279_s9  ;;  %v3938_v16 = vld [vmem:[#allocation4] sm:$0xff] }
 0x1a5   : > { %1520 = vrot.lane.b32.xlu1 %v1517_v9, %s5279_s9  ;;  %s3858_s9 = sld [smem:[#allocation7 + $0x3c]]  ;;  %v1654_v9 = vmul.f32 %v3938_v16, %v5287_v49  ;;  %v1682_v49 = vmul.f32 %v3938_v16, %v3944_v24  ;;  %v4036_v51 = vmul.f32 %v3938_v16, %v3880_v32  ;;  %v4062_v43 = vmul.f32 %v3938_v16, %v5351_v61 }
 0x1a6   : > { %v3846_v63 = vpop.permute.xlu0 %979  ;;  %v4066_v7 = vmul.f32 %v3938_v16, %v3892_v29  ;;  %v4075_v56 = vmul.f32 %v3938_v16, %v3895_v53  ;;  %v1724_v39 = vmul.f32 %v3938_v16, %v3978_v33  ;;  %v1766_v2 = vmul.f32 %v3938_v16, %v3984_v36 }
 0x1a7   : > { %5334 = vst [vmem:[#allocation39_spill] sm:$0xff] %v3846_v63  ;;  %v3850_v10 = vpop.permute.xlu1 %897  ;;  %v5362_v63 = vstv %s3823_s28  ;;  %s4812_s28 = sld [smem:[#allocation7 + $0x2f]] }
 0x1a8   : > { %5335 = vst [vmem:[#allocation40_spill] sm:$0xff] %v3850_v10  ;;  %1623 = vrot.lane.b32.xlu0 %v1620_v20, %s5336_s1  ;;  %v5290_v20 = vstv %s3856_s13  ;;  %s4957_s13 = sld [smem:[#allocation7 + $0x14]] }
 0x1a9   : > { %1541 = vrot.lane.b32.xlu1 %v1538_v18, %s5336_s1  ;;  %v3959_v18 = vld [vmem:[#allocation4 + $0x8] sm:$0xff] }
 0x1aa   : > { %v3885_v35 = vpop.permute.xlu0 %1000  ;;  %v3963_v40 = vmul.f32 %v3959_v18, %v3944_v24  ;;  %v4057_v21 = vmul.f32 %v3959_v18, %v3978_v33  ;;  %v1655_v44 = vmul.f32 %v3959_v18, %v5362_v63  ;;  %v4160_v63 = vld [vmem:[#allocation4 + $0x10] sm:$0x3f] }
 0x1ab   : > { %5339 = vst [vmem:[#allocation43_spill] sm:$0xff] %v3885_v35  ;;  %v3897_v41 = vpop.permute.xlu1 %918 }
 0x1ac   : > { %5341 = vst [vmem:[#allocation45_spill] sm:$0xff] %v3897_v41  ;;  %1644 = vrot.lane.b32.xlu0 %v1641_v58, %s5336_s1  ;;  %v1614_v58 = vmul.f32 %v3769_v3, %v3284_v52  ;;  %v1668_v52 = vmul.f32 %v3840_v30, %v5290_v20  ;;  %v3992_v3 = vstv %s3873_s21  ;;  %v4010_v20 = vstv %s3903_s29  ;;  %s2999_s21 = smov 123   ;;  %s3000_s29 = smov 122  }
 0x1ad   : > { %1562 = vrot.lane.b32.xlu1 %v1559_v47, %s5336_s1  ;;  %v3972_v47 = vstv %s3858_s9  ;;  %v4047_v41 = vmul.f32 %v3938_v16, %v3883_v46  ;;  %v4195_v62 = vmul.f32 %v4003_v4, %v3992_v3  ;;  %s4706_s9 = sld [smem:[#allocation7 + $0x52]] }
 0x1ae   : > { %v3936_v50 = vpop.permute.xlu0 %1021  ;;  %v4007_v11 = vmul.f32 %v4003_v4, %v3972_v47  ;;  %v1621_v14 = vrot.slane %v1614_v58, 6  ;;  %v4043_v58 = vstv %s3948_s27  ;;  %s5081_s27 = sld [smem:[#allocation7 + $0x29]] }
 0x1af   : > { %5342 = vst [vmem:[#allocation46_spill] sm:$0xff] %v3936_v50  ;;  %v3956_v31 = vpop.permute.xlu1 %939  ;;  %5348 = vst [vmem:[#allocation51_spill] sm:$0xff] %v4043_v58  ;;  %v5357_v50 = vstv %s3804_s25  ;;  %v4200_v58 = vld [vmem:[#allocation5 + $0x10] sm:$0x3f] }
 0x1b0   : > { %5343 = vst [vmem:[#allocation47_spill] sm:$0xff] %v3956_v31  ;;  %1658 = vrot.lane.b32.xlu0 %v1654_v9, %s2998_s6  ;;  %v3981_v9 = vstv %s3868_s23  ;;  %v1688_v31 = vrot.slane %v1682_v49, 1  ;;  %v5350_v49 = vrot.slane %v3963_v40, 1  ;;  %v4110_v35 = vmul.f32 %v3840_v30, %v5357_v50  ;;  %s4573_s23 = sld [smem:[#allocation7 + $0x44]] }
 0x1b1   : > { %1583 = vrot.lane.b32.xlu1 %v1580_v42, %s5336_s1  ;;  %v1730_v50 = vrot.slane %v1724_v39, 2 }
 0x1b2   : > { %v3986_v38 = vpop.permute.xlu0 %1042  ;;  %v1690_v10 = vsel %vm611_vm6, %v1688_v31, %v5350_v49  ;;  %v1642_v49 = vrot.slane %v1635_v22, 6  ;;  %v4087_v22 = vmul.f32 %v3938_v16, %v3908_v1 }
 0x1b3   : > { %5344 = vst [vmem:[#allocation48_spill] sm:$0xff] %v3986_v38  ;;  %v4000_v42 = vpop.permute.xlu1 %960  ;;  %v4123_v38 = vmul.f32 %v3840_v30, %v3931_v23 }
 0x1b4   : > { %5345 = vst [vmem:[#allocation49_spill] sm:$0xff] %v4000_v42  ;;  %1672 = vrot.lane.b32.xlu0 %v1668_v52, %s2998_s6  ;;  %v4026_v42 = vmul.f32 %v3938_v16, %v3877_v17  ;;  %v1703_v52 = vmul.f32 %v3840_v30, %v3972_v47 }
 0x1b5   : > { %1604 = vrot.lane.b32.xlu1 %v1601_v37, %s5336_s1 }
 0x1b6   : > { %v4038_v59 = vpop.permute.xlu0 %1063  ;;  %v612_v6 = vrot.slane %v4026_v42, 1  ;;  %v1709_v61 = vrot.slane %v1703_v52, 1  ;;  %v4114_v52 = vmul.f32 %v3840_v30, %v3925_v15 }
 0x1b7   : > { %5347 = vst [vmem:[#allocation50_spill] sm:$0xff] %v4038_v59  ;;  %v4049_v37 = vpop.permute.xlu1 %981  ;;  %v4104_v59 = vmul.f32 %v4003_v4, %v3981_v9 }
 0x1b8   : > { %5349 = vst [vmem:[#allocation52_spill] sm:$0xff] %v4049_v37  ;;  %1693 = vrot.lane.b32.xlu0 %v1690_v10, %s2998_s6  ;;  %v5352_v37 = vrot.slane %v3783_v0, 6  ;;  %v4082_v10 = vmul.f32 %v3959_v18, %v3877_v17 }
 0x1ba   : > { %v1622_v31 = vsel %vm785_vm10, %v5352_v37, %v1621_v14  ;;  %5353 = vst [vmem:[#allocation53_spill] sm:$0xff] %v4082_v10  ;;  %v4091_v14 = vmul.f32 %v3840_v30, %v3922_v26  ;;  %v4093_v42 = vpop.permute.xlu0 %1084  ;;  %v5364_v48 = vrot.slane %v4082_v10, 1 }
 0x1bb   : > { %1625 = vrot.lane.b32.xlu1 %v1622_v31, %s5336_s1  ;;  %5354 = vst [vmem:[#allocation54_spill] sm:$0xff] %v4093_v42  ;;  %v4096_v37 = vpop.permute.xlu1 %1002  ;;  %v5356_v31 = vrot.slane %v4007_v11, 1 }
 0x1bc   : > { %5355 = vst [vmem:[#allocation55_spill] sm:$0xff] %v4096_v37  ;;  %v1745_v37 = vmul.f32 %v3840_v30, %v3981_v9 }
 0x1bd   : > { %v1711_v12 = vsel %vm611_vm6, %v1709_v61, %v5356_v31  ;;  %v5358_v61 = vrot.slane %v3821_v60, 6  ;;  %v1787_v60 = vmul.f32 %v3840_v30, %v3992_v3 }
 0x1be   : > { %1714 = vrot.lane.b32.xlu0 %v1711_v12, %s2998_s6  ;;  %v4148_v12 = vmul.f32 %v3959_v18, %v3984_v36  ;;  %v1751_v42 = vrot.slane %v1745_v37, 2  ;;  %v5367_v37 = vrot.slane %v4104_v59, 2 }
 0x1bf   : > { %v1643_v31 = vsel %vm785_vm10, %v5358_v61, %v1642_v49  ;;  %v4133_v49 = vmul.f32 %v3840_v30, %v3934_v28  ;;  %v4135_v61 = vpop.permute.xlu0 %1133  ;;  %v4137_v0 = vpop.permute.xlu1 %1023 }
 0x1c0   : > { %1646 = vrot.lane.b32.xlu1 %v1643_v31, %s5336_s1  ;;  %5359 = vst [vmem:[#allocation56_spill] sm:$0xff] %v4135_v61  ;;  %5360 = vst [vmem:[#allocation57_spill] sm:$0xff] %v4137_v0  ;;  %v5361_v31 = vrot.slane %v4057_v21, 2  ;;  %v4153_v61 = vmul.f32 %v3840_v30, %v3951_v27  ;;  %v4157_v0 = vmul.f32 %v3840_v30, %v3954_v25  ;;  %s4495_s1 = sld [smem:[#allocation7 + $0x3d]] }
 0x1c1   : > { %v1753_v5 = vsel %vm646_vm7, %v1751_v42, %v5367_v37  ;;  %v1705_v42 = vmul.f32 %v4200_v58, %v3972_v47  ;;  %v4207_v37 = vmul.f32 %v3959_v18, %v3883_v46  ;;  %v4217_v47 = vmul.f32 %v3840_v30, %v3998_v13 }
 0x1c2   : > { %v1732_v39 = vsel %vm646_vm7, %v1730_v50, %v5361_v31  ;;  %5363 = vst [vmem:[#allocation58_spill] sm:$0xff] %v4157_v0  ;;  %v1684_v50 = vmul.f32 %v4160_v63, %v3944_v24  ;;  %v4166_v31 = vmul.f32 %v3959_v18, %v3880_v32  ;;  %v1793_v24 = vrot.slane %v1787_v60, 3 }
 0x1c3   : > { %1735 = vrot.lane.b32.xlu0 %v1732_v39, %s2998_s6  ;;  %v614_v39 = vsel %vm611_vm6, %v612_v6, %v5364_v48  ;;  %v4180_v19 = vpop.permute.xlu0 %1154  ;;  %v1669_v48 = vmul.f32 %v4003_v4, %v5368_v57  ;;  %v1772_v6 = vrot.slane %v1766_v2, 3  ;;  %v4221_v57 = vmul.f32 %v3938_v16, %v4010_v20 }
 0x1c4   : > { %1660 = vrot.lane.b32.xlu1 %v1655_v44, %s2998_s6  ;;  %5365 = vst [vmem:[#allocation59_spill] sm:$0xff] %v4180_v19  ;;  %v4184_v44 = vpop.permute.xlu1 %1044  ;;  %v1808_v19 = vmul.f32 %v3938_v16, %v3995_v8  ;;  %v5371_v2 = vrot.slane %v4148_v12, 3  ;;  %v4232_v60 = vmul.f32 %v3959_v18, %v3995_v8  ;;  %v5372_v0 = vrot.slane %v3963_v40, 1 }
 0x1c5   : > { %5366 = vst [vmem:[#allocation60_spill] sm:$0xff] %v4184_v44  ;;  %v1691_v44 = vrot.slane %v1684_v50, 1  ;;  %v4296_v32 = vmul.f32 %v4003_v4, %v3931_v23 }
 0x1c6   : > { %v1774_v10 = vsel %vm681_vm8, %v1772_v6, %v5371_v2  ;;  %v1726_v6 = vmul.f32 %v4160_v63, %v3978_v33  ;;  %v5373_v2 = vrot.slane %v4166_v31, 2  ;;  %v1814_v40 = vrot.slane %v1808_v19, 4 }
 0x1c7   : > { %1756 = vrot.lane.b32.xlu0 %v1753_v5, %s2998_s6  ;;  %v619_v5 = vadd.f32 %v614_v39, %v4062_v43  ;;  %v4213_v50 = vpop.permute.xlu0 %1175  ;;  %v4236_v39 = vmul.f32 %v3959_v18, %v3892_v29  ;;  %v5374_v43 = vrot.slane %v4036_v51, 2  ;;  %v4252_v29 = vmul.f32 %v4003_v4, %v3925_v15 }
 0x1c8   : > { %1674 = vrot.lane.b32.xlu1 %v1669_v48, %s2998_s6  ;;  %5369 = vst [vmem:[#allocation61_spill] sm:$0xff] %v4213_v50  ;;  %v4224_v48 = vpop.permute.xlu1 %1065  ;;  %v1712_v50 = vrot.slane %v1705_v42, 1  ;;  %v1835_v51 = vrot.slane %v4217_v47, 4  ;;  %v5376_v42 = vrot.slane %v4177_v34, 1  ;;  %v4279_v47 = vmul.f32 %v4003_v4, %v3998_v13 }
 0x1c9   : > { %5370 = vst [vmem:[#allocation62_spill] sm:$0xff] %v4224_v48  ;;  %v1692_v48 = vsel %vm611_vm6, %v5372_v0, %v1691_v44  ;;  %v649_v46 = vsel %vm646_vm7, %v5374_v43, %v5373_v2  ;;  %v4257_v0 = vmul.f32 %v3959_v18, %v3895_v53  ;;  %v4264_v44 = vmul.f32 %v3840_v30, %v4013_v55 }
 0x1ca   : > { %v5377_v43 = vrot.slane %v4091_v14, 1  ;;  %v5380_v14 = vrot.slane %v4007_v11, 1  ;;  %v1856_v11 = vrot.slane %v4221_v57, 5 }
 0x1cb   : > { %1777 = vrot.lane.b32.xlu0 %v1774_v10, %s2998_s6  ;;  %v654_v10 = vadd.f32 %v649_v46, %v619_v5  ;;  %v4259_v33 = vpop.permute.xlu0 %1196  ;;  %v5379_v46 = vrot.slane %v4195_v62, 3 }
 0x1cc   : > { %1695 = vrot.lane.b32.xlu1 %v1692_v48, %s2998_s6  ;;  %5375 = vst [vmem:[#allocation63_spill] sm:$0xff] %v4259_v33  ;;  %v631_v48 = vsel %vm611_vm6, %v5377_v43, %v5376_v42  ;;  %v4271_v19 = vpop.permute.xlu1 %1086  ;;  %v1713_v42 = vsel %vm611_vm6, %v5380_v14, %v1712_v50  ;;  %v1733_v43 = vrot.slane %v1726_v6, 2  ;;  %v5388_v14 = vrot.slane %v4057_v21, 2 }
 0x1cd   : > { %5378 = vst [vmem:[#allocation64_spill] sm:$0xff] %v4271_v19  ;;  %v1795_v5 = vsel %vm681_vm8, %v1793_v24, %v5379_v46  ;;  %v1747_v19 = vmul.f32 %v4200_v58, %v3981_v9  ;;  %v5381_v24 = vrot.slane %v4207_v37, 3  ;;  %v5382_v46 = vrot.slane %v4047_v41, 3 }
 0x1ce   : > { %v4302_v9 = vmul.f32 %v3959_v18, %v3908_v1  ;;  %v636_v6 = vadd.f32 %v631_v48, %v4110_v35  ;;  %v5386_v35 = vrot.slane %v4236_v39, 4  ;;  %v5387_v48 = vrot.slane %v4066_v7, 4 }
 0x1cf   : > { %1798 = vrot.lane.b32.xlu0 %v1795_v5, %s2998_s6  ;;  %v684_v2 = vsel %vm681_vm8, %v5382_v46, %v5381_v24  ;;  %v4305_v41 = vpop.permute.xlu0 %1217  ;;  %v4309_v5 = vmul.f32 %v3938_v16, %v4022_v54  ;;  %v1734_v33 = vsel %vm646_vm7, %v5388_v14, %v1733_v43  ;;  %v5298_v7 = vrot.slane %v4296_v32, 3 }
 0x1d0   : > { %1716 = vrot.lane.b32.xlu1 %v1713_v42, %s2998_s6  ;;  %v689_v50 = vadd.f32 %v684_v2, %v654_v10  ;;  %5383 = vst [vmem:[#allocation65_spill] sm:$0xff] %v4305_v41  ;;  %v4312_v24 = vpop.permute.xlu1 %1135  ;;  %v5385_v42 = vrot.slane %v4232_v60, 4  ;;  %v4320_v2 = vmul.f32 %v3959_v18, %v4010_v20  ;;  %v718_v46 = vsel %vm189_vm2, %v5387_v48, %v5386_v35 }
 0x1d1   : > { %5384 = vst [vmem:[#allocation66_spill] sm:$0xff] %v4312_v24  ;;  %v1754_v24 = vrot.slane %v1747_v19, 2  ;;  %v5390_v10 = vrot.slane %v4114_v52, 2  ;;  %v4341_v35 = vmul.f32 %v4003_v4, %v3934_v28  ;;  %v4345_v21 = vmul.f32 %v4003_v4, %v3951_v27 }
 0x1d2   : > { %v1816_v57 = vsel %vm189_vm2, %v1814_v40, %v5385_v42  ;;  %v1768_v40 = vmul.f32 %v4160_v63, %v3984_v36  ;;  %v5389_v42 = vrot.slane %v4252_v29, 2  ;;  %v723_v19 = vadd.f32 %v718_v46, %v689_v50 }
 0x1d3   : > { %1819 = vrot.lane.b32.xlu0 %v1816_v57, %s2998_s6  ;;  %v4349_v14 = vpop.permute.xlu0 %1238  ;;  %v4353_v52 = vmul.f32 %v3840_v30, %v4032_v45  ;;  %v5391_v57 = vrot.slane %v4257_v0, 5  ;;  %v607_v46 = vmul.f32 %v4160_v63, %v3877_v17  ;;  %v625_v17 = vmul.f32 %v4200_v58, %v3922_v26 }
 0x1d4   : > { %v666_v41 = vsel %vm646_vm7, %v5390_v10, %v5389_v42  ;;  %1737 = vrot.lane.b32.xlu1 %v1734_v33, %s2998_s6  ;;  %v5392_v10 = vrot.slane %v4075_v56, 5  ;;  %v4360_v42 = vpop.permute.xlu1 %1156  ;;  %v5393_v33 = vrot.slane %v4279_v47, 4  ;;  %v5394_v56 = vrot.slane %v4104_v59, 2 }
 0x1d5   : > { %v671_v43 = vadd.f32 %v666_v41, %v636_v6  ;;  %v4368_v41 = vmul.f32 %v4003_v4, %v4013_v55 }
 0x1d6   : > { %v753_v48 = vsel %vm750_vm9, %v5392_v10, %v5391_v57  ;;  %v1837_v50 = vsel %vm189_vm2, %v1835_v51, %v5393_v33  ;;  %v1755_v57 = vsel %vm646_vm7, %v5394_v56, %v1754_v24  ;;  %v1775_v10 = vrot.slane %v1768_v40, 3 }
 0x1d7   : > { %1840 = vrot.lane.b32.xlu0 %v1837_v50, %s2998_s6  ;;  %v1789_v51 = vmul.f32 %v4200_v58, %v3992_v3  ;;  %v5395_v33 = vrot.slane %v4123_v38, 3  ;;  %v4387_v50 = vmul.f32 %v4003_v4, %v3954_v25  ;;  %v758_v59 = vadd.f32 %v753_v48, %v723_v19  ;;  %v4395_v56 = vpop.permute.xlu0 %1259 }
 0x1d8   : > { %1758 = vrot.lane.b32.xlu1 %v1755_v57, %s2998_s6  ;;  %v5396_v24 = vrot.slane %v4302_v9, 6  ;;  %v5397_v3 = vrot.slane %v4087_v22, 6  ;;  %v4404_v36 = vpop.permute.xlu1 %1177  ;;  %v5400_v19 = vrot.slane %v4320_v2, 5  ;;  %v5401_v57 = vrot.slane %v4148_v12, 3 }
 0x1d9   : > { %v701_v6 = vsel %vm681_vm8, %v5395_v33, %v5298_v7  ;;  %v5398_v33 = vstv %s3928_s18  ;;  %5399 = vst [vmem:[#allocation67_spill] sm:$0xff] %v4404_v36  ;;  %v1796_v26 = vrot.slane %v1789_v51, 3  ;;  %v5404_v22 = vrot.slane %v4345_v21, 5 }
 0x1da   : > { %v788_v40 = vsel %vm785_vm10, %v5397_v3, %v5396_v24  ;;  %v706_v38 = vadd.f32 %v701_v6, %v671_v43  ;;  %v4400_v7 = vmul.f32 %v3938_v16, %v5398_v33  ;;  %v1858_v48 = vsel %vm750_vm9, %v1856_v11, %v5400_v19 }
 0x1db   : > { %v4412_v43 = vmul.f32 %v3959_v18, %v4022_v54  ;;  %v615_v6 = vrot.slane %v607_v46, 1  ;;  %1861 = vrot.lane.b32.xlu0 %v1858_v48, %s2998_s6  ;;  %v1776_v24 = vsel %vm681_vm8, %v5401_v57, %v1775_v10  ;;  %v1810_v3 = vmul.f32 %v4160_v63, %v3995_v8  ;;  %v5406_v57 = vld [vmem:[#allocation41_spill] sm:$0xff]  ;;  %v4439_v36 = vpop.permute.xlu0 %1280 }
 0x1dc   : > { %v5402_v33 = vrot.slane %v4341_v35, 4  ;;  %v5403_v11 = vrot.slane %v4133_v49, 4  ;;  %v5405_v46 = vrot.slane %v4153_v61, 5  ;;  %1779 = vrot.lane.b32.xlu1 %v1776_v24, %s2998_s6  ;;  %v1877_v10 = vrot.slane %v4264_v44, 5  ;;  %v5414_v44 = vld [vmem:[#allocation44_spill] sm:$0xff] }
 0x1dd   : > { %v4433_v8 = vadd.f32 %v788_v40, %v758_v59  ;;  %v642_v49 = vmul.f32 %v4160_v63, %v5406_v57  ;;  %v632_v61 = vrot.slane %v625_v17, 1  ;;  %v4449_v59 = vmul.f32 %v4003_v4, %v4032_v45  ;;  %v5410_v40 = vld [vmem:[#allocation53_spill] sm:$0xff] }
 0x1de   : > { %v735_v19 = vsel %vm189_vm2, %v5403_v11, %v5402_v33  ;;  %v770_v48 = vsel %vm750_vm9, %v5405_v46, %v5404_v22  ;;  %v5407_v33 = vld [vmem:[#allocation42_spill] sm:$0xff]  ;;  %v4441_v22 = vpop.permute.xlu1 %1198  ;;  %v5409_v46 = vrot.slane %v4368_v41, 5  ;;  %v5412_v17 = vrot.slane %v4195_v62, 3 }
 0x1df   : > { %v740_v51 = vadd.f32 %v735_v19, %v706_v38  ;;  %v677_v11 = vmul.f32 %v4160_v63, %v5407_v33  ;;  %5408 = vst [vmem:[#allocation41_spill] sm:$0xff] %v4441_v22  ;;  %v5411_v38 = vrot.slane %v5410_v40, 1  ;;  %v1817_v33 = vrot.slane %v1810_v3, 4  ;;  %v4471_v40 = vpop.permute.xlu0 %1301 }
 0x1e0   : > { %v1879_v24 = vsel %vm750_vm9, %v1877_v10, %v5409_v46  ;;  %v1797_v57 = vsel %vm681_vm8, %v5412_v17, %v1796_v26  ;;  %v1831_v10 = vmul.f32 %v4200_v58, %v3998_v13  ;;  %v5413_v46 = vstv %s3771_s14  ;;  %s4723_s14 = sld [smem:[#allocation7 + $0x28]] }
 0x1e1   : > { %v616_v19 = vsel %vm611_vm6, %v5411_v38, %v615_v6  ;;  %1882 = vrot.lane.b32.xlu0 %v1879_v24, %s2998_s6  ;;  %v594_v12 = vmul.f32 %v3959_v18, %v5413_v46  ;;  %v712_v22 = vmul.f32 %v4160_v63, %v5414_v44  ;;  %v660_v6 = vmul.f32 %v4200_v58, %v3925_v15 }
 0x1e2   : > { %1800 = vrot.lane.b32.xlu1 %v1797_v57, %s2998_s6  ;;  %v1898_v62 = vrot.slane %v4309_v5, 6  ;;  %v775_v24 = vadd.f32 %v770_v48, %v740_v51  ;;  %v650_v26 = vrot.slane %v642_v49, 2  ;;  %v685_v3 = vrot.slane %v677_v11, 3  ;;  %v4476_v46 = vpop.permute.xlu1 %1219 }
 0x1e3   : > { %v746_v13 = vmul.f32 %v4160_v63, %v3895_v53  ;;  %v620_v38 = vadd.f32 %v616_v19, %v594_v12  ;;  %v5415_v17 = vrot.slane %v4177_v34, 1  ;;  %v5416_v15 = vrot.slane %v4412_v43, 6 }
 0x1e4   : > { %v1920_v5 = vrot.slane %v4449_v59, 6  ;;  %v5417_v48 = vstv %s3804_s25  ;;  %v5418_v53 = vrot.slane %v4232_v60, 4  ;;  %v1838_v34 = vrot.slane %v1831_v10, 4  ;;  %v5420_v60 = vld [vmem:[#allocation58_spill] sm:$0xff]  ;;  %s4785_s25 = sld [smem:[#allocation7 + $0x59]] }
 0x1e5   : > { %v633_v44 = vsel %vm611_vm6, %v5415_v17, %v632_v61  ;;  %v1900_v57 = vsel %vm785_vm10, %v1898_v62, %v5416_v15  ;;  %v600_v51 = vmul.f32 %v4003_v4, %v5417_v48  ;;  %v1852_v49 = vmul.f32 %v4160_v63, %v4010_v20 }
 0x1e6   : > { %1903 = vrot.lane.b32.xlu0 %v1900_v57, %s2998_s6  ;;  %v1818_v12 = vsel %vm189_vm2, %v5418_v53, %v1817_v33  ;;  %v719_v11 = vrot.slane %v712_v22, 4  ;;  %v667_v61 = vrot.slane %v660_v6, 2  ;;  %v695_v19 = vmul.f32 %v4200_v58, %v3931_v23  ;;  %v4509_v6 = vpop.permute.xlu0 %1322  ;;  %v4513_v53 = vpop.permute.xlu1 %1240 }
 0x1e7   : > { %1821 = vrot.lane.b32.xlu1 %v1818_v12, %s2998_s6  ;;  %v1919_v62 = vrot.slane %v4353_v52, 6  ;;  %v5419_v17 = vrot.slane %v4387_v50, 6  ;;  %v5421_v15 = vrot.slane %v5420_v60, 6  ;;  %v5422_v10 = vrot.slane %v4166_v31, 2 }
 0x1e8   : > { %v4507_v22 = vmul.f32 %v4160_v63, %v3908_v1  ;;  %v637_v23 = vadd.f32 %v633_v44, %v600_v51  ;;  %v754_v57 = vrot.slane %v746_v13, 5  ;;  %v729_v48 = vmul.f32 %v4200_v58, %v3934_v28 }
 0x1e9   : > { %v805_v33 = vsel %vm785_vm10, %v5421_v15, %v5419_v17  ;;  %v651_v20 = vsel %vm646_vm7, %v5422_v10, %v650_v26  ;;  %v1921_v31 = vsel %vm785_vm10, %v1919_v62, %v1920_v5  ;;  %v5423_v1 = vrot.slane %v4279_v47, 4 }
 0x1ea   : > { %v655_v52 = vadd.f32 %v651_v20, %v620_v38  ;;  %v810_v12 = vadd.f32 %v805_v33, %v775_v24  ;;  %1924 = vrot.lane.b32.xlu0 %v1921_v31, %s2998_s6  ;;  %v1859_v44 = vrot.slane %v1852_v49, 5  ;;  %v1873_v13 = vmul.f32 %v4200_v58, %v4013_v55 }
 0x1eb   : > { %v1839_v26 = vsel %vm189_vm2, %v5423_v1, %v1838_v34  ;;  %v5424_v38 = vrot.slane %v4207_v37, 3  ;;  %v5425_v51 = vrot.slane %v4236_v39, 4  ;;  %v5426_v24 = vrot.slane %v4252_v29, 2  ;;  %v4537_v37 = vpop.permute.xlu0 %1343 }
 0x1ec   : > { %v702_v60 = vrot.slane %v695_v19, 3  ;;  %1842 = vrot.lane.b32.xlu1 %v1839_v26, %s2998_s6  ;;  %v789_v47 = vrot.slane %v4507_v22, 6  ;;  %v764_v55 = vmul.f32 %v4200_v58, %v3951_v27  ;;  %v5428_v49 = vrot.slane %v4257_v0, 5  ;;  %v4548_v19 = vpop.permute.xlu1 %1261 }
 0x1ed   : > { %v686_v28 = vsel %vm681_vm8, %v5424_v38, %v685_v3  ;;  %v720_v17 = vsel %vm189_vm2, %v5425_v51, %v719_v11  ;;  %v668_v62 = vsel %vm646_vm7, %v5426_v24, %v667_v61  ;;  %v5427_v3 = vld [vmem:[#allocation51_spill] sm:$0xff]  ;;  %v736_v61 = vrot.slane %v729_v48, 4 }
 0x1ee   : > { %v672_v34 = vadd.f32 %v668_v62, %v637_v23  ;;  %v4541_v39 = vmul.f32 %v3959_v18, %v5427_v3  ;;  %v690_v29 = vadd.f32 %v686_v28, %v655_v52  ;;  %v755_v11 = vsel %vm750_vm9, %v5428_v49, %v754_v57  ;;  %1938 = vrot.lane.b32.xlu0 %v4400_v7, %s2999_s21  ;;  %v5430_v23 = vld [vmem:[#allocation21_spill] sm:$0xff]  ;;  %v5431_v57 = vld [vmem:[#allocation22_spill] sm:$0xff] }
 0x1ef   : > { %v1962_v27 = vmul.f32 %v3938_v16, %v5427_v3  ;;  %v4554_v15 = vmul.f32 %v4200_v58, %v3954_v25  ;;  %v5429_v33 = vrot.slane %v4320_v2, 5  ;;  %v1880_v10 = vrot.slane %v1873_v13, 5  ;;  %v4575_v26 = vpop.permute.xlu0 %1364 }
 0x1f0   : > { %v1894_v20 = vmul.f32 %v4160_v63, %v4022_v54  ;;  %v824_v52 = vadd.f32 %v5430_v23, %v4433_v8  ;;  %v838_v48 = vadd.f32 %v5431_v57, %v810_v12  ;;  %v5432_v25 = vrot.slane %v4296_v32, 3  ;;  %v5434_v12 = vld [vmem:[#allocation27_spill] sm:$0xff]  ;;  %v5435_v32 = vld [vmem:[#allocation29_spill] sm:$0xff]  ;;  %v4583_v28 = vpop.permute.xlu1 %1282 }
 0x1f1   : > { %v1860_v0 = vsel %vm750_vm9, %v5429_v33, %v1859_v44  ;;  %v4571_v7 = vstv %s4495_s1  ;;  %v771_v1 = vrot.slane %v764_v55, 5  ;;  %v5433_v54 = vstv %s3946_s0  ;;  %v5438_v23 = vld [vmem:[#allocation31_spill] sm:$0xff]  ;;  %v5439_v57 = vld [vmem:[#allocation33_spill] sm:$0xff]  ;;  %s5125_s1 = sld [smem:[#allocation7 + $0x30]] }
 0x1f2   : > { %v703_v31 = vsel %vm681_vm8, %v5432_v25, %v702_v60  ;;  %1863 = vrot.lane.b32.xlu1 %v1860_v0, %s2998_s6  ;;  %v1948_v44 = vmul.f32 %v3840_v30, %v5433_v54  ;;  %v1969_v8 = vrot.slane %v4541_v39, 1  ;;  %v859_v13 = vadd.f32 %v5434_v12, %v824_v52 }
 0x1f3   : > { %v707_v2 = vadd.f32 %v703_v31, %v672_v34  ;;  %v880_v38 = vadd.f32 %v5435_v32, %v838_v48  ;;  %v1968_v51 = vrot.slane %v1962_v27, 1  ;;  %v4587_v24 = vmul.f32 %v4003_v4, %v4571_v7 }
 0x1f4   : > { %1952 = vrot.lane.b32.xlu0 %v1948_v44, %s2999_s21  ;;  %v5436_v62 = vrot.slane %v4368_v41, 5  ;;  %v1901_v34 = vrot.slane %v1894_v20, 6  ;;  %v1983_v55 = vmul.f32 %v3840_v30, %v4571_v7  ;;  %v1915_v49 = vmul.f32 %v4200_v58, %v4032_v45  ;;  %v4606_v20 = vpop.permute.xlu0 %1392  ;;  %v4618_v31 = vpop.permute.xlu1 %1303 }
 0x1f5   : > { %v724_v33 = vadd.f32 %v720_v17, %v690_v29  ;;  %v5437_v27 = vrot.slane %v4341_v35, 4  ;;  %v901_v52 = vadd.f32 %v5438_v23, %v859_v13  ;;  %v922_v48 = vadd.f32 %v5439_v57, %v880_v38  ;;  %v5440_v17 = vld [vmem:[#allocation35_spill] sm:$0xff] }
 0x1f6   : > { %v1881_v60 = vsel %vm750_vm9, %v5436_v62, %v1880_v10  ;;  %v806_v10 = vrot.slane %v4554_v15, 6  ;;  %v1970_v45 = vsel %vm611_vm6, %v1968_v51, %v1969_v8  ;;  %v4612_v35 = vstv %s4543_s20  ;;  %v5444_v51 = vld [vmem:[#allocation39_spill] sm:$0xff]  ;;  %s2745_s20 = sld [smem:[#allocation7 + $0x61]] }
 0x1f7   : > { %v737_v0 = vsel %vm189_vm2, %v5437_v27, %v736_v61  ;;  %1884 = vrot.lane.b32.xlu1 %v1881_v60, %s2998_s6  ;;  %v943_v29 = vadd.f32 %v5440_v17, %v901_v52  ;;  %v5441_v61 = vld [vmem:[#allocation37_spill] sm:$0xff]  ;;  %v4623_v15 = vmul.f32 %v3959_v18, %v4612_v35  ;;  %v5442_v54 = vrot.slane %v4345_v21, 5  ;;  %v5445_v60 = vld [vmem:[#allocation43_spill] sm:$0xff]  ;;  %v5447_v52 = vld [vmem:[#allocation46_spill] sm:$0xff] }
 0x1f8   : > { %v741_v41 = vadd.f32 %v737_v0, %v707_v2  ;;  %v964_v25 = vadd.f32 %v5441_v61, %v922_v48  ;;  %v1990_v2 = vrot.slane %v4587_v24, 1  ;;  %1973 = vrot.lane.b32.xlu0 %v1970_v45, %s2999_s21  ;;  %v5443_v12 = vrot.slane %v4412_v43, 6  ;;  %v5448_v48 = vld [vmem:[#allocation48_spill] sm:$0xff]  ;;  %v4653_v17 = vpop.permute.xlu1 %1324  ;;  %v5450_v61 = vld [vmem:[#allocation50_spill] sm:$0xff] }
 0x1f9   : > { %v772_v44 = vsel %vm750_vm9, %v5442_v54, %v771_v1  ;;  %v1989_v32 = vrot.slane %v1983_v55, 1  ;;  %v1922_v38 = vrot.slane %v1915_v49, 6  ;;  %v985_v62 = vadd.f32 %v5444_v51, %v943_v29  ;;  %v4645_v49 = vpop.permute.xlu0 %1413  ;;  %v5451_v54 = vld [vmem:[#allocation54_spill] sm:$0xff] }
 0x1fa   : > { %v1902_v13 = vsel %vm785_vm10, %v5443_v12, %v1901_v34  ;;  %v1006_v27 = vadd.f32 %v5445_v60, %v964_v25  ;;  %v2004_v0 = vmul.f32 %v3938_v16, %v4612_v35  ;;  %v4638_v21 = vstv %s4573_s23 }
 0x1fb   : > { %1905 = vrot.lane.b32.xlu1 %v1902_v13, %s2998_s6  ;;  %v759_v1 = vadd.f32 %v755_v11, %v724_v33  ;;  %v5446_v43 = vrot.slane %v4302_v9, 6  ;;  %v776_v55 = vadd.f32 %v772_v44, %v741_v41  ;;  %v4649_v23 = vmul.f32 %v4003_v4, %v4638_v21 }
 0x1fc   : > { %v1027_v57 = vadd.f32 %v5447_v52, %v985_v62  ;;  %v1048_v45 = vadd.f32 %v5448_v48, %v1006_v27  ;;  %v1991_v9 = vsel %vm611_vm6, %v1989_v32, %v1990_v2  ;;  %v5300_v22 = vrot.slane %v4623_v15, 2  ;;  %v5454_v52 = vld [vmem:[#allocation23_spill] sm:$0xff]  ;;  %v5455_v48 = vld [vmem:[#allocation24_spill] sm:$0xff] }
 0x1fd   : > { %v790_v34 = vsel %vm785_vm10, %v5446_v43, %v789_v47  ;;  %v5449_v47 = vrot.slane %v4387_v50, 6  ;;  %1994 = vrot.lane.b32.xlu0 %v1991_v9, %s2999_s21  ;;  %v1923_v33 = vsel %vm785_vm10, %v1920_v5, %v1922_v38  ;;  %v2025_v41 = vmul.f32 %v3840_v30, %v4638_v21  ;;  %v4678_v12 = vpop.permute.xlu0 %1434  ;;  %v4688_v38 = vpop.permute.xlu1 %1345 }
 0x1fe   : > { %v1964_v29 = vmul.f32 %v4160_v63, %v5427_v3  ;;  %v1069_v25 = vadd.f32 %v5450_v61, %v1027_v57  ;;  %v1090_v44 = vadd.f32 %v5451_v54, %v1048_v45  ;;  %v2010_v50 = vrot.slane %v2004_v0, 2 }
 0x1ff   : > { %v807_v11 = vsel %vm785_vm10, %v5449_v47, %v806_v10  ;;  %1926 = vrot.lane.b32.xlu1 %v1923_v33, %s2998_s6  ;;  %v4676_v10 = vstv %s4603_s24  ;;  %v794_v59 = vadd.f32 %v790_v34, %v759_v1  ;;  %v5299_v5 = vrot.slane %v4649_v23, 2  ;;  %s5103_s6 = sld [smem:[#allocation7 + $0x5a]]  ;;  %s2754_s24 = sshll.u32 %s2973_s22, 8 }
 0x200   : > { %v4683_v13 = vmul.f32 %v3959_v18, %v4676_v10  ;;  %v4686_v3 = vstv %s4614_s26  ;;  %v811_v32 = vadd.f32 %v807_v11, %v776_v55  ;;  %v2012_v51 = vsel %vm646_vm7, %v2010_v50, %v5300_v22  ;;  %v5456_v11 = vld [vmem:[#allocation26_spill] sm:$0xff]  ;;  %v5464_v22 = vld [vmem:[#allocation40_spill] sm:$0xff]  ;;  %s3001_s22 = smov [#allocation11]  }
 0x201   : > { %v5452_v62 = vstv %s3928_s18  ;;  %v4698_v27 = vmul.f32 %v4003_v4, %v4686_v3  ;;  %2015 = vrot.lane.b32.xlu0 %v2012_v51, %s2999_s21  ;;  %v2031_v0 = vrot.slane %v2025_v41, 2  ;;  %v5453_v1 = vstv %s3946_s0  ;;  %v5457_v41 = vld [vmem:[#allocation28_spill] sm:$0xff]  ;;  %v5459_v51 = vld [vmem:[#allocation59_spill] sm:$0xff]  ;;  %s5037_s18 = sld [smem:[#allocation7 + $0x22]]  ;;  %s5060_s0 = sld [smem:[#allocation7 + $0x53]] }
 0x202   : > { %v1935_v60 = vmul.f32 %v3959_v18, %v5452_v62  ;;  %v1949_v43 = vmul.f32 %v4003_v4, %v5453_v1  ;;  %v2046_v34 = vmul.f32 %v3938_v16, %v4676_v10  ;;  %v1971_v55 = vrot.slane %v1964_v29, 1  ;;  %v4717_v29 = vpop.permute.xlu0 %1455 }
 0x203   : > { %v1104_v57 = vadd.f32 %v5454_v52, %v1069_v25  ;;  %v1118_v45 = vadd.f32 %v5455_v48, %v1090_v44  ;;  %v2067_v9 = vmul.f32 %v3840_v30, %v4686_v3  ;;  %v1985_v47 = vmul.f32 %v4200_v58, %v4571_v7  ;;  %v5458_v44 = vld [vmem:[#allocation56_spill] sm:$0xff]  ;;  %v5461_v52 = vld [vmem:[#allocation38_spill] sm:$0xff] }
 0x204   : > { %1940 = vrot.lane.b32.xlu1 %v1935_v60, %s2999_s21  ;;  %v825_v33 = vadd.f32 %v5456_v11, %v794_v59  ;;  %v839_v61 = vadd.f32 %v5457_v41, %v811_v32  ;;  %v2033_v25 = vsel %vm646_vm7, %v2031_v0, %v5299_v5  ;;  %v2053_v54 = vrot.slane %v4683_v13, 3  ;;  %v4727_v60 = vpop.permute.xlu1 %1366  ;;  %v5460_v32 = vld [vmem:[#allocation36_spill] sm:$0xff] }
 0x205   : > { %v1139_v50 = vadd.f32 %v5458_v44, %v1104_v57  ;;  %v1160_v62 = vadd.f32 %v5459_v51, %v1118_v45  ;;  %v2074_v7 = vrot.slane %v4698_v27, 3  ;;  %v4731_v59 = vstv %s4659_s4  ;;  %2036 = vrot.lane.b32.xlu0 %v2033_v25, %s2999_s21  ;;  %v5462_v57 = vld [vmem:[#allocation61_spill] sm:$0xff]  ;;  %v5463_v45 = vld [vmem:[#allocation63_spill] sm:$0xff] }
 0x206   : > { %v860_v1 = vadd.f32 %v5460_v32, %v825_v33  ;;  %v881_v48 = vadd.f32 %v5461_v52, %v839_v61  ;;  %v2052_v0 = vrot.slane %v2046_v34, 3  ;;  %v1972_v11 = vsel %vm611_vm6, %v1969_v8, %v1971_v55  ;;  %v5465_v32 = vld [vmem:[#allocation45_spill] sm:$0xff]  ;;  %v4744_v52 = vpop.permute.xlu0 %1476  ;;  %v5467_v25 = vld [vmem:[#allocation47_spill] sm:$0xff] }
 0x207   : > { %v1181_v41 = vadd.f32 %v5462_v57, %v1139_v50  ;;  %v1202_v44 = vadd.f32 %v5463_v45, %v1160_v62  ;;  %v2073_v51 = vrot.slane %v2067_v9, 3  ;;  %v1992_v5 = vrot.slane %v1985_v47, 1  ;;  %v5466_v34 = vld [vmem:[#allocation65_spill] sm:$0xff] }
 0x208   : > { %1954 = vrot.lane.b32.xlu1 %v1949_v43, %s2999_s21  ;;  %v902_v33 = vadd.f32 %v5464_v22, %v860_v1  ;;  %v923_v61 = vadd.f32 %v5465_v32, %v881_v48  ;;  %v2054_v39 = vsel %vm681_vm8, %v2052_v0, %v2053_v54  ;;  %v2088_v8 = vmul.f32 %v3938_v16, %v4731_v59  ;;  %v4753_v9 = vpop.permute.xlu1 %1394  ;;  %v5468_v62 = vld [vmem:[#allocation49_spill] sm:$0xff] }
 0x209   : > { %v1223_v55 = vadd.f32 %v5466_v34, %v1181_v41  ;;  %v1244_v43 = vadd.f32 %v4349_v14, %v1202_v44  ;;  %v2075_v22 = vsel %vm681_vm8, %v2073_v51, %v2074_v7  ;;  %v4760_v47 = vmul.f32 %v3959_v18, %v4731_v59  ;;  %2057 = vrot.lane.b32.xlu0 %v2054_v39, %s2999_s21  ;;  %v5469_v44 = vld [vmem:[#allocation52_spill] sm:$0xff] }
 0x20a   : > { %v944_v50 = vadd.f32 %v5467_v25, %v902_v33  ;;  %v965_v1 = vadd.f32 %v5468_v62, %v923_v61  ;;  %v2006_v14 = vmul.f32 %v4160_v63, %v4612_v35  ;;  %v4768_v48 = vstv %s4706_s9  ;;  %v5470_v33 = vld [vmem:[#allocation55_spill] sm:$0xff]  ;;  %v4780_v35 = vpop.permute.xlu0 %1497  ;;  %v5472_v34 = vld [vmem:[#allocation60_spill] sm:$0xff]  ;;  %v5473_v62 = vld [vmem:[#allocation62_spill] sm:$0xff] }
 0x20b   : > { %v1265_v0 = vadd.f32 %v4395_v56, %v1223_v55  ;;  %v1286_v57 = vadd.f32 %v4439_v36, %v1244_v43  ;;  %v1993_v41 = vsel %vm611_vm6, %v1990_v2, %v1992_v5  ;;  %v2027_v45 = vmul.f32 %v4200_v58, %v4638_v21  ;;  %v5471_v5 = vld [vmem:[#allocation57_spill] sm:$0xff] }
 0x20c   : > { %1975 = vrot.lane.b32.xlu1 %v1972_v11, %s2999_s21  ;;  %v986_v51 = vadd.f32 %v5469_v44, %v944_v50  ;;  %v1007_v32 = vadd.f32 %v5470_v33, %v965_v1  ;;  %v2094_v61 = vrot.slane %v2088_v8, 4  ;;  %v4783_v39 = vstv %s4723_s14  ;;  %v4789_v24 = vpop.permute.xlu1 %1415  ;;  %s5224_s14 = scalar_lea.hbm %s5277_s2, %s2754_s24 }
 0x20d   : > { %v1307_v36 = vadd.f32 %v4471_v40, %v1265_v0  ;;  %v1328_v56 = vadd.f32 %v4509_v6, %v1286_v57  ;;  %v2095_v2 = vrot.slane %v4760_v47, 4  ;;  %v4794_v21 = vmul.f32 %v4003_v4, %v4768_v48  ;;  %2078 = vrot.lane.b32.xlu0 %v2075_v22, %s2999_s21  ;;  %v5474_v22 = vld [vmem:[#allocation64_spill] sm:$0xff] }
 0x20e   : > { %v1028_v11 = vadd.f32 %v5471_v5, %v986_v51  ;;  %v1049_v8 = vadd.f32 %v5472_v34, %v1007_v32  ;;  %v2013_v55 = vrot.slane %v2006_v14, 2  ;;  %v2109_v40 = vmul.f32 %v3840_v30, %v4768_v48  ;;  %v1519_v0 = vpop.permute.xlu0 %1518  ;;  %v5476_v32 = vld [vmem:[#allocation25_spill] sm:$0xff] }
 0x20f   : > { %v1349_v6 = vadd.f32 %v4537_v37, %v1307_v36  ;;  %v1370_v43 = vadd.f32 %v4575_v26, %v1328_v56  ;;  %v2130_v25 = vmul.f32 %v3938_v16, %v4783_v39  ;;  %v4808_v50 = vmul.f32 %v3959_v18, %v4783_v39 }
 0x210   : > { %1996 = vrot.lane.b32.xlu1 %v1993_v41, %s2999_s21  ;;  %v1070_v1 = vadd.f32 %v5473_v62, %v1028_v11  ;;  %v1091_v14 = vadd.f32 %v5474_v22, %v1049_v8  ;;  %v4815_v37 = vpop.permute.xlu1 %1436  ;;  %v2096_v26 = vsel %vm189_vm2, %v2094_v61, %v2095_v2  ;;  %v2116_v57 = vrot.slane %v4794_v21, 4  ;;  %v5477_v11 = vld [vmem:[#allocation30_spill] sm:$0xff]  ;;  %v5478_v8 = vld [vmem:[#allocation32_spill] sm:$0xff] }
 0x211   : > { %v1398_v30 = vadd.f32 %v4606_v20, %v1370_v43  ;;  %2099 = vrot.lane.b32.xlu0 %v2096_v26, %s2999_s21  ;;  %v5475_v41 = vrot.slane %v4623_v15, 2  ;;  %v2115_v51 = vrot.slane %v2109_v40, 4  ;;  %v2034_v33 = vrot.slane %v2027_v45, 2  ;;  %v5479_v62 = vld [vmem:[#allocation66_spill] sm:$0xff] }
 0x212   : > { %v2048_v20 = vmul.f32 %v4160_v63, %v4676_v10  ;;  %v1384_v36 = vadd.f32 %v5476_v32, %v1349_v6  ;;  %v2136_v61 = vrot.slane %v2130_v25, 5  ;;  %v2137_v5 = vrot.slane %v4808_v50, 5  ;;  %v1540_v43 = vpop.permute.xlu0 %1539 }
 0x213   : > { %v2014_v44 = vsel %vm646_vm7, %v5475_v41, %v2013_v55  ;;  %v1440_v56 = vadd.f32 %v4678_v12, %v1398_v30  ;;  %v1105_v34 = vadd.f32 %v5477_v11, %v1070_v1  ;;  %v1119_v15 = vadd.f32 %v5478_v8, %v1091_v14  ;;  %v4862_v41 = vld [vmem:[#allocation5] sm:$0xff] }
 0x214   : > { %2017 = vrot.lane.b32.xlu1 %v2014_v44, %s2999_s21  ;;  %v4834_v55 = vstv %s4785_s25  ;;  %v2069_v45 = vmul.f32 %v4200_v58, %v4686_v3  ;;  %v1419_v10 = vadd.f32 %v4645_v49, %v1384_v36  ;;  %v4842_v40 = vpop.permute.xlu1 %1457  ;;  %v2117_v6 = vsel %vm189_vm2, %v2115_v51, %v2116_v57  ;;  %v5481_v44 = vld [vmem:[#allocation67_spill] sm:$0xff]  ;;  %s2510_s25 = scalar_lea.sflag [#allocation10], %s3142_s8 }
 0x215   : > { %v1482_v12 = vadd.f32 %v4744_v52, %v1440_v56  ;;  %v4849_v25 = vmul.f32 %v4003_v4, %v4834_v55  ;;  %v1140_v1 = vadd.f32 %v5479_v62, %v1105_v34  ;;  %v1161_v3 = vadd.f32 %v4360_v42, %v1119_v15  ;;  %2120 = vrot.lane.b32.xlu0 %v2117_v6, %s2999_s21 }
 0x216   : > { %v5480_v49 = vrot.slane %v4649_v23, 2  ;;  %v2055_v22 = vrot.slane %v2048_v20, 3  ;;  %v1461_v14 = vadd.f32 %v4717_v29, %v1419_v10  ;;  %v2138_v26 = vsel %vm750_vm9, %v2136_v61, %v2137_v5  ;;  %v5482_v23 = vld [vmem:[#allocation41_spill] sm:$0xff] }
 0x217   : > { %v1524_v30 = vadd.f32 %v1519_v0, %v1482_v12  ;;  %v2151_v42 = vmul.f32 %v4862_v41, %v4834_v55  ;;  %v1182_v51 = vadd.f32 %v5481_v44, %v1140_v1  ;;  %v1203_v32 = vadd.f32 %v5482_v23, %v1161_v3 }
 0x218   : > { %v2035_v52 = vsel %vm646_vm7, %v5480_v49, %v2034_v33  ;;  %v1561_v33 = vpop.permute.xlu0 %1560  ;;  %v2076_v20 = vrot.slane %v2069_v45, 3  ;;  %v4869_v36 = vstv %s4812_s28  ;;  %v1503_v29 = vadd.f32 %v4780_v35, %v1461_v14  ;;  %v1479_v56 = vpop.permute.xlu1 %1478 }
 0x219   : > { %2038 = vrot.lane.b32.xlu1 %v2035_v52, %s2999_s21  ;;  %v1566_v0 = vadd.f32 %v1561_v33, %v1524_v30  ;;  %v2158_v61 = vrot.slane %v4849_v25, 5  ;;  %v4875_v11 = vmul.f32 %v3959_v18, %v4869_v36  ;;  %v1224_v34 = vadd.f32 %v4476_v46, %v1182_v51  ;;  %2141 = vrot.lane.b32.xlu0 %v2138_v26, %s2999_s21 }
 0x21a   : > { %v1245_v8 = vadd.f32 %v4513_v53, %v1203_v32  ;;  %v2056_v15 = vsel %vm681_vm8, %v2053_v54, %v2055_v22  ;;  %v2090_v35 = vmul.f32 %v4160_v63, %v4731_v59  ;;  %v1545_v45 = vadd.f32 %v1540_v43, %v1503_v29 }
 0x21b   : > { %v2157_v10 = vrot.slane %v2151_v42, 5  ;;  %v2172_v18 = vmul.f32 %v3938_v16, %v4869_v36  ;;  %v1266_v46 = vadd.f32 %v4548_v19, %v1224_v34  ;;  %v2077_v13 = vsel %vm681_vm8, %v2074_v7, %v2076_v20  ;;  %v5483_v42 = vld [vmem:[#allocation34_spill] sm:$0xff] }
 0x21c   : > { %v1287_v53 = vadd.f32 %v4583_v28, %v1245_v8  ;;  %v1582_v12 = vpop.permute.xlu0 %1581  ;;  %v4894_v54 = vstv %s4838_s10  ;;  %v1500_v59 = vpop.permute.xlu1 %1499  ;;  %v2179_v62 = vrot.slane %v4875_v11, 6  ;;  %v2097_v27 = vrot.slane %v2090_v35, 4  ;;  %v4963_v35 = vld [vmem:[#allocation4 + $0x8] sm:$0xff]  ;;  %s2901_s10 = sshll.u32 %s3001_s22, 4  ;;  %s2902_s10 = int_to_ptr.vmem [resolvable:$false] %s2901_s10 }
 0x21d   : > { %2059 = vrot.lane.b32.xlu1 %v2056_v15, %s2999_s21  ;;  %v1587_v6 = vadd.f32 %v1582_v12, %v1545_v45  ;;  %v2159_v43 = vsel %vm750_vm9, %v2157_v10, %v2158_v61  ;;  %v4902_v16 = vmul.f32 %v4003_v4, %v4894_v54  ;;  %v1308_v19 = vadd.f32 %v4618_v31, %v1266_v46  ;;  %v4949_v15 = vld [vmem:[#allocation4] sm:$0xff] }
 0x21e   : > { %v1329_v28 = vadd.f32 %v4653_v17, %v1287_v53  ;;  %2162 = vrot.lane.b32.xlu0 %v2159_v43, %s2999_s21  ;;  %v2111_v7 = vmul.f32 %v4200_v58, %v4768_v48  ;;  %v2178_v1 = vrot.slane %v2172_v18, 6  ;;  %v2193_v3 = vmul.f32 %v4862_v41, %v4894_v54 }
 0x21f   : > { %v1350_v4 = vadd.f32 %v4688_v38, %v1308_v19  ;;  %v2200_v48 = vrot.slane %v4902_v16, 6  ;;  %v2132_v14 = vmul.f32 %v4160_v63, %v4783_v39  ;;  %v2153_v29 = vmul.f32 %v4200_v58, %v4834_v55 }
 0x220   : > { %v1371_v49 = vadd.f32 %v4727_v60, %v1329_v28  ;;  %v1603_v52 = vpop.permute.xlu0 %1602  ;;  %v1521_v17 = vpop.permute.xlu1 %1520  ;;  %v2180_v22 = vsel %vm785_vm10, %v2178_v1, %v2179_v62  ;;  %v2098_v60 = vsel %vm189_vm2, %v2095_v2, %v2097_v27  ;;  %v2118_v30 = vrot.slane %v2111_v7, 4  ;;  %v4982_v28 = vld [vmem:[#allocation5 + $0x8] sm:$0xff] }
 0x221   : > { %2080 = vrot.lane.b32.xlu1 %v2077_v13, %s2999_s21  ;;  %v1608_v31 = vadd.f32 %v1603_v52, %v1566_v0  ;;  %v2199_v26 = vrot.slane %v2193_v3, 6  ;;  %v1385_v44 = vadd.f32 %v5483_v42, %v1350_v4  ;;  %v2213_v2 = vstv %s4904_s12  ;;  %s2903_s12 = scalar_lea.vmem %s2902_s10, 512 }
 0x222   : > { %v1399_v38 = vadd.f32 %v4753_v9, %v1371_v49  ;;  %2183 = vrot.lane.b32.xlu0 %v2180_v22, %s2999_s21  ;;  %v2139_v32 = vrot.slane %v2132_v14, 5  ;;  %v2160_v46 = vrot.slane %v2153_v29, 5  ;;  %v2174_v53 = vmul.f32 %v4160_v63, %v4869_v36 }
 0x223   : > { %v2201_v47 = vsel %vm785_vm10, %v2199_v26, %v2200_v48  ;;  %v1420_v33 = vadd.f32 %v4789_v24, %v1385_v44  ;;  %v2214_v24 = vmul.f32 %v4949_v15, %v2213_v2  ;;  %v2195_v1 = vmul.f32 %v4200_v58, %v4894_v54 }
 0x224   : > { %v1441_v51 = vadd.f32 %v4815_v37, %v1399_v38  ;;  %v1624_v23 = vpop.permute.xlu0 %1623  ;;  %v1542_v9 = vpop.permute.xlu1 %1541  ;;  %v2119_v37 = vsel %vm189_vm2, %v2116_v57, %v2118_v30  ;;  %v2140_v55 = vsel %vm750_vm9, %v2137_v5, %v2139_v32  ;;  %v2161_v27 = vsel %vm750_vm9, %v2158_v61, %v2160_v46 }
 0x225   : > { %2101 = vrot.lane.b32.xlu1 %v2098_v60, %s2999_s21  ;;  %v1629_v39 = vadd.f32 %v1624_v23, %v1587_v6  ;;  %v1462_v0 = vadd.f32 %v4842_v40, %v1420_v33  ;;  %v2227_v40 = vstv %s4924_s30  ;;  %v4979_v6 = vstv %s4934_s11 }
 0x226   : > { %v1483_v20 = vadd.f32 %v1479_v56, %v1441_v51  ;;  %2204 = vrot.lane.b32.xlu0 %v2201_v47, %s2999_s21  ;;  %v4955_v56 = vstv %s4916_s7  ;;  %v2228_v13 = vmul.f32 %v4862_v41, %v2227_v40  ;;  %v4986_v63 = vmul.f32 %v4982_v28, %v4979_v6 }
 0x227   : > { %v4967_v45 = vmul.f32 %v4963_v35, %v4955_v56  ;;  %v1504_v10 = vadd.f32 %v1500_v59, %v1462_v0  ;;  %v2242_v50 = vmul.f32 %v4949_v15, %v4955_v56  ;;  %v2181_v7 = vrot.slane %v2174_v53, 6 }
 0x228   : > { %v1525_v34 = vadd.f32 %v1521_v17, %v1483_v20  ;;  %v1645_v8 = vpop.permute.xlu0 %1644  ;;  %v1563_v57 = vpop.permute.xlu1 %1562  ;;  %v2263_v4 = vmul.f32 %v4862_v41, %v4979_v6  ;;  %v4998_v52 = vstv %s4957_s13  ;;  %v2270_v61 = vrot.slane %v4986_v63, 1 }
 0x229   : > { %2122 = vrot.lane.b32.xlu1 %v2119_v37, %s2999_s21  ;;  %v1650_v21 = vadd.f32 %v1645_v8, %v1608_v31  ;;  %v1546_v5 = vadd.f32 %v1542_v9, %v1504_v10  ;;  %v2249_v19 = vrot.slane %v4967_v45, 1  ;;  %v2248_v3 = vrot.slane %v2242_v50, 1 }
 0x22a   : > { %v1567_v18 = vadd.f32 %v1563_v57, %v1525_v34  ;;  %2218 = vrot.lane.b32.xlu0 %v2214_v24, %s3000_s29  ;;  %v5006_v58 = vmul.f32 %v4963_v35, %v4998_v52  ;;  %v2182_v22 = vsel %vm785_vm10, %v2179_v62, %v2181_v7  ;;  %v2202_v14 = vrot.slane %v2195_v1, 6 }
 0x22b   : > { %v2250_v25 = vsel %vm611_vm6, %v2248_v3, %v2249_v19  ;;  %v2269_v38 = vrot.slane %v2263_v4, 1  ;;  %v2284_v60 = vmul.f32 %v4949_v15, %v4998_v52  ;;  %v5015_v26 = vstv %s2737_s15 }
 0x22c   : > { %v1659_v12 = vpop.permute.xlu0 %1658  ;;  %v1584_v43 = vpop.permute.xlu1 %1583  ;;  %v2291_v62 = vrot.slane %v5006_v58, 2  ;;  %v5023_v51 = vmul.f32 %v4982_v28, %v5015_v26  ;;  %v2305_v47 = vmul.f32 %v4862_v41, %v5015_v26  ;;  %v2215_v33 = vmul.f32 %v4963_v35, %v2213_v2  ;;  %v5048_v2 = vld [vmem:[#allocation4 + $0x10] sm:$0x3f] }
 0x22d   : > { %2143 = vrot.lane.b32.xlu1 %v2140_v55, %s2999_s21  ;;  %v1664_v59 = vadd.f32 %v1659_v12, %v1629_v39  ;;  %v1588_v36 = vadd.f32 %v1584_v43, %v1546_v5  ;;  %v2271_v11 = vsel %vm611_vm6, %v2269_v38, %v2270_v61  ;;  %v2203_v39 = vsel %vm785_vm10, %v2200_v48, %v2202_v14  ;;  %v5071_v12 = vld [vmem:[#allocation5 + $0x10] sm:$0x3f] }
 0x22e   : > { %2232 = vrot.lane.b32.xlu0 %v2228_v13, %s3000_s29  ;;  %v2290_v9 = vrot.slane %v2284_v60, 2  ;;  %v5035_v20 = vstv %s2738_s16  ;;  %v2312_v48 = vrot.slane %v5023_v51, 2  ;;  %v2244_v8 = vmul.f32 %v5048_v2, %v4955_v56 }
 0x22f   : > { %v5045_v0 = vmul.f32 %v4963_v35, %v5035_v20  ;;  %v2311_v24 = vrot.slane %v2305_v47, 2  ;;  %v2229_v55 = vmul.f32 %v4982_v28, %v2227_v40  ;;  %v5058_v10 = vstv %s2739_s17 }
 0x230   : > { %v1673_v49 = vpop.permute.xlu0 %1672  ;;  %v1605_v17 = vpop.permute.xlu1 %1604  ;;  %v2292_v16 = vsel %vm646_vm7, %v2290_v9, %v2291_v62  ;;  %v5068_v50 = vmul.f32 %v4982_v28, %v5058_v10  ;;  %v2251_v40 = vrot.slane %v2244_v8, 1  ;;  %v2265_v13 = vmul.f32 %v5071_v12, %v4979_v6 }
 0x231   : > { %2164 = vrot.lane.b32.xlu1 %v2161_v27, %s2999_s21  ;;  %v1678_v31 = vadd.f32 %v1673_v49, %v1650_v21  ;;  %v1609_v54 = vadd.f32 %v1605_v17, %v1567_v18  ;;  %v2326_v21 = vmul.f32 %v4949_v15, %v5035_v20  ;;  %v2313_v56 = vsel %vm646_vm7, %v2311_v24, %v2312_v48 }
 0x232   : > { %2253 = vrot.lane.b32.xlu0 %v2250_v25, %s3000_s29  ;;  %v2333_v53 = vrot.slane %v5045_v0, 3  ;;  %v2347_v43 = vmul.f32 %v4862_v41, %v5058_v10  ;;  %v5079_v27 = vstv %s5037_s18  ;;  %v2354_v6 = vrot.slane %v5068_v50, 3 }
 0x233   : > { %v5089_v4 = vmul.f32 %v4963_v35, %v5079_v27  ;;  %v2272_v17 = vrot.slane %v2265_v13, 1  ;;  %v2286_v25 = vmul.f32 %v5048_v2, %v4998_v52  ;;  %v5101_v38 = vstv %s5060_s0 }
 0x234   : > { %v1694_v30 = vpop.permute.xlu0 %1693  ;;  %v1626_v44 = vpop.permute.xlu1 %1625  ;;  %v2389_v9 = vmul.f32 %v4862_v41, %v5101_v38  ;;  %v2328_v8 = vmul.f32 %v5048_v2, %v5035_v20  ;;  %v2349_v13 = vmul.f32 %v5071_v12, %v5058_v10 }
 0x235   : > { %2185 = vrot.lane.b32.xlu1 %v2182_v22, %s2999_s21  ;;  %v1699_v42 = vadd.f32 %v1694_v30, %v1664_v59  ;;  %v1630_v23 = vadd.f32 %v1626_v44, %v1588_v36  ;;  %v2332_v59 = vrot.slane %v2326_v21, 3  ;;  %v2368_v22 = vmul.f32 %v4949_v15, %v5079_v27 }
 0x236   : > { %2274 = vrot.lane.b32.xlu0 %v2271_v11, %s3000_s29  ;;  %v2375_v52 = vrot.slane %v5089_v4, 4  ;;  %v5111_v30 = vmul.f32 %v4982_v28, %v5101_v38  ;;  %v2273_v44 = vsel %vm611_vm6, %v2270_v61, %v2272_v17  ;;  %v2293_v11 = vrot.slane %v2286_v25, 2 }
 0x237   : > { %v2334_v3 = vsel %vm681_vm8, %v2332_v59, %v2333_v53  ;;  %v2395_v24 = vrot.slane %v2389_v9, 4  ;;  %v2356_v17 = vrot.slane %v2349_v13, 3  ;;  %v2370_v25 = vmul.f32 %v5048_v2, %v5079_v27 }
 0x238   : > { %v1715_v32 = vpop.permute.xlu0 %1714  ;;  %v1647_v29 = vpop.permute.xlu1 %1646 }
 0x239   : > { %2206 = vrot.lane.b32.xlu1 %v2203_v39, %s2999_s21  ;;  %v1720_v37 = vadd.f32 %v1715_v32, %v1678_v31  ;;  %v1651_v34 = vadd.f32 %v1647_v29, %v1609_v54  ;;  %v2252_v31 = vsel %vm611_vm6, %v2249_v19, %v2251_v40  ;;  %v2353_v54 = vrot.slane %v2347_v43, 3  ;;  %s2616_s21 = sshll.u32 %s3142_s8, 4 }
 0x23a   : > { %2295 = vrot.lane.b32.xlu0 %v2292_v16, %s3000_s29  ;;  %v2374_v39 = vrot.slane %v2368_v22, 4  ;;  %v5123_v32 = vstv %s5081_s27  ;;  %v2294_v16 = vsel %vm646_vm7, %v2291_v62, %v2293_v11  ;;  %v2335_v40 = vrot.slane %v2328_v8, 3  ;;  %s153_s23 = scalar_lea.vmem [#allocation11], %s2616_s21 }
 0x23b   : > { %v2355_v19 = vsel %vm681_vm8, %v2353_v54, %v2354_v6  ;;  %v2410_v21 = vmul.f32 %v4949_v15, %v5123_v32  ;;  %v2357_v27 = vsel %vm681_vm8, %v2354_v6, %v2356_v17  ;;  %s2523_s26 = sshll.u32 %s153_s23, 4  ;;  %s5226_s26 = int_to_ptr.vmem [resolvable:$true] %s2523_s26 }
 0x23c   : > { %v1736_v57 = vpop.permute.xlu0 %1735  ;;  %v1661_v46 = vpop.permute.xlu1 %1660  ;;  %v2376_v61 = vsel %vm189_vm2, %v2374_v39, %v2375_v52  ;;  %s2897_s28 = scalar_lea.vmem %s5226_s26, 256  ;;  %p2904_p10 = scmp.lt.s32.totalorder %s5226_s26, %s2902_s10 }
 0x23d   : > { %2220 = vrot.lane.b32.xlu1 %v2215_v33, %s3000_s29  ;;  %v1741_v18 = vadd.f32 %v1736_v57, %v1699_v42  ;;  %v1665_v5 = vadd.f32 %v1661_v46, %v1630_v23  ;;  %v2307_v23 = vmul.f32 %v5071_v12, %v5015_v26  ;;  %v2396_v26 = vrot.slane %v5111_v30, 4  ;;  %p2898_p11 = scmp.ne.s32.totalorder %s5226_s26, %s2897_s28  ;;  %p2905_p2 = scmp.lt.s32.totalorder %s2903_s12, %s2897_s28 }
 0x23e   : > { %2316 = vrot.lane.b32.xlu0 %v2313_v56, %s3000_s29  ;;  %v2416_v59 = vrot.slane %v2410_v21, 5 }
 0x23f   : > { %v2397_v58 = vsel %vm189_vm2, %v2395_v24, %v2396_v26  ;;  %p2899_p0 = pnand %p2898_p11, %p5484_p12  ;;  %p2906_p6 = por %p2905_p2, %p2904_p10 }
 0x240   : > { %v1757_v36 = vpop.permute.xlu0 %1756  ;;  %v1675_v1 = vpop.permute.xlu1 %1674 }
 0x241   : > { %2234 = vrot.lane.b32.xlu1 %v2229_v55, %s3000_s29  ;;  %v1762_v7 = vadd.f32 %v1757_v36, %v1720_v37  ;;  %v1679_v49 = vadd.f32 %v1675_v1, %v1651_v34  ;;  %v5133_v37 = vmul.f32 %v4963_v35, %v5123_v32  ;;  %v2314_v34 = vrot.slane %v2307_v23, 2  ;;  %p2900_p3 = pneg %p2899_p0 }
 0x242   : > { %2337 = vrot.lane.b32.xlu0 %v2334_v3, %s3000_s29  ;;  %v5145_v55 = vstv %s5103_s6 }
 0x243   : > { %v2417_v62 = vrot.slane %v5133_v37, 5  ;;  %v5153_v20 = vmul.f32 %v4982_v28, %v5145_v55  ;;  %v2431_v43 = vmul.f32 %v4862_v41, %v5145_v55  ;;  %v2433_v24 = vmul.f32 %v5071_v12, %v5145_v55  ;;  %p2907_p9 = pnand %p2906_p6, %p2900_p3 }
 0x244   : > { %v1778_v14 = vpop.permute.xlu0 %1777  ;;  %v1696_v45 = vpop.permute.xlu1 %1695 }
 0x245   : > { %2255 = vrot.lane.b32.xlu1 %v2252_v31, %s3000_s29  ;;  %v1783_v60 = vadd.f32 %v1778_v14, %v1741_v18  ;;  %v1700_v42 = vadd.f32 %v1696_v45, %v1665_v5  ;;  %v2315_v5 = vsel %vm646_vm7, %v2312_v48, %v2314_v34  ;;  %v2418_v51 = vsel %vm750_vm9, %v2416_v59, %v2417_v62 }
 0x246   : > { %2358 = vrot.lane.b32.xlu0 %v2355_v19, %s3000_s29  ;;  %v2438_v48 = vrot.slane %v5153_v20, 5  ;;  %v2336_v31 = vsel %vm681_vm8, %v2333_v53, %v2335_v40  ;;  %v2437_v54 = vrot.slane %v2431_v43, 5 }
 0x248   : > { %v1799_v47 = vpop.permute.xlu0 %1798  ;;  %v1717_v63 = vpop.permute.xlu1 %1716  ;;  %v2439_v19 = vsel %vm750_vm9, %v2437_v54, %v2438_v48 }
 0x249   : > { %2276 = vrot.lane.b32.xlu1 %v2273_v44, %s3000_s29  ;;  %v1804_v33 = vadd.f32 %v1799_v47, %v1762_v7  ;;  %v1721_v29 = vadd.f32 %v1717_v63, %v1679_v49  ;;  %v2451_v7 = vstv %s5125_s1  ;;  %v2377_v44 = vrot.slane %v2370_v25, 4 }
 0x24a   : > { %2379 = vrot.lane.b32.xlu0 %v2376_v61, %s3000_s29  ;;  %v5170_v49 = vmul.f32 %v4963_v35, %v2451_v7  ;;  %v2452_v22 = vmul.f32 %v4949_v15, %v2451_v7  ;;  %v2391_v15 = vmul.f32 %v5071_v12, %v5101_v38  ;;  %v2412_v38 = vmul.f32 %v5048_v2, %v5123_v32 }
 0x24b   : > { %v2378_v50 = vsel %vm189_vm2, %v2375_v52, %v2377_v44  ;;  %v2454_v20 = vmul.f32 %v5048_v2, %v2451_v7 }
 0x24c   : > { %v1820_v57 = vpop.permute.xlu0 %1819  ;;  %v1738_v46 = vpop.permute.xlu1 %1737  ;;  %v2458_v11 = vrot.slane %v2452_v22, 6  ;;  %v2398_v6 = vrot.slane %v2391_v15, 4  ;;  %v2419_v52 = vrot.slane %v2412_v38, 5 }
 0x24d   : > { %2297 = vrot.lane.b32.xlu1 %v2294_v16, %s3000_s29  ;;  %v1825_v18 = vadd.f32 %v1820_v57, %v1783_v60  ;;  %v1742_v56 = vadd.f32 %v1738_v46, %v1700_v42  ;;  %v2472_v60 = vstv %s2745_s20  ;;  %v2459_v42 = vrot.slane %v5170_v49, 6 }
 0x24e   : > { %2400 = vrot.lane.b32.xlu0 %v2397_v58, %s3000_s29  ;;  %v2474_v0 = vmul.f32 %v4982_v28, %v2472_v60  ;;  %v2473_v23 = vmul.f32 %v4862_v41, %v2472_v60  ;;  %v2399_v4 = vsel %vm189_vm2, %v2396_v26, %v2398_v6  ;;  %v2420_v46 = vsel %vm750_vm9, %v2417_v62, %v2419_v52 }
 0x24f   : > { %v2460_v28 = vsel %vm785_vm10, %v2458_v11, %v2459_v42  ;;  %v2440_v58 = vrot.slane %v2433_v24, 5  ;;  %v2461_v40 = vrot.slane %v2454_v20, 6  ;;  %v2475_v13 = vmul.f32 %v5071_v12, %v2472_v60 }
 0x250   : > { %v1841_v36 = vpop.permute.xlu0 %1840  ;;  %v1759_v3 = vpop.permute.xlu1 %1758  ;;  %v2479_v41 = vrot.slane %v2473_v23, 6 }
 0x251   : > { %2318 = vrot.lane.b32.xlu1 %v2315_v5, %s3000_s29  ;;  %v1846_v1 = vadd.f32 %v1841_v36, %v1804_v33  ;;  %v1763_v10 = vadd.f32 %v1759_v3, %v1721_v29  ;;  %v2480_v33 = vrot.slane %v2474_v0, 6  ;;  %v2441_v55 = vsel %vm750_vm9, %v2438_v48, %v2440_v58 }
 0x252   : > { %2421 = vrot.lane.b32.xlu0 %v2418_v51, %s3000_s29  ;;  %v2462_v36 = vsel %vm785_vm10, %v2459_v42, %v2461_v40  ;;  %v2482_v2 = vrot.slane %v2475_v13, 6 }
 0x253   : > { %v2481_v34 = vsel %vm785_vm10, %v2479_v41, %v2480_v33 }
 0x254   : > { %v1862_v14 = vpop.permute.xlu0 %1861  ;;  %v1780_v45 = vpop.permute.xlu1 %1779  ;;  %v2483_v48 = vsel %vm785_vm10, %v2480_v33, %v2482_v2 }
 0x255   : > { %2339 = vrot.lane.b32.xlu1 %v2336_v31, %s3000_s29  ;;  %v1867_v35 = vadd.f32 %v1862_v14, %v1825_v18  ;;  %v1784_v53 = vadd.f32 %v1780_v45, %v1742_v56 }
 0x256   : > { %2442 = vrot.lane.b32.xlu0 %v2439_v19, %s3000_s29 }
 0x258   : > { %v1883_v39 = vpop.permute.xlu0 %1882  ;;  %v1801_v47 = vpop.permute.xlu1 %1800 }
 0x259   : > { %2360 = vrot.lane.b32.xlu1 %v2357_v27, %s3000_s29  ;;  %v1888_v9 = vadd.f32 %v1883_v39, %v1846_v1  ;;  %v1805_v63 = vadd.f32 %v1801_v47, %v1763_v10 }
 0x25a   : > { %2463 = vrot.lane.b32.xlu0 %v2460_v28, %s3000_s29 }
 0x25c   : > { %v1904_v61 = vpop.permute.xlu0 %1903  ;;  %v1822_v16 = vpop.permute.xlu1 %1821 }
 0x25d   : > { %2381 = vrot.lane.b32.xlu1 %v2378_v50, %s3000_s29  ;;  %v1909_v29 = vadd.f32 %v1904_v61, %v1867_v35  ;;  %v1826_v8 = vadd.f32 %v1822_v16, %v1784_v53 }
 0x25e   : > { %2484 = vrot.lane.b32.xlu0 %v2481_v34, %s3000_s29 }
 0x260   : > { %v1925_v32 = vpop.permute.xlu0 %1924  ;;  %v1843_v57 = vpop.permute.xlu1 %1842 }
 0x261   : > { %2402 = vrot.lane.b32.xlu1 %v2399_v4, %s3000_s29  ;;  %v1930_v21 = vadd.f32 %v1925_v32, %v1888_v9  ;;  %v1847_v18 = vadd.f32 %v1843_v57, %v1805_v63 }
 0x264   : > { %v1939_v30 = vpop.permute.xlu0 %1938  ;;  %v1864_v56 = vpop.permute.xlu1 %1863 }
 0x265   : > { %2423 = vrot.lane.b32.xlu1 %v2420_v46, %s3000_s29  ;;  %v1944_v26 = vadd.f32 %v1939_v30, %v1909_v29  ;;  %v1868_v5 = vadd.f32 %v1864_v56, %v1826_v8 }
 0x268   : > { %v1953_v59 = vpop.permute.xlu0 %1952 }
 0x269   : > { %2444 = vrot.lane.b32.xlu1 %v2441_v55, %s3000_s29  ;;  %v1958_v37 = vadd.f32 %v1953_v59, %v1930_v21  ;;  %v1885_v43 = vpop.permute.xlu1 %1884 }
 0x26a   : > { %v1889_v62 = vadd.f32 %v1885_v43, %v1847_v18 }
 0x26c   : > { %v1974_v7 = vpop.permute.xlu0 %1973 }
 0x26d   : > { %2465 = vrot.lane.b32.xlu1 %v2462_v36, %s3000_s29  ;;  %v1979_v1 = vadd.f32 %v1974_v7, %v1944_v26  ;;  %v1906_v3 = vpop.permute.xlu1 %1905 }
 0x26e   : > { %v1910_v51 = vadd.f32 %v1906_v3, %v1868_v5 }
 0x270   : > { %v1995_v12 = vpop.permute.xlu0 %1994 }
 0x271   : > { %2486 = vrot.lane.b32.xlu1 %v2483_v48, %s3000_s29  ;;  %v2000_v49 = vadd.f32 %v1995_v12, %v1958_v37  ;;  %v1927_v10 = vpop.permute.xlu1 %1926 }
 0x272   : > { %v1931_v31 = vadd.f32 %v1927_v10, %v1889_v62 }
 0x274   : > { %v2016_v17 = vpop.permute.xlu0 %2015 }
 0x275   : > { %v2021_v25 = vadd.f32 %v2016_v17, %v1979_v1 }
 0x276   : > { %v1941_v54 = vpop.permute.xlu1 %1940 }
 0x277   : > { %v1945_v22 = vadd.f32 %v1941_v54, %v1910_v51 }
 0x278   : > { %v2037_v14 = vpop.permute.xlu0 %2036 }
 0x279   : > { %v2042_v60 = vadd.f32 %v2037_v14, %v2000_v49 }
 0x27a   : > { %v1955_v35 = vpop.permute.xlu1 %1954 }
 0x27b   : > { %v1959_v45 = vadd.f32 %v1955_v35, %v1931_v31 }
 0x27c   : > { %v2058_v19 = vpop.permute.xlu0 %2057 }
 0x27d   : > { %v2063_v42 = vadd.f32 %v2058_v19, %v2021_v25 }
 0x27e   : > { %v1976_v0 = vpop.permute.xlu1 %1975 }
 0x27f   : > { %v1980_v53 = vadd.f32 %v1976_v0, %v1945_v22 }
 0x280   : > { %v2079_v27 = vpop.permute.xlu0 %2078 }
 0x281   : > { %v2084_v40 = vadd.f32 %v2079_v27, %v2042_v60 }
 0x282   : > { %v1997_v44 = vpop.permute.xlu1 %1996 }
 0x283   : > { %v2001_v15 = vadd.f32 %v1997_v44, %v1959_v45 }
 0x284   : > { %v2100_v11 = vpop.permute.xlu0 %2099 }
 0x285   : > { %v2105_v59 = vadd.f32 %v2100_v11, %v2063_v42 }
 0x286   : > { %v2018_v23 = vpop.permute.xlu1 %2017 }
 0x287   : > { %v2022_v39 = vadd.f32 %v2018_v23, %v1980_v53 }
 0x288   : > { %v2121_v9 = vpop.permute.xlu0 %2120 }
 0x289   : > { %v2126_v37 = vadd.f32 %v2121_v9, %v2084_v40 }
 0x28b   : > { %v2039_v47 = vpop.permute.xlu1 %2038 }
 0x28c   : > { %v2043_v28 = vadd.f32 %v2039_v47, %v2001_v15  ;;  %v2142_v33 = vpop.permute.xlu0 %2141 }
 0x28d   : > { %v2147_v62 = vadd.f32 %v2142_v33, %v2105_v59 }
 0x28f   : > { %v2060_v63 = vpop.permute.xlu1 %2059 }
 0x290   : > { %v2064_v50 = vadd.f32 %v2060_v63, %v2022_v39  ;;  %v2163_v6 = vpop.permute.xlu0 %2162 }
 0x291   : > { %v2168_v36 = vadd.f32 %v2163_v6, %v2126_v37 }
 0x293   : > { %v2081_v38 = vpop.permute.xlu1 %2080 }
 0x294   : > { %v2184_v41 = vpop.permute.xlu0 %2183  ;;  %v2085_v42 = vadd.f32 %v2081_v38, %v2043_v28 }
 0x295   : > { %v2189_v7 = vadd.f32 %v2184_v41, %v2147_v62 }
 0x297   : > { %v2102_v61 = vpop.permute.xlu1 %2101 }
 0x298   : > { %v2205_v29 = vpop.permute.xlu0 %2204  ;;  %v2106_v27 = vadd.f32 %v2102_v61, %v2064_v50 }
 0x299   : > { %v2210_v1 = vadd.f32 %v2205_v29, %v2168_v36 }
 0x29b   : > { %v2123_v16 = vpop.permute.xlu1 %2122 }
 0x29c   : > { %v2219_v34 = vpop.permute.xlu0 %2218  ;;  %v2127_v44 = vadd.f32 %v2123_v16, %v2085_v42 }
 0x29d   : > { %v2224_v51 = vadd.f32 %v2219_v34, %v2189_v7 }
 0x29f   : > { %v2144_v8 = vpop.permute.xlu1 %2143 }
 0x2a0   : > { %v2233_v4 = vpop.permute.xlu0 %2232  ;;  %v2148_v9 = vadd.f32 %v2144_v8, %v2106_v27 }
 0x2a1   : > { %v2238_v48 = vadd.f32 %v2233_v4, %v2210_v1 }
 0x2a3   : > { %v2165_v52 = vpop.permute.xlu1 %2164 }
 0x2a4   : > { %v2254_v24 = vpop.permute.xlu0 %2253  ;;  %v2169_v47 = vadd.f32 %v2165_v52, %v2127_v44 }
 0x2a5   : > { %v2259_v49 = vadd.f32 %v2254_v24, %v2224_v51 }
 0x2a7   : > { %v2186_v32 = vpop.permute.xlu1 %2185 }
 0x2a8   : > { %v2275_v21 = vpop.permute.xlu0 %2274  ;;  %v2190_v63 = vadd.f32 %v2186_v32, %v2148_v9 }
 0x2a9   : > { %v2280_v10 = vadd.f32 %v2275_v21, %v2238_v48 }
 0x2ab   : > { %v2207_v57 = vpop.permute.xlu1 %2206 }
 0x2ac   : > { %v2296_v18 = vpop.permute.xlu0 %2295  ;;  %v2211_v6 = vadd.f32 %v2207_v57, %v2169_v47 }
 0x2ad   : > { %v2301_v17 = vadd.f32 %v2296_v18, %v2259_v49 }
 0x2af   : > { %v2221_v46 = vpop.permute.xlu1 %2220 }
 0x2b0   : > { %v2317_v58 = vpop.permute.xlu0 %2316  ;;  %v2225_v34 = vadd.f32 %v2221_v46, %v2190_v63 }
 0x2b1   : > { %v2322_v25 = vadd.f32 %v2317_v58, %v2280_v10 }
 0x2b3   : > { %v2235_v20 = vpop.permute.xlu1 %2234 }
 0x2b4   : > { %v2338_v30 = vpop.permute.xlu0 %2337  ;;  %v2239_v4 = vadd.f32 %v2235_v20, %v2211_v6 }
 0x2b5   : > { %v2343_v22 = vadd.f32 %v2338_v30, %v2301_v17 }
 0x2b7   : > { %v2256_v26 = vpop.permute.xlu1 %2255 }
 0x2b8   : > { %v2359_v56 = vpop.permute.xlu0 %2358  ;;  %v2260_v24 = vadd.f32 %v2256_v26, %v2225_v34 }
 0x2b9   : > { %v2364_v14 = vadd.f32 %v2359_v56, %v2322_v25 }
 0x2bb   : > { %v2277_v5 = vpop.permute.xlu1 %2276 }
 0x2bc   : > { %v2380_v55 = vpop.permute.xlu0 %2379  ;;  %v2281_v28 = vadd.f32 %v2277_v5, %v2239_v4 }
 0x2bd   : > { %v2385_v35 = vadd.f32 %v2380_v55, %v2343_v22 }
 0x2bf   : > { %v2298_v13 = vpop.permute.xlu1 %2297 }
 0x2c0   : > { %v2401_v43 = vpop.permute.xlu0 %2400  ;;  %v2302_v21 = vadd.f32 %v2298_v13, %v2260_v24 }
 0x2c1   : > { %v2406_v45 = vadd.f32 %v2401_v43, %v2364_v14 }
 0x2c3   : > { %v2319_v2 = vpop.permute.xlu1 %2318 }
 0x2c4   : > { %v2422_v3 = vpop.permute.xlu0 %2421  ;;  %v2323_v50 = vadd.f32 %v2319_v2, %v2281_v28 }
 0x2c5   : > { %v2427_v0 = vadd.f32 %v2422_v3, %v2385_v35 }
 0x2c7   : > { %v2340_v12 = vpop.permute.xlu1 %2339 }
 0x2c8   : > { %v2443_v31 = vpop.permute.xlu0 %2442  ;;  %v2344_v61 = vadd.f32 %v2340_v12, %v2302_v21 }
 0x2c9   : > { %v2448_v53 = vadd.f32 %v2443_v31, %v2406_v45 }
 0x2cb   : > { %v2361_v54 = vpop.permute.xlu1 %2360 }
 0x2cc   : > { %v2464_v60 = vpop.permute.xlu0 %2463  ;;  %v2365_v16 = vadd.f32 %v2361_v54, %v2323_v50 }
 0x2cd   : > { %v2469_v11 = vadd.f32 %v2464_v60, %v2427_v0 }
 0x2cf   : > { %v2382_v19 = vpop.permute.xlu1 %2381 }
 0x2d0   : > { %v2485_v15 = vpop.permute.xlu0 %2484  ;;  %v2386_v58 = vadd.f32 %v2382_v19, %v2344_v61 }
 0x2d1   : > { %v2490_v23 = vadd.f32 %v2485_v15, %v2448_v53 }
 0x2d3   : > { %v2403_v39 = vpop.permute.xlu1 %2402  ;;  %v2492_v33 = vadd.f32 %v2490_v23, %v2469_v11 }
 0x2d4   : > { %v2407_v8 = vadd.f32 %v2403_v39, %v2365_v16 }
 0x2d5   : > { %v2746_v41 = vmul.f32 -1.442695, %v2492_v33 }
 0x2d7   : > { %v2424_v29 = vpop.permute.xlu1 %2423  ;;  %2837 = vpow2.f32 %v2746_v41 }
 0x2d8   : > { %v2428_v52 = vadd.f32 %v2424_v29, %v2386_v58 }
 0x2db   : > { %v2445_v38 = vpop.permute.xlu1 %2444 }
 0x2dc   : > { %v2449_v30 = vadd.f32 %v2445_v38, %v2407_v8 }
 0x2df   : > { %v2466_v18 = vpop.permute.xlu1 %2465 }
 0x2e0   : > { %v2470_v46 = vadd.f32 %v2466_v18, %v2428_v52 }
 0x2e1   : > { %v2838_v32 = vpop.eup %2837 }
 0x2e2   : > { %v2500_v56 = vadd.f32 1.0, %v2838_v32 }
 0x2e3   : > { %v2487_v57 = vpop.permute.xlu1 %2486 }
 0x2e4   : > { %v2491_v20 = vadd.f32 %v2487_v57, %v2449_v30  ;;  %2839 = vrcp.f32 %v2500_v56 }
 0x2e6   : > { %v2493_v26 = vadd.f32 %v2491_v20, %v2470_v46 }
 0x2e8   : > { %v2747_v5 = vmul.f32 -1.442695, %v2493_v26 }
 0x2ea   : > { %2841 = vpow2.f32 %v2747_v5 }
 0x2ee   : > { %v2840_v55 = vpop.eup %2839 }
 0x2ef   : > { %2507 = vst.msk [vmem:[%s153_s23] sm:$0xff] %vm2506_vm11, %v2840_v55 }
 0x2f4   : > { %v2842_v40 = vpop.eup %2841 }
 0x2f5   : > { %v2501_v13 = vadd.f32 1.0, %v2842_v40 }
 0x2f7   : > { %2843 = vrcp.f32 %v2501_v13 }
 0x301   : > { %v2844_v59 = vpop.eup %2843 }
 0x302   : > { %2508 = vst.msk [vmem:[%s153_s23 + $0x8] sm:$0xff] %vm2506_vm11, %v2844_v59 }
 0x303   : > { %2910 = shalt.err (!%p2907_p9)
}
 0x304   : > { %s2911_s7 = scalar_lea.hbm %s5224_s14, 256  ;;  %s2915_s13 = scalar_lea.hbm %s5277_s2, 512 }
 0x305   : > { %p2912_p7 = scmp.ne.s32.totalorder %s5224_s14, %s2911_s7  ;;  %p2916_p4 = scmp.lt.u32.totalorder %s5224_s14, %s5277_s2 }
 0x306   : > { %p2917_p5 = scmp.lt.u32.totalorder %s2915_s13, %s2911_s7  ;;  %p2919_p11 = scmp.lt.u32.totalorder %s2911_s7, %s5224_s14 }
 0x307   : > { %p2913_p13 = pnand %p2912_p7, %p5484_p12 }
 0x308   : > { %p2918_p8 = por %p2917_p5, %p2916_p4 }
 0x309   : > { %p2914_p1 = pneg %p2913_p13 }
 0x30a   : > { %p2920_p0 = por %p2919_p11, %p2918_p8 }
 0x30c   : > { %p2921_p3 = pnand %p2920_p0, %p2914_p1 }
 0x30e   : > { %2924 = shalt.err (!%p2921_p3)
}
 0x30f   : > { %s3002_s16 = smov 128   ;;  %s3003_s17 = smov 8  }
 0x310   : > { %2757 = dma.vmem_to_hbm [thread:$0]  (%p5484_p12), %s5226_s26, 256, %s5224_s14, %s2510_s25, %s3002_s16, %s3002_s16, %s3003_s17  }
 0x311 PF: > { %s5485_s18 = sld [smem:[#allocation18_spill]]  ;;  %s2538_s0 = sand.u32 1, %s2961_s19  }
 0x312   : > { %p5486_p10 = scmp.ne.s32.totalorder %s5311_s5, 0  ;;  %s2539_s27 = scalar_lea.sflag [#allocation10], %s2538_s0 }
 0x317   : > { %p5487_p2 = scmp.ge.s32.totalorder %s5485_s18, 2 }
 0x319   : > { %p2764_p6 = pnand %p5487_p2, %p5486_p10 }
 0x31b   : > { %2956 = dma.done.wait (!%p2764_p6), %s2539_s27, 256  }
 0x31c   : > { %2958 = vsyncadd (!%p2764_p6), %s2539_s27, 4294967040  ;;  %s22_s24 = sadd.s32 1, %s5485_s18   ;;  %s5488_s19 = sld [smem:[#allocation15_spill]] }
 0x31d   : > { %p19_p9 = scmp.ge.s32.totalorder %s22_s24, 4   ;;  %s5489_s20 = sld [smem:[#allocation16_spill]] }
 0x31e   : > { %s5490_s21 = sld [smem:[#allocation20_spill]]  ;;  %s5491_s22 = sld [smem:[#allocation17_spill]] }
 0x31f   : > { %s5492_s23 = sld [smem:[#allocation19_spill]]  ;;  %21 = sbr.rel (!%p19_p9) target bundleno = 18 (0x12), region = 77 }
 0x326   :  { %2544 = vsyncpa [#allocation9], 1 }
 0x327   :  { %2546 = vsyncpa [#allocation9 + $0x1], 1 }
 0x328   :  { %2547 = vsyncpa [#allocation10], 1 }
 0x329   :  { %2549 = vsyncpa [#allocation10 + $0x1], 1 }

</bundles_post_ra>
